<compile_context>
chip_gen: v7x
topology: tpu7x:2x2x1
jax: 0.10.0
libtpu: 0.0.40
codegen_flags: <defaults>
</compile_context>

<pallas_src>
import math

import jax
import jax.numpy as jnp
from jax.experimental import pallas as pl
from jax.experimental.pallas import tpu as pltpu


def _round_up(x: int, m: int) -> int:
    return (x + m - 1) // m * m


# ---------------------------------------------------------------------------
# Kernel bodies
# ---------------------------------------------------------------------------

def _onehot_rows(idx_col, table_ref):
    """Gather rows of a VMEM-resident table via a one-hot matmul (MXU).

    idx_col   : (tile_b, 1) int32 value.
    table_ref : (rows_pad, 2*D_pad) ref, rows_pad a multiple of 128.
    Returns   : (tile_b, 2*D_pad) float32 — exact row selection (0/1 one-hot
                times bf16 values accumulates exactly in f32).
    """
    rows = table_ref.shape[0]
    lane_ids = jax.lax.broadcasted_iota(jnp.int32, (idx_col.shape[0], rows), 1)
    onehot = jnp.where(lane_ids == idx_col, 1.0, 0.0).astype(table_ref.dtype)
    return jnp.dot(onehot, table_ref[...], preferred_element_type=jnp.float32)


def _complex_scores(head, tail, rel):
    """head/tail/rel: (tile_b, 2*D_pad) f32, packed (re | im) -> (tile_b,) f32."""
    d = head.shape[-1] // 2
    hr, hi = head[:, :d], head[:, d:]
    tr, ti = tail[:, :d], tail[:, d:]
    rr, ri = rel[:, :d], rel[:, d:]
    # Re(<e_h, e_r, conj(e_t)>), factored form (6 mul/elem instead of 8):
    prod = rr * (hr * tr + hi * ti) + ri * (hr * ti - hi * tr)
    return jnp.sum(prod, axis=-1)


def _score_kernel_fused(h_idx_ref, r_idx_ref, t_idx_ref,
                        node_tab_ref, rel_tab_ref, o_ref):
    """Fully fused path: node + relation gathers and scoring in one kernel."""
    head = _onehot_rows(h_idx_ref[...], node_tab_ref)
    tail = _onehot_rows(t_idx_ref[...], node_tab_ref)
    rel = _onehot_rows(r_idx_ref[...], rel_tab_ref)
    o_ref[0, 0, :] = _complex_scores(head, tail, rel).astype(o_ref.dtype)


def _score_kernel_streamed(r_idx_ref, head_ref, tail_ref, rel_tab_ref, o_ref):
    """Streaming path: pre-gathered packed head/tail rows, fused rel gather."""
    head = head_ref[...].astype(jnp.float32)
    tail = tail_ref[...].astype(jnp.float32)
    rel = _onehot_rows(r_idx_ref[...], rel_tab_ref)
    o_ref[0, 0, :] = _complex_scores(head, tail, rel).astype(o_ref.dtype)


# ---------------------------------------------------------------------------
# Model wrapper
# ---------------------------------------------------------------------------

class ComplExJax:
    """ComplEx instantiation of the abstract PyTorch ``KGEModel`` (forward only).

    Embedding tables are stored packed as ``[rows_pad, 2 * D_pad]`` arrays:
    real part in columns ``[:hidden]``, imaginary part in columns
    ``[D_pad : D_pad + hidden]``; rows/columns are zero-padded to multiples of
    128 for lane / MXU alignment (padding never affects scores).

    ``emb_dtype`` defaults to bfloat16 (halves HBM traffic of this purely
    bandwidth-bound scoring); pass ``jnp.float32`` for exact parity with an
    fp32 PyTorch model.  All kernel arithmetic is float32.
    """

    _NODE_TABLE_VMEM_BUDGET = 4 * 1024 * 1024   # fully fused path if under this
    _REL_TABLE_VMEM_BUDGET = 8 * 1024 * 1024    # relation table must fit VMEM
    _STREAM_VMEM_BUDGET = 24 * 1024 * 1024      # per-tile working-set budget

    def __init__(self, num_nodes, num_relations, hidden_channels, key,
                 emb_dtype=jnp.bfloat16):
        self.num_nodes = num_nodes
        self.num_relations = num_relations
        self.hidden_channels = hidden_channels
        self.emb_dtype = emb_dtype

        self.d_pad = _round_up(hidden_channels, 128)
        self.num_nodes_pad = _round_up(num_nodes, 128)
        self.num_relations_pad = _round_up(num_relations, 128)

        k1, k2, k3, k4 = jax.random.split(key, 4)

        def xavier(k, rows):
            bound = math.sqrt(6.0 / (rows + hidden_channels))
            return jax.random.uniform(k, (rows, hidden_channels), jnp.float32,
                                      minval=-bound, maxval=bound)

        def pack(re, im, rows_pad):
            rows = re.shape[0]
            tab = jnp.zeros((rows_pad, 2 * self.d_pad), jnp.float32)
            tab = tab.at[:rows, :hidden_channels].set(re)
            tab = tab.at[:rows, self.d_pad:self.d_pad + hidden_channels].set(im)
            return tab.astype(emb_dtype)

        self.node_emb = pack(xavier(k1, num_nodes), xavier(k2, num_nodes),
                             self.num_nodes_pad)
        self.rel_emb = pack(xavier(k3, num_relations), xavier(k4, num_relations),
                            self.num_relations_pad)

    # -- tiling ---------------------------------------------------------------

    def _choose_tile_b(self, batch, bytes_per_row, requested):
        b128 = _round_up(max(batch, 1), 128)
        if requested is not None:
            return min(_round_up(max(requested, 1), 128), b128)
        tb = max(128, self._STREAM_VMEM_BUDGET // bytes_per_row // 128 * 128)
        tb = min(tb, 2048, b128)
        if b128 > 256:   # keep >= 2 grid tiles so v7x can shard across 2 TCs
            tb = min(tb, _round_up(b128 // 2, 128))
        return tb

    # -- forward --------------------------------------------------------------

    def forward(self, head_index, rel_type, tail_index, *,
                tile_b=None, fuse_node_gather=None):
        B = int(head_index.shape[0])
        two_d = 2 * self.d_pad
        emb_bytes = jnp.dtype(self.emb_dtype).itemsize

        node_tab_bytes = self.num_nodes_pad * two_d * emb_bytes
        rel_tab_bytes = self.num_relations_pad * two_d * emb_bytes
        assert rel_tab_bytes <= self._REL_TABLE_VMEM_BUDGET, (
            "relation table too large to keep resident in VMEM")
        # TODO(synk): stream pre-gathered relation rows instead of asserting
        #             for very large relation vocabularies.
        if fuse_node_gather is None:
            fuse_node_gather = node_tab_bytes <= self._NODE_TABLE_VMEM_BUDGET

        # Generous per-batch-row VMEM working-set estimate: f32 temporaries
        # plus either the one-hot gather temps or the double-buffered streams.
        bytes_per_row = 10 * two_d * 4
        if fuse_node_gather:
            bytes_per_row += 8 * self.num_nodes_pad
        else:
            bytes_per_row += 2 * 2 * two_d * emb_bytes
        tb = self._choose_tile_b(B, bytes_per_row, tile_b)
        B_pad = _round_up(B, tb)
        num_tiles = B_pad // tb

        vmem_est = (tb * bytes_per_row
                    + 2 * rel_tab_bytes
                    + (2 * node_tab_bytes if fuse_node_gather else 0)
                    + 8 * tb)
        vmem_limit = int(min(64 * 1024 * 1024,
                             max(32 * 1024 * 1024, 2 * vmem_est)))

        if B_pad != B:
            pad = B_pad - B
            head_index = jnp.pad(head_index, (0, pad))   # row 0 is a valid entry
            rel_type = jnp.pad(rel_type, (0, pad))
            tail_index = jnp.pad(tail_index, (0, pad))

        h_idx = head_index.astype(jnp.int32).reshape(B_pad, 1)
        r_idx = rel_type.astype(jnp.int32).reshape(B_pad, 1)
        t_idx = tail_index.astype(jnp.int32).reshape(B_pad, 1)

        idx_spec = pl.BlockSpec((tb, 1), lambda i: (i, 0))
        node_tab_spec = pl.BlockSpec(self.node_emb.shape, lambda i: (0, 0))
        rel_tab_spec = pl.BlockSpec(self.rel_emb.shape, lambda i: (0, 0))

        if fuse_node_gather:
            kernel = _score_kernel_fused
            in_specs = [idx_spec, idx_spec, idx_spec, node_tab_spec, rel_tab_spec]
            args = (h_idx, r_idx, t_idx, self.node_emb, self.rel_emb)
        else:
            # Node-row gathers left to XLA (packed re|im: 2 streams, not 4).
            head_rows = jnp.take(self.node_emb, head_index, axis=0)
            tail_rows = jnp.take(self.node_emb, tail_index, axis=0)
            row_spec = pl.BlockSpec((tb, two_d), lambda i: (i, 0))
            kernel = _score_kernel_streamed
            in_specs = [idx_spec, row_spec, row_spec, rel_tab_spec]
            args = (r_idx, head_rows, tail_rows, self.rel_emb)

        out = pl.pallas_call(
            kernel,
            out_shape=jax.ShapeDtypeStruct((num_tiles, 1, tb), jnp.float32),
            grid_spec=pltpu.PrefetchScalarGridSpec(
                num_scalar_prefetch=0,
                grid=(num_tiles,),
                in_specs=in_specs,
                out_specs=pl.BlockSpec((1, 1, tb), lambda i: (i, 0, 0)),
            ),
            compiler_params=pltpu.CompilerParams(
                dimension_semantics=("parallel",),
                vmem_limit_bytes=vmem_limit,
            ),
        )(*args)
        return out.reshape(B_pad)[:B]

    # -- pure-JAX reference (canonical 4-term ComplEx dot, f32 math) ----------

    def forward_ref(self, head_index, rel_type, tail_index):
        d = self.d_pad
        head = jnp.take(self.node_emb, head_index, axis=0).astype(jnp.float32)
        tail = jnp.take(self.node_emb, tail_index, axis=0).astype(jnp.float32)
        rel = jnp.take(self.rel_emb, rel_type, axis=0).astype(jnp.float32)
        hr, hi = head[:, :d], head[:, d:]
        tr, ti = tail[:, :d], tail[:, d:]
        rr, ri = rel[:, :d], rel[:, d:]

        def td(a, b, c):
            return jnp.sum(a * b * c, axis=-1)

        return td(hr, rr, tr) + td(hi, rr, ti) + td(hr, ri, ti) - td(hi, ri, tr)


if __name__ == "__main__":
    num_nodes = 1000
    num_relations = 32
    hidden_channels = 128   # full 128-lane occupancy per vreg
    batch = 300             # not a multiple of the tile -> exercises padding

    key = jax.random.PRNGKey(0)
    k_model, k_h, k_r, k_t = jax.random.split(key, 4)

    model = ComplExJax(num_nodes, num_relations, hidden_channels, k_model)

    head_index = jax.random.randint(k_h, (batch,), 0, num_nodes, dtype=jnp.int32)
    rel_type = jax.random.randint(k_r, (batch,), 0, num_relations, dtype=jnp.int32)
    tail_index = jax.random.randint(k_t, (batch,), 0, num_nodes, dtype=jnp.int32)

    ref = model.forward_ref(head_index, rel_type, tail_index)

    # Fully fused path (auto-selected: demo node table is ~0.5 MiB): indices +
    # VMEM-resident tables only, 2 grid tiles (megacore-friendly on v7x).
    scores_fused = model.forward(head_index, rel_type, tail_index)
    jax.block_until_ready(scores_fused)
    assert scores_fused.shape == (batch,)
    assert jnp.allclose(scores_fused, ref, atol=1e-4, rtol=1e-4)

    # Streaming path (XLA node gathers of packed [B, 2D] rows, relation gather
    # still fused in-kernel): multi-tile grid with a padded final tile.
    scores_stream = model.forward(head_index, rel_type, tail_index,
                                  tile_b=128, fuse_node_gather=False)
    jax.block_until_ready(scores_stream)
    assert scores_stream.shape == (batch,)
    assert jnp.allclose(scores_stream, ref, atol=1e-4, rtol=1e-4)

    print("KERNEL_OK")
</pallas_src>

<mosaic_0001>
module attributes {stable_mosaic.version = 11 : i64} {
  func.func @_score_kernel_fused(%arg0: i32, %arg1: memref<256x1xi32, #tpu.memory_space<vmem>>, %arg2: memref<256x1xi32, #tpu.memory_space<vmem>>, %arg3: memref<256x1xi32, #tpu.memory_space<vmem>>, %arg4: memref<1024x256xbf16, #tpu.memory_space<vmem>>, %arg5: memref<128x256xbf16, #tpu.memory_space<vmem>>, %arg6: memref<1x1x256xf32, #tpu.memory_space<vmem>>) attributes {dimension_semantics = [#tpu.dimension_semantics<parallel>], iteration_bounds = array<i64: 2>, scalar_prefetch = 0 : i64, scratch_operands = 0 : i64, tpu.core_type = #tpu.core_type<tc>, window_params = [{transform_indices = @transform_0, window_bounds = array<i64: 256, 1>}, {transform_indices = @transform_1, window_bounds = array<i64: 256, 1>}, {transform_indices = @transform_2, window_bounds = array<i64: 256, 1>}, {pipeline_mode = #tpu.pipeline_mode<synchronous>, transform_indices = @transform_3, window_bounds = array<i64: 1024, 256>}, {pipeline_mode = #tpu.pipeline_mode<synchronous>, transform_indices = @transform_4, window_bounds = array<i64: 128, 256>}, {transform_indices = @transform_5, window_bounds = array<i64: 1, 1, 256>}]} {
    %c0 = arith.constant 0 : index
    %c0_0 = arith.constant 0 : index
    %0 = vector.load %arg1[%c0, %c0_0] : memref<256x1xi32, #tpu.memory_space<vmem>>, vector<256x1xi32>
    %1 = tpu.iota {dimensions = array<i32: 1>} : vector<256x1024xi32>
    %2 = vector.broadcast %0 : vector<256x1xi32> to vector<256x1024xi32>
    %3 = arith.cmpi eq, %1, %2 : vector<256x1024xi32>
    %cst = arith.constant 1.000000e+00 : f32
    %cst_1 = arith.constant 0.000000e+00 : f32
    %4 = vector.broadcast %cst : f32 to vector<256x1024xf32>
    %5 = vector.broadcast %cst_1 : f32 to vector<256x1024xf32>
    %6 = arith.select %3, %4, %5 : vector<256x1024xi1>, vector<256x1024xf32>
    %7 = arith.truncf %6 : vector<256x1024xf32> to vector<256x1024xbf16>
    %c0_2 = arith.constant 0 : index
    %c0_3 = arith.constant 0 : index
    %8 = vector.load %arg4[%c0_2, %c0_3] : memref<1024x256xbf16, #tpu.memory_space<vmem>>, vector<1024x256xbf16>
    %cst_4 = arith.constant dense<0.000000e+00> : vector<256x256xf32>
    %9 = tpu.matmul %7, %8, %cst_4 {dimension_numbers = #tpu.dot_dimension_numbers<[1], [0], [0], [1], [0, 0, 1, 1], [], []>} : vector<256x1024xbf16>, vector<1024x256xbf16>, vector<256x256xf32> -> vector<256x256xf32>
    %c0_5 = arith.constant 0 : index
    %c0_6 = arith.constant 0 : index
    %10 = vector.load %arg3[%c0_5, %c0_6] : memref<256x1xi32, #tpu.memory_space<vmem>>, vector<256x1xi32>
    %11 = tpu.iota {dimensions = array<i32: 1>} : vector<256x1024xi32>
    %12 = vector.broadcast %10 : vector<256x1xi32> to vector<256x1024xi32>
    %13 = arith.cmpi eq, %11, %12 : vector<256x1024xi32>
    %cst_7 = arith.constant 1.000000e+00 : f32
    %cst_8 = arith.constant 0.000000e+00 : f32
    %14 = vector.broadcast %cst_7 : f32 to vector<256x1024xf32>
    %15 = vector.broadcast %cst_8 : f32 to vector<256x1024xf32>
    %16 = arith.select %13, %14, %15 : vector<256x1024xi1>, vector<256x1024xf32>
    %17 = arith.truncf %16 : vector<256x1024xf32> to vector<256x1024xbf16>
    %c0_9 = arith.constant 0 : index
    %c0_10 = arith.constant 0 : index
    %18 = vector.load %arg4[%c0_9, %c0_10] : memref<1024x256xbf16, #tpu.memory_space<vmem>>, vector<1024x256xbf16>
    %cst_11 = arith.constant dense<0.000000e+00> : vector<256x256xf32>
    %19 = tpu.matmul %17, %18, %cst_11 {dimension_numbers = #tpu.dot_dimension_numbers<[1], [0], [0], [1], [0, 0, 1, 1], [], []>} : vector<256x1024xbf16>, vector<1024x256xbf16>, vector<256x256xf32> -> vector<256x256xf32>
    %c0_12 = arith.constant 0 : index
    %c0_13 = arith.constant 0 : index
    %20 = vector.load %arg2[%c0_12, %c0_13] : memref<256x1xi32, #tpu.memory_space<vmem>>, vector<256x1xi32>
    %21 = tpu.iota {dimensions = array<i32: 1>} : vector<256x128xi32>
    %22 = vector.broadcast %20 : vector<256x1xi32> to vector<256x128xi32>
    %23 = arith.cmpi eq, %21, %22 : vector<256x128xi32>
    %cst_14 = arith.constant 1.000000e+00 : f32
    %cst_15 = arith.constant 0.000000e+00 : f32
    %24 = vector.broadcast %cst_14 : f32 to vector<256x128xf32>
    %25 = vector.broadcast %cst_15 : f32 to vector<256x128xf32>
    %26 = arith.select %23, %24, %25 : vector<256x128xi1>, vector<256x128xf32>
    %27 = arith.truncf %26 : vector<256x128xf32> to vector<256x128xbf16>
    %c0_16 = arith.constant 0 : index
    %c0_17 = arith.constant 0 : index
    %28 = vector.load %arg5[%c0_16, %c0_17] : memref<128x256xbf16, #tpu.memory_space<vmem>>, vector<128x256xbf16>
    %cst_18 = arith.constant dense<0.000000e+00> : vector<256x256xf32>
    %29 = tpu.matmul %27, %28, %cst_18 {dimension_numbers = #tpu.dot_dimension_numbers<[1], [0], [0], [1], [0, 0, 1, 1], [], []>} : vector<256x128xbf16>, vector<128x256xbf16>, vector<256x256xf32> -> vector<256x256xf32>
    %30 = vector.extract_strided_slice %9 {offsets = [0, 0], sizes = [256, 128], strides = [1, 1]} : vector<256x256xf32> to vector<256x128xf32>
    %31 = vector.extract_strided_slice %9 {offsets = [0, 128], sizes = [256, 128], strides = [1, 1]} : vector<256x256xf32> to vector<256x128xf32>
    %32 = vector.extract_strided_slice %19 {offsets = [0, 0], sizes = [256, 128], strides = [1, 1]} : vector<256x256xf32> to vector<256x128xf32>
    %33 = vector.extract_strided_slice %19 {offsets = [0, 128], sizes = [256, 128], strides = [1, 1]} : vector<256x256xf32> to vector<256x128xf32>
    %34 = vector.extract_strided_slice %29 {offsets = [0, 0], sizes = [256, 128], strides = [1, 1]} : vector<256x256xf32> to vector<256x128xf32>
    %35 = vector.extract_strided_slice %29 {offsets = [0, 128], sizes = [256, 128], strides = [1, 1]} : vector<256x256xf32> to vector<256x128xf32>
    %36 = arith.mulf %30, %32 : vector<256x128xf32>
    %37 = arith.mulf %31, %33 : vector<256x128xf32>
    %38 = arith.addf %36, %37 : vector<256x128xf32>
    %39 = arith.mulf %34, %38 : vector<256x128xf32>
    %40 = arith.mulf %30, %33 : vector<256x128xf32>
    %41 = arith.mulf %31, %32 : vector<256x128xf32>
    %42 = arith.subf %40, %41 : vector<256x128xf32>
    %43 = arith.mulf %35, %42 : vector<256x128xf32>
    %44 = arith.addf %39, %43 : vector<256x128xf32>
    %cst_19 = arith.constant dense<0.000000e+00> : vector<256xf32>
    %45 = vector.multi_reduction <add>, %44, %cst_19 [1] : vector<256x128xf32> to vector<256xf32>
    %c0_20 = arith.constant 0 : index
    %c0_21 = arith.constant 0 : index
    %c0_22 = arith.constant 0 : index
    %46 = vector.load %arg6[%c0_20, %c0_21, %c0_22] : memref<1x1x256xf32, #tpu.memory_space<vmem>>, vector<1x1x256xf32>
    %47 = vector.shape_cast %46 : vector<1x1x256xf32> to vector<256xf32>
    %48 = vector.shape_cast %45 : vector<256xf32> to vector<1x1x256xf32>
    tpu.vector_store %arg6[%c0_20, %c0_21, %c0_22], %48 {strides = array<i32>} : memref<1x1x256xf32, #tpu.memory_space<vmem>>, vector<1x1x256xf32>,
    return
  }
  func.func @transform_0(%arg0: i32) -> (i32, i32) {
    %c0_i32 = arith.constant 0 : i32
    %c0_i32_0 = arith.constant 0 : i32
    return %arg0, %c0_i32 : i32, i32
  }
  func.func @transform_1(%arg0: i32) -> (i32, i32) {
    %c0_i32 = arith.constant 0 : i32
    %c0_i32_0 = arith.constant 0 : i32
    return %arg0, %c0_i32 : i32, i32
  }
  func.func @transform_2(%arg0: i32) -> (i32, i32) {
    %c0_i32 = arith.constant 0 : i32
    %c0_i32_0 = arith.constant 0 : i32
    return %arg0, %c0_i32 : i32, i32
  }
  func.func @transform_3(%arg0: i32) -> (i32, i32) {
    %c0_i32 = arith.constant 0 : i32
    %c0_i32_0 = arith.constant 0 : i32
    %c0_i32_1 = arith.constant 0 : i32
    return %c0_i32, %c0_i32_0 : i32, i32
  }
  func.func @transform_4(%arg0: i32) -> (i32, i32) {
    %c0_i32 = arith.constant 0 : i32
    %c0_i32_0 = arith.constant 0 : i32
    %c0_i32_1 = arith.constant 0 : i32
    return %c0_i32, %c0_i32_0 : i32, i32
  }
  func.func @transform_5(%arg0: i32) -> (i32, i32, i32) {
    %c0_i32 = arith.constant 0 : i32
    %c0_i32_0 = arith.constant 0 : i32
    %c0_i32_1 = arith.constant 0 : i32
    return %arg0, %c0_i32, %c0_i32_0 : i32, i32, i32
  }
}

</mosaic_0001>

<bundles_post_ra>
// kernel: tpu_custom_call.1
= control target key start
LH: loop header
LB: loop body
LE: loop exit
PB: predicated region body
PF: predicated region fallthrough
CT: control target
= control target key end

     0   :  { %10 = vsyncpa [#allocation3], 0  ;;  %s13166_s0 = inlined_call_operand.vmem [shape: s32[512,1], index: 0, kind: input, shape index: {}]   ;;  %s13167_s1 = inlined_call_operand.vmem [shape: s32[512,1], index: 1, kind: input, shape index: {}]   ;;  %s13168_s2 = inlined_call_operand.vmem [shape: s32[512,1], index: 2, kind: input, shape index: {}]   ;;  %s13169_s3 = inlined_call_operand.vmem [shape: bf16[1024,256], index: 3, kind: input, shape index: {}]   ;;  %s13170_s4 = inlined_call_operand.vmem [shape: bf16[128,256], index: 4, kind: input, shape index: {}]   ;;  %s13171_s5 = inlined_call_operand.hbm [shape: f32[2,1,256], index: 5, kind: output, shape index: {}]  }
   0x1   :  { %12 = vsyncpa [#allocation3 + $0x1], 0  ;;  %s9482_s18 = smov 0   ;;  %s9484_s19 = smov 0  }
   0x2   :  { %s9486_s20 = smov 0   ;;  %s9488_s21 = smov 0  }
   0x3 LB: > { %s8002_s22 = sadd.s32 4294967295, %s9446_s21   ;;  %s8003_s23 = sadd.s32 4294967294, %s9446_s21   ;;  %s9446_s21 = sphi %s9488_s21, %s13608_s21   ;;  %s9442_s20 = sphi %s9486_s20, %s13607_s20   ;;  %s9438_s19 = sphi %s9484_s19, %s13606_s19   ;;  %s9434_s18 = sphi %s9482_s18, %s13605_s18  }
   0x4   : > { %s9505_s24 = sadd.s32 1, %s9446_s21   ;;  %s145_s25 = sadd.s32 1, %s9442_s20 }
   0x5   : > { %s142_s26 = ssub.s32 %s9446_s21, %s9505_s24  ;;  %p155_p0 = scmp.ne.s32.totalorder %s9442_s20, %s9438_s19 }
   0x6   : > { %p143_p1 = scmp.eq.s32.totalorder %s142_s26, 0  ;;  %p156_p2 = scmp.eq.s32.totalorder %s8002_s22, 1 }
   0x7   : > { %p161_p3 = scmp.ne.s32.totalorder %s9438_s19, %s9434_s18  ;;  %p162_p4 = scmp.eq.s32.totalorder %s8003_s23, 1 }
   0x8   : > { %s9515_s27 = scalar_select %p143_p1, %s9442_s20, %s145_s25  }
   0x9   : > { %p9517_p5 = por %p156_p2, %p155_p0  ;;  %p9521_p6 = por %p162_p4, %p161_p3 }
   0xa   : > { %p8006_p7 = scmp.ge.s32.totalorder %s9446_s21, 1  ;;  %p213_p8 = scmp.lt.s32.totalorder %s9446_s21, 3 }
   0xc   : > { %p214_p9 = pnand %p8006_p7, %p213_p8 }
   0xe   : > { %217 = sbr.rel (%p214_p9) target bundleno = 1303 (0x517), region = 40 }
  0x15   : > { %s9527_s30 = sshll.u32 %s8002_s22, 5  ;;  %v9532_v0 = vld [vmem:[%s13169_s3 + $0x4] ss:$8 sps:$4 sm:$0xff]   ;;  %v13174_v1 = vmov 0   ;;  %v9540_v2 = vld [vmem:[%s13169_s3] ss:$8 sps:$4 sm:$0xff]  }
  0x16   : > { %9167 = vset.pattern.permute.xlu1 %v13174_v1  ;;  %9166 = vset.pattern.permute.xlu0 %v13174_v1  ;;  %p252_p10 = scmp.lt.s32.totalorder %s9527_s30, 63  ;;  %v9547_v3 = vld [vmem:[%s13169_s3 + $0x14] ss:$8 sps:$4 sm:$0xff]   ;;  %v9555_v4 = vld [vmem:[%s13169_s3 + $0x10] ss:$8 sps:$4 sm:$0xff]   ;;  %s248_s10 = sand.u32 1, %s9438_s19  }
  0x17   : > { %8708 = vmatprep.subr.bf16.mxu1 %v9532_v0  ;;  %1815 = vmatprep.subr.bf16.mxu0 %v9532_v0  ;;  %v9564_v5 = vld [vmem:[%s13169_s3 + $0x24] ss:$8 sps:$4 sm:$0xff]   ;;  %v9579_v8 = vld [vmem:[%s13169_s3 + $0x20] ss:$8 sps:$4 sm:$0xff]   ;;  %v9588_v11 = vld [vmem:[%s13169_s3 + $0x34] ss:$8 sps:$4 sm:$0xff]   ;;  %s13122_s17 = scalar_lea.hbm %s13171_s5, %s9527_s30 }
  0x18   : > { %s253_s12 = scalar_select %p252_p10, %s9527_s30, 63  ;;  %8724 = vmatpush1.bf16.msra.mxu1 %v9540_v2  ;;  %1816 = vmatpush1.bf16.msra.mxu0 %v9540_v2  ;;  %v9595_v12 = vld [vmem:[%s13169_s3 + $0x30] ss:$8 sps:$4 sm:$0xff]   ;;  %v9604_v15 = vld [vmem:[%s13169_s3 + $0x44] ss:$8 sps:$4 sm:$0xff]  }
  0x19   : > { %8709 = vmatprep.subr.bf16.mxu1 %v9547_v3  ;;  %1817 = vmatprep.subr.bf16.mxu0 %v9547_v3  ;;  %v9611_v16 = vld [vmem:[%s13169_s3 + $0x40] ss:$8 sps:$4 sm:$0xff]   ;;  %v9624_v21 = vld [vmem:[%s13169_s3 + $0x54] ss:$8 sps:$4 sm:$0xff]   ;;  %v9629_v22 = vld [vmem:[%s13169_s3 + $0x50] ss:$8 sps:$4 sm:$0xff]  }
  0x1a   : > { %s9559_s15 = sshll.u32 %s253_s12, 3  ;;  %v9634_v23 = vld [vmem:[%s13169_s3 + $0x64] ss:$8 sps:$4 sm:$0xff]   ;;  %v9645_v26 = vld [vmem:[%s13169_s3 + $0x60] ss:$8 sps:$4 sm:$0xff]   ;;  %s8007_s11 = sshll.u32 %s248_s10, 1 }
  0x1b   : > { %s9570_s25 = scalar_lea.vmem %s13166_s0, %s9559_s15  ;;  %v9652_v27 = vld [vmem:[%s13169_s3 + $0x74] ss:$8 sps:$4 sm:$0xff]   ;;  %v9661_v30 = vld [vmem:[%s13169_s3 + $0x70] ss:$8 sps:$4 sm:$0xff]   ;;  %v9668_v31 = vld [vmem:[%s13169_s3 + $0x84] ss:$8 sps:$4 sm:$0xff]   ;;  %s9804_s7 = scalar_lea.vmem %s13168_s2, %s9559_s15 }
  0x1c   : > { %v286_v6 = vld [vmem:[%s9570_s25 + $0x80] sm:$0xff]  ;;  %8725 = vmatpush1.bf16.msra.mxu1 %v9555_v4  ;;  %1818 = vmatpush1.bf16.msra.mxu0 %v9555_v4  ;;  %v287_v9 = vld [vmem:[%s9570_s25 + $0x88] sm:$0xff]  ;;  %v288_v13 = vld [vmem:[%s9570_s25 + $0x90] sm:$0xff]  ;;  %s9846_s9 = scalar_lea.vmem %s13167_s1, %s9559_s15  ;;  %s250_s12 = scalar_lea.vmem [#allocation2], %s8007_s11 }
  0x1d   : > { %v270_v7 = vld [vmem:[%s9570_s25] sm:$0xff]  ;;  %360 = vperm.xlu0 %9166, %v286_v6   ;;  %v271_v10 = vld [vmem:[%s9570_s25 + $0x8] sm:$0xff]  ;;  %8710 = vmatprep.subr.bf16.mxu1 %v9564_v5  ;;  %v289_v14 = vld [vmem:[%s9570_s25 + $0x98] sm:$0xff]  ;;  %s7920_s13 = sshll.u32 %s250_s12, 4  ;;  %s7906_s22 = scalar_lea.sflag [#allocation3], %s248_s10  ;;  %s13124_s13 = int_to_ptr.vmem [resolvable:$true] %s7920_s13 }
  0x1e   : > { %312 = vperm.xlu1 %9167, %v270_v7   ;;  %1819 = vmatprep.subr.bf16.mxu0 %v9564_v5  ;;  %v272_v17 = vld [vmem:[%s9570_s25 + $0x10] sm:$0xff]  ;;  %v273_v18 = vld [vmem:[%s9570_s25 + $0x18] sm:$0xff]  ;;  %v290_v19 = vld [vmem:[%s9570_s25 + $0xa0] sm:$0xff]  ;;  %s9451_s23 = smov [#allocation2]  }
  0x1f   : > { %v291_v20 = vld [vmem:[%s9570_s25 + $0xa8] sm:$0xff]  ;;  %v274_v24 = vld [vmem:[%s9570_s25 + $0x20] sm:$0xff]  ;;  %v292_v28 = vld [vmem:[%s9570_s25 + $0xb0] sm:$0xff]  ;;  %s9388_s26 = sshll.u32 %s9451_s23, 4  ;;  %s9389_s26 = int_to_ptr.vmem [resolvable:$false] %s9388_s26 }
  0x20   : > { %8726 = vmatpush1.bf16.msra.mxu1 %v9579_v8  ;;  %1820 = vmatpush1.bf16.msra.mxu0 %v9579_v8  ;;  %v275_v25 = vld [vmem:[%s9570_s25 + $0x28] sm:$0xff]  ;;  %v293_v29 = vld [vmem:[%s9570_s25 + $0xb8] sm:$0xff]  ;;  %v276_v32 = vld [vmem:[%s9570_s25 + $0x30] sm:$0xff]  ;;  %s9390_s6 = scalar_lea.vmem %s9389_s26, 64  ;;  %p9391_p0 = scmp.lt.s32.totalorder %s13124_s13, %s9389_s26 }
  0x21   : > { %363 = vperm.xlu0 %9166, %v287_v9   ;;  %8711 = vmatprep.subr.bf16.mxu1 %v9588_v11  ;;  %v277_v33 = vld [vmem:[%s9570_s25 + $0x38] sm:$0xff]  ;;  %v9677_v34 = vld [vmem:[%s13169_s3 + $0x80] ss:$8 sps:$4 sm:$0xff]   ;;  %v9700_v39 = vld [vmem:[%s13169_s3 + $0xa4] ss:$8 sps:$4 sm:$0xff]  }
  0x22   : > { %315 = vperm.xlu1 %9167, %v271_v10   ;;  %1821 = vmatprep.subr.bf16.mxu0 %v9588_v11  ;;  %v9684_v35 = vld [vmem:[%s13169_s3 + $0x94] ss:$8 sps:$4 sm:$0xff]   ;;  %v294_v36 = vld [vmem:[%s9570_s25 + $0xc0] sm:$0xff]  ;;  %v295_v37 = vld [vmem:[%s9570_s25 + $0xc8] sm:$0xff] }
  0x23   : > { %v9693_v38 = vld [vmem:[%s13169_s3 + $0x90] ss:$8 sps:$4 sm:$0xff]   ;;  %v278_v40 = vld [vmem:[%s9570_s25 + $0x40] sm:$0xff]  ;;  %v279_v41 = vld [vmem:[%s9570_s25 + $0x48] sm:$0xff] }
  0x24   : > { %8727 = vmatpush1.bf16.msra.mxu1 %v9595_v12  ;;  %1822 = vmatpush1.bf16.msra.mxu0 %v9595_v12  ;;  %v9709_v42 = vld [vmem:[%s13169_s3 + $0xa0] ss:$8 sps:$4 sm:$0xff]   ;;  %v9716_v43 = vld [vmem:[%s13169_s3 + $0xb4] ss:$8 sps:$4 sm:$0xff]   ;;  %v9725_v46 = vld [vmem:[%s13169_s3 + $0xb0] ss:$8 sps:$4 sm:$0xff]  }
  0x25   : > { %366 = vperm.xlu0 %9166, %v288_v13   ;;  %8712 = vmatprep.subr.bf16.mxu1 %v9604_v15  ;;  %v296_v44 = vld [vmem:[%s9570_s25 + $0xd0] sm:$0xff]  ;;  %v297_v45 = vld [vmem:[%s9570_s25 + $0xd8] sm:$0xff]  ;;  %v9732_v47 = vld [vmem:[%s13169_s3 + $0xc4] ss:$8 sps:$4 sm:$0xff]  }
  0x26   : > { %369 = vperm.xlu1 %9167, %v289_v14   ;;  %1823 = vmatprep.subr.bf16.mxu0 %v9604_v15  ;;  %v280_v48 = vld [vmem:[%s9570_s25 + $0x50] sm:$0xff]  ;;  %v281_v49 = vld [vmem:[%s9570_s25 + $0x58] sm:$0xff]  ;;  %v9741_v50 = vld [vmem:[%s13169_s3 + $0xc0] ss:$8 sps:$4 sm:$0xff]  }
  0x27   : > { %v9748_v51 = vld [vmem:[%s13169_s3 + $0xd4] ss:$8 sps:$4 sm:$0xff]   ;;  %v298_v52 = vld [vmem:[%s9570_s25 + $0xe0] sm:$0xff]  ;;  %v299_v53 = vld [vmem:[%s9570_s25 + $0xe8] sm:$0xff] }
  0x28   : > { %8728 = vmatpush1.bf16.msra.mxu1 %v9611_v16  ;;  %1824 = vmatpush1.bf16.msra.mxu0 %v9611_v16  ;;  %v9757_v54 = vld [vmem:[%s13169_s3 + $0xd0] ss:$8 sps:$4 sm:$0xff]   ;;  %v9764_v55 = vld [vmem:[%s13169_s3 + $0xe4] ss:$8 sps:$4 sm:$0xff]   ;;  %v9773_v58 = vld [vmem:[%s13169_s3 + $0xe0] ss:$8 sps:$4 sm:$0xff]  }
  0x29   : > { %318 = vperm.xlu0 %9166, %v272_v17   ;;  %8713 = vmatprep.subr.bf16.mxu1 %v9624_v21  ;;  %v282_v56 = vld [vmem:[%s9570_s25 + $0x60] sm:$0xff]  ;;  %v283_v57 = vld [vmem:[%s9570_s25 + $0x68] sm:$0xff]  ;;  %v9780_v59 = vld [vmem:[%s13169_s3 + $0xf4] ss:$8 sps:$4 sm:$0xff]  }
  0x2a   : > { %321 = vperm.xlu1 %9167, %v273_v18   ;;  %1825 = vmatprep.subr.bf16.mxu0 %v9624_v21  ;;  %v300_v60 = vld [vmem:[%s9570_s25 + $0xf0] sm:$0xff]  ;;  %v301_v61 = vld [vmem:[%s9570_s25 + $0xf8] sm:$0xff]  ;;  %v9796_v63 = vld [vmem:[%s13169_s3 + $0x104] ss:$8 sps:$4 sm:$0xff]  }
  0x2b   : > { %v9789_v62 = vld [vmem:[%s13169_s3 + $0xf0] ss:$8 sps:$4 sm:$0xff]   ;;  %v2587_v9 = vld [vmem:[%s9804_s7] sm:$0xff]  ;;  %v2588_v10 = vld [vmem:[%s9804_s7 + $0x8] sm:$0xff] }
  0x2c   : > { %8729 = vmatpush1.bf16.msra.mxu1 %v9629_v22  ;;  %1826 = vmatpush1.bf16.msra.mxu0 %v9629_v22  ;;  %v284_v6 = vld [vmem:[%s9570_s25 + $0x70] sm:$0xff]  ;;  %v285_v7 = vld [vmem:[%s9570_s25 + $0x78] sm:$0xff]  ;;  %v2591_v17 = vld [vmem:[%s9804_s7 + $0x20] sm:$0xff] }
  0x2d   : > { %372 = vperm.xlu0 %9166, %v290_v19   ;;  %8714 = vmatprep.subr.bf16.mxu1 %v9634_v23  ;;  %v2589_v13 = vld [vmem:[%s9804_s7 + $0x10] sm:$0xff]  ;;  %v2590_v14 = vld [vmem:[%s9804_s7 + $0x18] sm:$0xff] }
  0x2e   : > { %375 = vperm.xlu1 %9167, %v291_v20   ;;  %1827 = vmatprep.subr.bf16.mxu0 %v9634_v23  ;;  %v2593_v18 = vld [vmem:[%s9804_s7 + $0x30] sm:$0xff]  ;;  %v2594_v19 = vld [vmem:[%s9804_s7 + $0x38] sm:$0xff]  ;;  %v2595_v20 = vld [vmem:[%s9804_s7 + $0x40] sm:$0xff] }
  0x2f   : > { %v4149_v1 = vld [vmem:[%s9846_s9 + $0xb0] sm:$0xff] }
  0x30   : > { %8730 = vmatpush1.bf16.msra.mxu1 %v9645_v26  ;;  %1828 = vmatpush1.bf16.msra.mxu0 %v9645_v26 }
  0x31   : > { %324 = vperm.xlu0 %9166, %v274_v24   ;;  %8715 = vmatprep.subr.bf16.mxu1 %v9652_v27  ;;  %v2596_v24 = vld [vmem:[%s9804_s7 + $0x48] sm:$0xff] }
  0x32   : > { %327 = vperm.xlu1 %9167, %v275_v25   ;;  %1829 = vmatprep.subr.bf16.mxu0 %v9652_v27  ;;  %v2597_v25 = vld [vmem:[%s9804_s7 + $0x50] sm:$0xff] }
  0x34   : > { %8731 = vmatpush1.bf16.msra.mxu1 %v9661_v30  ;;  %1830 = vmatpush1.bf16.msra.mxu0 %v9661_v30 }
  0x35   : > { %378 = vperm.xlu0 %9166, %v292_v28   ;;  %8716 = vmatprep.subr.bf16.mxu1 %v9668_v31  ;;  %v2598_v28 = vld [vmem:[%s9804_s7 + $0x58] sm:$0xff] }
  0x36   : > { %381 = vperm.xlu1 %9167, %v293_v29   ;;  %1831 = vmatprep.subr.bf16.mxu0 %v9668_v31  ;;  %v2599_v29 = vld [vmem:[%s9804_s7 + $0x60] sm:$0xff] }
  0x38   : > { %8732 = vmatpush1.bf16.msra.mxu1 %v9677_v34  ;;  %1832 = vmatpush1.bf16.msra.mxu0 %v9677_v34 }
  0x39   : > { %330 = vperm.xlu0 %9166, %v276_v32   ;;  %8717 = vmatprep.subr.bf16.mxu1 %v9684_v35  ;;  %v2600_v32 = vld [vmem:[%s9804_s7 + $0x68] sm:$0xff] }
  0x3a   : > { %333 = vperm.xlu1 %9167, %v277_v33   ;;  %1833 = vmatprep.subr.bf16.mxu0 %v9684_v35  ;;  %v2601_v33 = vld [vmem:[%s9804_s7 + $0x70] sm:$0xff] }
  0x3c   : > { %8733 = vmatpush1.bf16.msra.mxu1 %v9693_v38  ;;  %1834 = vmatpush1.bf16.msra.mxu0 %v9693_v38 }
  0x3d   : > { %384 = vperm.xlu0 %9166, %v294_v36   ;;  %8718 = vmatprep.subr.bf16.mxu1 %v9700_v39  ;;  %v2602_v36 = vld [vmem:[%s9804_s7 + $0x78] sm:$0xff] }
  0x3e   : > { %387 = vperm.xlu1 %9167, %v295_v37   ;;  %1835 = vmatprep.subr.bf16.mxu0 %v9700_v39  ;;  %v2603_v37 = vld [vmem:[%s9804_s7 + $0x80] sm:$0xff] }
  0x40   : > { %8734 = vmatpush1.bf16.msra.mxu1 %v9709_v42  ;;  %1836 = vmatpush1.bf16.msra.mxu0 %v9709_v42 }
  0x41   : > { %336 = vperm.xlu0 %9166, %v278_v40   ;;  %8719 = vmatprep.subr.bf16.mxu1 %v9716_v43  ;;  %v2604_v40 = vld [vmem:[%s9804_s7 + $0x88] sm:$0xff] }
  0x42   : > { %339 = vperm.xlu1 %9167, %v279_v41   ;;  %1837 = vmatprep.subr.bf16.mxu0 %v9716_v43  ;;  %v2605_v41 = vld [vmem:[%s9804_s7 + $0x90] sm:$0xff] }
  0x44   : > { %8735 = vmatpush1.bf16.msra.mxu1 %v9725_v46  ;;  %1838 = vmatpush1.bf16.msra.mxu0 %v9725_v46 }
  0x45   : > { %390 = vperm.xlu0 %9166, %v296_v44   ;;  %8720 = vmatprep.subr.bf16.mxu1 %v9732_v47  ;;  %v2606_v44 = vld [vmem:[%s9804_s7 + $0x98] sm:$0xff] }
  0x46   : > { %393 = vperm.xlu1 %9167, %v297_v45   ;;  %1839 = vmatprep.subr.bf16.mxu0 %v9732_v47  ;;  %v2607_v45 = vld [vmem:[%s9804_s7 + $0xa0] sm:$0xff] }
  0x48   : > { %8736 = vmatpush1.bf16.msra.mxu1 %v9741_v50  ;;  %1840 = vmatpush1.bf16.msra.mxu0 %v9741_v50 }
  0x49   : > { %342 = vperm.xlu0 %9166, %v280_v48   ;;  %8721 = vmatprep.subr.bf16.mxu1 %v9748_v51  ;;  %v2608_v48 = vld [vmem:[%s9804_s7 + $0xa8] sm:$0xff] }
  0x4a   : > { %345 = vperm.xlu1 %9167, %v281_v49   ;;  %1841 = vmatprep.subr.bf16.mxu0 %v9748_v51  ;;  %v2609_v49 = vld [vmem:[%s9804_s7 + $0xb0] sm:$0xff] }
  0x4c   : > { %8737 = vmatpush1.bf16.msra.mxu1 %v9757_v54  ;;  %1842 = vmatpush1.bf16.msra.mxu0 %v9757_v54 }
  0x4d   : > { %396 = vperm.xlu0 %9166, %v298_v52   ;;  %8722 = vmatprep.subr.bf16.mxu1 %v9764_v55  ;;  %v2610_v52 = vld [vmem:[%s9804_s7 + $0xb8] sm:$0xff] }
  0x4e   : > { %399 = vperm.xlu1 %9167, %v299_v53   ;;  %1843 = vmatprep.subr.bf16.mxu0 %v9764_v55  ;;  %v2611_v53 = vld [vmem:[%s9804_s7 + $0xc0] sm:$0xff] }
  0x50   : > { %8738 = vmatpush1.bf16.msra.mxu1 %v9773_v58  ;;  %1844 = vmatpush1.bf16.msra.mxu0 %v9773_v58 }
  0x51   : > { %348 = vperm.xlu0 %9166, %v282_v56   ;;  %8723 = vmatprep.subr.bf16.mxu1 %v9780_v59  ;;  %v2612_v56 = vld [vmem:[%s9804_s7 + $0xc8] sm:$0xff] }
  0x52   : > { %351 = vperm.xlu1 %9167, %v283_v57   ;;  %1845 = vmatprep.subr.bf16.mxu0 %v9780_v59  ;;  %v2613_v57 = vld [vmem:[%s9804_s7 + $0xd0] sm:$0xff] }
  0x54   : > { %8739 = vmatpush1.bf16.msra.mxu1 %v9789_v62  ;;  %1846 = vmatpush1.bf16.msra.mxu0 %v9789_v62 }
  0x55   : > { %402 = vperm.xlu0 %9166, %v300_v60   ;;  %3355 = vmatprep.subr.bf16.mxu1 %v9532_v0  ;;  %v2592_v0 = vld [vmem:[%s9804_s7 + $0x28] sm:$0xff]  ;;  %v2614_v60 = vld [vmem:[%s9804_s7 + $0xd8] sm:$0xff] }
  0x56   : > { %405 = vperm.xlu1 %9167, %v301_v61   ;;  %2008 = vmatprep.subr.bf16.mxu0 %v9796_v63  ;;  %v2615_v61 = vld [vmem:[%s9804_s7 + $0xe0] sm:$0xff] }
  0x59   : > { %354 = vperm.xlu0 %9166, %v284_v6   ;;  %v2616_v6 = vld [vmem:[%s9804_s7 + $0xe8] sm:$0xff] }
  0x5a   : > { %357 = vperm.xlu1 %9167, %v285_v7   ;;  %v13172_v7 = vlaneseq }
  0x5d   : > { %2620 = vperm.xlu0 %9166, %v2587_v9   ;;  %v2617_v9 = vld [vmem:[%s9804_s7 + $0xf0] sm:$0xff] }
  0x5e   : > { %2623 = vperm.xlu1 %9167, %v2588_v10   ;;  %v2618_v10 = vld [vmem:[%s9804_s7 + $0xf8] sm:$0xff] }
  0x61   : > { %2626 = vperm.xlu0 %9166, %v2589_v13   ;;  %v9849_v13 = vand.u32 127, %v13172_v7 }
  0x62   : > { %2629 = vperm.xlu1 %9167, %v2590_v14   ;;  %v4127_v14 = vld [vmem:[%s9846_s9] sm:$0xff] }
  0x63   : > { %13330 = vst [vmem:[#allocation5_spill] sm:$0xff] %v9849_v13 }
  0x65   : > { %2632 = vperm.xlu0 %9166, %v2591_v17   ;;  %v4128_v17 = vld [vmem:[%s9846_s9 + $0x8] sm:$0xff] }
  0x66   : > { %2635 = vperm.xlu1 %9167, %v2592_v0  }
  0x69   : > { %2638 = vperm.xlu0 %9166, %v2593_v18  }
  0x6a   : > { %2641 = vperm.xlu1 %9167, %v2594_v19   ;;  %v9858_v19 = vadd.s32 128, %v9849_v13 }
  0x6d   : > { %2644 = vperm.xlu0 %9166, %v2595_v20   ;;  %v4129_v20 = vld [vmem:[%s9846_s9 + $0x10] sm:$0xff] }
  0x6e   : > { %2647 = vperm.xlu1 %9167, %v2596_v24   ;;  %v4130_v24 = vld [vmem:[%s9846_s9 + $0x18] sm:$0xff] }
  0x71   : > { %2650 = vperm.xlu0 %9166, %v2597_v25  }
  0x72   : > { %2653 = vperm.xlu1 %9167, %v2598_v28  }
  0x75   : > { %2656 = vperm.xlu0 %9166, %v2599_v29   ;;  %v4131_v29 = vld [vmem:[%s9846_s9 + $0x20] sm:$0xff] }
  0x76   : > { %2659 = vperm.xlu1 %9167, %v2600_v32   ;;  %v13176_v32 = vmov 1.0|1.0  }
  0x79   : > { %2662 = vperm.xlu0 %9166, %v2601_v33   ;;  %v9887_v33 = vld [vmem:[%s13169_s3 + $0x100] ss:$8 sps:$4 sm:$0xff]  }
  0x7a   : > { %2665 = vperm.xlu1 %9167, %v2602_v36  }
  0x7d   : > { %2668 = vperm.xlu0 %9166, %v2603_v37  }
  0x7e   : > { %2671 = vperm.xlu1 %9167, %v2604_v40   ;;  %v4132_v40 = vld [vmem:[%s9846_s9 + $0x28] sm:$0xff] }
  0x81   : > { %2674 = vperm.xlu0 %9166, %v2605_v41   ;;  %v9903_v41 = vld [vmem:[%s13169_s3 + $0x114] ss:$8 sps:$4 sm:$0xff]  }
  0x82   : > { %2677 = vperm.xlu1 %9167, %v2606_v44   ;;  %v4133_v44 = vld [vmem:[%s9846_s9 + $0x30] sm:$0xff] }
  0x85   : > { %2680 = vperm.xlu0 %9166, %v2607_v45   ;;  %v9912_v45 = vld [vmem:[%s13169_s3 + $0x110] ss:$8 sps:$4 sm:$0xff]  }
  0x86   : > { %2683 = vperm.xlu1 %9167, %v2608_v48  }
  0x89   : > { %2686 = vperm.xlu0 %9166, %v2609_v49  }
  0x8a   : > { %2689 = vperm.xlu1 %9167, %v2610_v52   ;;  %v9944_v52 = vld [vmem:[%s13169_s3 + $0x120] ss:$8 sps:$4 sm:$0xff]  }
  0x8d   : > { %2692 = vperm.xlu0 %9166, %v2611_v53  }
  0x8e   : > { %2695 = vperm.xlu1 %9167, %v2612_v56   ;;  %v4135_v56 = vld [vmem:[%s9846_s9 + $0x40] sm:$0xff] }
  0x91   : > { %2698 = vperm.xlu0 %9166, %v2613_v57   ;;  %v4136_v57 = vld [vmem:[%s9846_s9 + $0x48] sm:$0xff] }
  0x92   : > { %2701 = vperm.xlu1 %9167, %v2614_v60  }
  0x95   : > { %2704 = vperm.xlu0 %9166, %v2615_v61   ;;  %v9980_v61 = vld [vmem:[%s13169_s3 + $0x130] ss:$8 sps:$4 sm:$0xff]  }
  0x96   : > { %2707 = vperm.xlu1 %9167, %v2616_v6  }
  0x99   : > { %2710 = vperm.xlu0 %9166, %v2617_v9   ;;  %v4137_v9 = vld [vmem:[%s9846_s9 + $0x50] sm:$0xff] }
  0x9a   : > { %2713 = vperm.xlu1 %9167, %v2618_v10  }
  0x9c   : > { %v9853_v0 = vpop.permute.xlu0 %360 }
  0x9d   : > { %13331 = vst [vmem:[#allocation6_spill] sm:$0xff] %v9853_v0  ;;  %v9855_v18 = vpop.permute.xlu1 %312  ;;  %4160 = vperm.xlu0 %9166, %v4127_v14   ;;  %vm536_vm5 = vcmp.eq.s32.totalorder %v9858_v19, %v9853_v0  ;;  %vm535_vm9 = vcmp.eq.s32.totalorder %v9849_v13, %v9853_v0 }
  0x9e   : > { %13332 = vst [vmem:[#allocation7_spill] sm:$0xff] %v9855_v18  ;;  %4163 = vperm.xlu1 %9167, %v4128_v17   ;;  %vm408_vm0 = vcmp.eq.s32.totalorder %v9858_v19, %v9855_v18  ;;  %vm407_vm6 = vcmp.eq.s32.totalorder %v9849_v13, %v9855_v18  ;;  %v4139_v17 = vld [vmem:[%s9846_s9 + $0x60] sm:$0xff] }
  0xa0   : > { %v9864_v25 = vpop.permute.xlu0 %363 }
  0xa1   : > { %v9866_v28 = vpop.permute.xlu1 %315  ;;  %4166 = vperm.xlu0 %9166, %v4129_v20   ;;  %vm544_vm2 = vcmp.eq.s32.totalorder %v9858_v19, %v9864_v25  ;;  %vm543_vm3 = vcmp.eq.s32.totalorder %v9849_v13, %v9864_v25  ;;  %v4140_v20 = vld [vmem:[%s9846_s9 + $0x68] sm:$0xff] }
  0xa2   : > { %13333 = vst [vmem:[#allocation8_spill] sm:$0xff] %v9866_v28  ;;  %4169 = vperm.xlu1 %9167, %v4130_v24   ;;  %vm416_vm1 = vcmp.eq.s32.totalorder %v9858_v19, %v9866_v28  ;;  %vm415_vm7 = vcmp.eq.s32.totalorder %v9849_v13, %v9866_v28  ;;  %vm8174_vm8 = vmpackc.low %vm544_vm2, %vm536_vm5 }
  0xa3   : > { %vm8142_vm4 = vmpackc.low %vm416_vm1, %vm408_vm0  ;;  %8175 = vmatprep.mubr.msk.bf16.mxu1 %vm8174_vm8, %v13176_v32 }
  0xa4   : > { %8143 = vmatprep.mubr.msk.bf16.mxu0 %vm8142_vm4, %v13176_v32  ;;  %vm8176_vm10 = vmpackc.low %vm543_vm3, %vm535_vm9  ;;  %v9890_v36 = vpop.permute.xlu0 %366 }
  0xa5   : > { %13334 = vst [vmem:[#allocation9_spill] sm:$0xff] %v9890_v36  ;;  %v9892_v37 = vpop.permute.xlu1 %369  ;;  %8177 = vmatmul.mubr.msk.bf16.vlgmr.msra.gmra.mrb[0].mxu1 %vm8176_vm10, %v13176_v32  ;;  %vm8144_vm11 = vmpackc.low %vm415_vm7, %vm407_vm6  ;;  %4172 = vperm.xlu0 %9166, %v4131_v29   ;;  %vm552_vm12 = vcmp.eq.s32.totalorder %v9858_v19, %v9890_v36  ;;  %vm551_vm15 = vcmp.eq.s32.totalorder %v9849_v13, %v9890_v36 }
  0xa6   : > { %13335 = vst [vmem:[#allocation10_spill] sm:$0xff] %v9892_v37  ;;  %vm560_vm13 = vcmp.eq.s32.totalorder %v9858_v19, %v9892_v37  ;;  %3356 = vmatpush1.bf16.msra.mxu1 %v9540_v2  ;;  %8145 = vmatmul.mubr.msk.bf16.vlgmr.msra.gmra.mrb[0].mxu0 %vm8144_vm11, %v13176_v32  ;;  %v4134_v2 = vld [vmem:[%s9846_s9 + $0x38] sm:$0xff]  ;;  %vm559_vm0 = vcmp.eq.s32.totalorder %v9849_v13, %v9892_v37 }
  0xa7   : > { %vm8178_vm14 = vmpackc.low %vm560_vm13, %vm552_vm12  ;;  %4175 = vperm.xlu1 %9167, %v4132_v40   ;;  %2009 = vmatpush1.bf16.msra.mxu0 %v9887_v33  ;;  %v4141_v40 = vld [vmem:[%s9846_s9 + $0x70] sm:$0xff] }
  0xa8   : > { %8179 = vmatprep.mubr.msk.bf16.mxu1 %vm8178_vm14, %v13176_v32  ;;  %3357 = vmatprep.subr.bf16.mxu1 %v9547_v3  ;;  %v9916_v48 = vpop.permute.xlu0 %318  ;;  %v9935_v3 = vld [vmem:[%s13169_s3 + $0x124] ss:$8 sps:$4 sm:$0xff]   ;;  %vm8180_vm7 = vmpackc.low %vm559_vm0, %vm551_vm15 }
  0xa9   : > { %v9918_v49 = vpop.permute.xlu1 %321  ;;  %2010 = vmatprep.subr.bf16.mxu0 %v9903_v41  ;;  %4178 = vperm.xlu0 %9166, %v4133_v44   ;;  %vm424_vm1 = vcmp.eq.s32.totalorder %v9858_v19, %v9916_v48  ;;  %vm423_vm3 = vcmp.eq.s32.totalorder %v9849_v13, %v9916_v48  ;;  %v4142_v44 = vld [vmem:[%s9846_s9 + $0x78] sm:$0xff] }
  0xaa   : > { %vm432_vm2 = vcmp.eq.s32.totalorder %v9858_v19, %v9918_v49  ;;  %3358 = vmatpush1.bf16.msra.mxu1 %v9555_v4  ;;  %vm431_vm5 = vcmp.eq.s32.totalorder %v9849_v13, %v9918_v49 }
  0xab   : > { %vm8146_vm4 = vmpackc.low %vm432_vm2, %vm424_vm1  ;;  %4181 = vperm.xlu1 %9167, %v4134_v2   ;;  %2011 = vmatpush1.bf16.msra.mxu0 %v9912_v45  ;;  %v10085_v2 = vld [vmem:[%s13169_s3 + $0x160] ss:$8 sps:$4 sm:$0xff]  }
  0xac   : > { %vm8148_vm6 = vmpackc.low %vm431_vm5, %vm423_vm3  ;;  %8147 = vmatprep.mubr.msk.bf16.mxu0 %vm8146_vm4, %v13176_v32  ;;  %3359 = vmatprep.subr.bf16.mxu1 %v9564_v5  ;;  %v9948_v53 = vpop.permute.xlu0 %372  ;;  %v9969_v5 = vld [vmem:[%s13169_s3 + $0x134] ss:$8 sps:$4 sm:$0xff]  }
  0xad   : > { %13336 = vst [vmem:[#allocation11_spill] sm:$0xff] %v9948_v53  ;;  %v9956_v4 = vpop.permute.xlu1 %375  ;;  %8181 = vmatmul.mubr.msk.bf16.gmra.mrb[4].mxu1 %vm8180_vm7, %v13176_v32  ;;  %2012 = vmatprep.subr.bf16.mxu0 %v9935_v3  ;;  %vm568_vm8 = vcmp.eq.s32.totalorder %v9858_v19, %v9948_v53  ;;  %vm567_vm11 = vcmp.eq.s32.totalorder %v9849_v13, %v9948_v53 }
  0xae   : > { %13337 = vst [vmem:[#allocation12_spill] sm:$0xff] %v9956_v4  ;;  %vm576_vm9 = vcmp.eq.s32.totalorder %v9858_v19, %v9956_v4  ;;  %3360 = vmatpush1.bf16.msra.mxu1 %v9579_v8  ;;  %8149 = vmatmul.mubr.msk.bf16.gmra.mrb[4].mxu0 %vm8148_vm6, %v13176_v32  ;;  %v4138_v8 = vld [vmem:[%s9846_s9 + $0x58] sm:$0xff]  ;;  %vm575_vm12 = vcmp.eq.s32.totalorder %v9849_v13, %v9956_v4 }
  0xaf   : > { %vm8182_vm10 = vmpackc.low %vm576_vm9, %vm568_vm8  ;;  %4184 = vperm.xlu0 %9166, %v4135_v56   ;;  %4187 = vperm.xlu1 %9167, %v4136_v57   ;;  %v4143_v57 = vld [vmem:[%s9846_s9 + $0x80] sm:$0xff] }
  0xb0   : > { %2013 = vmatpush1.bf16.msra.mxu0 %v9944_v52  ;;  %8183 = vmatprep.mubr.msk.bf16.mxu1 %vm8182_vm10, %v13176_v32  ;;  %v9975_v60 = vpop.permute.xlu0 %324  ;;  %vm8184_vm3 = vmpackc.low %vm575_vm12, %vm567_vm11 }
  0xb1   : > { %v9982_v6 = vpop.permute.xlu1 %327  ;;  %3361 = vmatprep.subr.bf16.mxu1 %v9588_v11  ;;  %2014 = vmatprep.subr.bf16.mxu0 %v9969_v5  ;;  %vm440_vm13 = vcmp.eq.s32.totalorder %v9858_v19, %v9975_v60  ;;  %vm439_vm15 = vcmp.eq.s32.totalorder %v9849_v13, %v9975_v60  ;;  %v10004_v11 = vld [vmem:[%s13169_s3 + $0x144] ss:$8 sps:$4 sm:$0xff]  }
  0xb2   : > { %vm448_vm14 = vcmp.eq.s32.totalorder %v9858_v19, %v9982_v6  ;;  %3362 = vmatpush1.bf16.msra.mxu1 %v9595_v12  ;;  %vm447_vm1 = vcmp.eq.s32.totalorder %v9849_v13, %v9982_v6  ;;  %v10019_v12 = vld [vmem:[%s13169_s3 + $0x140] ss:$8 sps:$4 sm:$0xff]  }
  0xb3   : > { %vm8150_vm0 = vmpackc.low %vm448_vm14, %vm440_vm13  ;;  %4190 = vperm.xlu0 %9166, %v4137_v9   ;;  %4193 = vperm.xlu1 %9167, %v4138_v8   ;;  %v4144_v9 = vld [vmem:[%s9846_s9 + $0x88] sm:$0xff] }
  0xb4   : > { %vm8152_vm2 = vmpackc.low %vm447_vm1, %vm439_vm15  ;;  %2015 = vmatpush1.bf16.msra.mxu0 %v9980_v61  ;;  %8151 = vmatprep.mubr.msk.bf16.mxu0 %vm8150_vm0, %v13176_v32  ;;  %v10008_v10 = vpop.permute.xlu0 %378 }
  0xb5   : > { %13338 = vst [vmem:[#allocation13_spill] sm:$0xff] %v10008_v10  ;;  %v10021_v14 = vpop.permute.xlu1 %381  ;;  %3363 = vmatprep.subr.bf16.mxu1 %v9604_v15  ;;  %8185 = vmatmul.mubr.msk.bf16.gmra.mrb[8].mxu1 %vm8184_vm3, %v13176_v32  ;;  %vm584_vm4 = vcmp.eq.s32.totalorder %v9858_v19, %v10008_v10  ;;  %v10036_v15 = vld [vmem:[%s13169_s3 + $0x154] ss:$8 sps:$4 sm:$0xff]   ;;  %vm583_vm7 = vcmp.eq.s32.totalorder %v9849_v13, %v10008_v10 }
  0xb6   : > { %13339 = vst [vmem:[#allocation14_spill] sm:$0xff] %v10021_v14  ;;  %vm592_vm5 = vcmp.eq.s32.totalorder %v9858_v19, %v10021_v14  ;;  %3364 = vmatpush1.bf16.msra.mxu1 %v9611_v16  ;;  %8153 = vmatmul.mubr.msk.bf16.gmra.mrb[8].mxu0 %vm8152_vm2, %v13176_v32  ;;  %v10045_v16 = vld [vmem:[%s13169_s3 + $0x150] ss:$8 sps:$4 sm:$0xff]   ;;  %vm591_vm8 = vcmp.eq.s32.totalorder %v9849_v13, %v10021_v14  ;;  %v4155_v14 = vld [vmem:[%s9846_s9 + $0xe0] sm:$0xff] }
  0xb7   : > { %vm8186_vm6 = vmpackc.low %vm592_vm5, %vm584_vm4  ;;  %2016 = vmatprep.subr.bf16.mxu0 %v10004_v11  ;;  %4196 = vperm.xlu0 %9166, %v4139_v17   ;;  %v4157_v10 = vld [vmem:[%s9846_s9 + $0xf0] sm:$0xff] }
  0xb8   : > { %4199 = vperm.xlu1 %9167, %v4140_v20   ;;  %2017 = vmatpush1.bf16.msra.mxu0 %v10019_v12  ;;  %v10040_v24 = vpop.permute.xlu0 %330  ;;  %vm8188_vm15 = vmpackc.low %vm591_vm8, %vm583_vm7  ;;  %v4145_v20 = vld [vmem:[%s9846_s9 + $0x90] sm:$0xff] }
  0xb9   : > { %v10047_v29 = vpop.permute.xlu1 %333  ;;  %8187 = vmatprep.mubr.msk.bf16.mxu1 %vm8186_vm6, %v13176_v32  ;;  %3365 = vmatprep.subr.bf16.mxu1 %v9624_v21  ;;  %vm456_vm9 = vcmp.eq.s32.totalorder %v9858_v19, %v10040_v24  ;;  %vm455_vm11 = vcmp.eq.s32.totalorder %v9849_v13, %v10040_v24  ;;  %v10071_v21 = vld [vmem:[%s13169_s3 + $0x164] ss:$8 sps:$4 sm:$0xff]  }
  0xba   : > { %vm464_vm10 = vcmp.eq.s32.totalorder %v9858_v19, %v10047_v29  ;;  %3366 = vmatpush1.bf16.msra.mxu1 %v9629_v22  ;;  %2018 = vmatprep.subr.bf16.mxu0 %v10036_v15  ;;  %vm463_vm13 = vcmp.eq.s32.totalorder %v9849_v13, %v10047_v29 }
  0xbb   : > { %vm8154_vm12 = vmpackc.low %vm464_vm10, %vm456_vm9  ;;  %4202 = vperm.xlu0 %9166, %v4141_v40   ;;  %3367 = vmatprep.subr.bf16.mxu1 %v9634_v23  ;;  %v10102_v23 = vld [vmem:[%s13169_s3 + $0x174] ss:$8 sps:$4 sm:$0xff]  }
  0xbc   : > { %8155 = vmatprep.mubr.msk.bf16.mxu0 %vm8154_vm12, %v13176_v32  ;;  %vm8156_vm14 = vmpackc.low %vm463_vm13, %vm455_vm11  ;;  %4205 = vperm.xlu1 %9167, %v4142_v44   ;;  %v10074_v22 = vpop.permute.xlu0 %384  ;;  %v4146_v40 = vld [vmem:[%s9846_s9 + $0x98] sm:$0xff]  ;;  %v10151_v44 = vld [vmem:[%s13169_s3 + $0x180] ss:$8 sps:$4 sm:$0xff]  }
  0xbd   : > { %2019 = vmatpush1.bf16.msra.mxu0 %v10045_v16  ;;  %13340 = vst [vmem:[#allocation15_spill] sm:$0xff] %v10074_v22  ;;  %v10087_v56 = vpop.permute.xlu1 %387  ;;  %8189 = vmatmul.mubr.msk.bf16.gmra.mrb[12].mxu1 %vm8188_vm15, %v13176_v32  ;;  %vm600_vm0 = vcmp.eq.s32.totalorder %v9858_v19, %v10074_v22  ;;  %vm599_vm3 = vcmp.eq.s32.totalorder %v9849_v13, %v10074_v22  ;;  %v4153_v22 = vld [vmem:[%s9846_s9 + $0xd0] sm:$0xff] }
  0xbe   : > { %13341 = vst [vmem:[#allocation16_spill] sm:$0xff] %v10087_v56  ;;  %vm608_vm1 = vcmp.eq.s32.totalorder %v9858_v19, %v10087_v56  ;;  %3368 = vmatpush1.bf16.msra.mxu1 %v9645_v26  ;;  %8157 = vmatmul.mubr.msk.bf16.gmra.mrb[12].mxu0 %vm8156_vm14, %v13176_v32  ;;  %v10111_v26 = vld [vmem:[%s13169_s3 + $0x170] ss:$8 sps:$4 sm:$0xff]   ;;  %vm607_vm4 = vcmp.eq.s32.totalorder %v9849_v13, %v10087_v56  ;;  %v4152_v56 = vld [vmem:[%s9846_s9 + $0xc8] sm:$0xff] }
  0xbf   : > { %vm8190_vm2 = vmpackc.low %vm608_vm1, %vm600_vm0  ;;  %2020 = vmatprep.subr.bf16.mxu0 %v10071_v21  ;;  %4208 = vperm.xlu0 %9166, %v4143_v57  }
  0xc0   : > { %4211 = vperm.xlu1 %9167, %v4144_v9   ;;  %v10106_v8 = vpop.permute.xlu0 %336  ;;  %8191 = vmatprep.mubr.msk.bf16.mxu1 %vm8190_vm2, %v13176_v32  ;;  %vm8192_vm11 = vmpackc.low %vm607_vm4, %vm599_vm3  ;;  %v4147_v9 = vld [vmem:[%s9846_s9 + $0xa0] sm:$0xff] }
  0xc1   : > { %2021 = vmatpush1.bf16.msra.mxu0 %v10085_v2  ;;  %v10113_v17 = vpop.permute.xlu1 %339  ;;  %3369 = vmatprep.subr.bf16.mxu1 %v9652_v27  ;;  %vm472_vm5 = vcmp.eq.s32.totalorder %v9858_v19, %v10106_v8  ;;  %vm471_vm7 = vcmp.eq.s32.totalorder %v9849_v13, %v10106_v8  ;;  %v10137_v27 = vld [vmem:[%s13169_s3 + $0x184] ss:$8 sps:$4 sm:$0xff]  }
  0xc2   : > { %vm480_vm6 = vcmp.eq.s32.totalorder %v9858_v19, %v10113_v17  ;;  %3370 = vmatpush1.bf16.msra.mxu1 %v9661_v30  ;;  %2022 = vmatprep.subr.bf16.mxu0 %v10102_v23  ;;  %vm479_vm9 = vcmp.eq.s32.totalorder %v9849_v13, %v10113_v17 }
  0xc3   : > { %vm8158_vm8 = vmpackc.low %vm480_vm6, %vm472_vm5  ;;  %4214 = vperm.xlu0 %9166, %v4145_v20   ;;  %3371 = vmatprep.subr.bf16.mxu1 %v9668_v31  ;;  %v4148_v20 = vld [vmem:[%s9846_s9 + $0xa8] sm:$0xff]  ;;  %v10168_v31 = vld [vmem:[%s13169_s3 + $0x194] ss:$8 sps:$4 sm:$0xff]  }
  0xc4   : > { %8159 = vmatprep.mubr.msk.bf16.mxu0 %vm8158_vm8, %v13176_v32  ;;  %vm8160_vm10 = vmpackc.low %vm479_vm9, %vm471_vm7  ;;  %4217 = vperm.xlu1 %9167, %v4146_v40   ;;  %v10140_v30 = vpop.permute.xlu0 %390 }
  0xc5   : > { %2023 = vmatpush1.bf16.msra.mxu0 %v10111_v26  ;;  %13342 = vst [vmem:[#allocation17_spill] sm:$0xff] %v10140_v30  ;;  %v10153_v57 = vpop.permute.xlu1 %393  ;;  %8193 = vmatmul.mubr.msk.bf16.gmra.mrb[16].mxu1 %vm8192_vm11, %v13176_v32  ;;  %vm616_vm12 = vcmp.eq.s32.totalorder %v9858_v19, %v10140_v30  ;;  %vm615_vm15 = vcmp.eq.s32.totalorder %v9849_v13, %v10140_v30 }
  0xc6   : > { %13343 = vst [vmem:[#allocation18_spill] sm:$0xff] %v10153_v57  ;;  %vm624_vm13 = vcmp.eq.s32.totalorder %v9858_v19, %v10153_v57  ;;  %3372 = vmatpush1.bf16.msra.mxu1 %v9677_v34  ;;  %8161 = vmatmul.mubr.msk.bf16.gmra.mrb[16].mxu0 %vm8160_vm10, %v13176_v32  ;;  %v10177_v34 = vld [vmem:[%s13169_s3 + $0x190] ss:$8 sps:$4 sm:$0xff]   ;;  %vm623_vm0 = vcmp.eq.s32.totalorder %v9849_v13, %v10153_v57 }
  0xc7   : > { %vm8194_vm14 = vmpackc.low %vm624_vm13, %vm616_vm12  ;;  %2024 = vmatprep.subr.bf16.mxu0 %v10137_v27  ;;  %4220 = vperm.xlu0 %9166, %v4147_v9   ;;  %v4150_v9 = vld [vmem:[%s9846_s9 + $0xb8] sm:$0xff] }
  0xc8   : > { %4223 = vperm.xlu1 %9167, %v4148_v20   ;;  %v10172_v40 = vpop.permute.xlu0 %342  ;;  %8195 = vmatprep.mubr.msk.bf16.mxu1 %vm8194_vm14, %v13176_v32  ;;  %vm8196_vm7 = vmpackc.low %vm623_vm0, %vm615_vm15 }
  0xc9   : > { %2025 = vmatpush1.bf16.msra.mxu0 %v10151_v44  ;;  %v10179_v7 = vpop.permute.xlu1 %345  ;;  %3373 = vmatprep.subr.bf16.mxu1 %v9684_v35  ;;  %vm488_vm1 = vcmp.eq.s32.totalorder %v9858_v19, %v10172_v40  ;;  %vm487_vm3 = vcmp.eq.s32.totalorder %v9849_v13, %v10172_v40  ;;  %v10203_v35 = vld [vmem:[%s13169_s3 + $0x1a4] ss:$8 sps:$4 sm:$0xff]  }
  0xca   : > { %vm496_vm2 = vcmp.eq.s32.totalorder %v9858_v19, %v10179_v7  ;;  %3374 = vmatpush1.bf16.msra.mxu1 %v9693_v38  ;;  %2026 = vmatprep.subr.bf16.mxu0 %v10168_v31  ;;  %vm495_vm5 = vcmp.eq.s32.totalorder %v9849_v13, %v10179_v7 }
  0xcb   : > { %vm8162_vm4 = vmpackc.low %vm496_vm2, %vm488_vm1  ;;  %4226 = vperm.xlu0 %9166, %v4149_v1   ;;  %v10217_v1 = vld [vmem:[%s13169_s3 + $0x1a0] ss:$8 sps:$4 sm:$0xff]   ;;  %3375 = vmatprep.subr.bf16.mxu1 %v9700_v39  ;;  %v10234_v39 = vld [vmem:[%s13169_s3 + $0x1b4] ss:$8 sps:$4 sm:$0xff]  }
  0xcc   : > { %8163 = vmatprep.mubr.msk.bf16.mxu0 %vm8162_vm4, %v13176_v32  ;;  %vm8164_vm6 = vmpackc.low %vm495_vm5, %vm487_vm3  ;;  %4229 = vperm.xlu1 %9167, %v4150_v9   ;;  %v10206_v38 = vpop.permute.xlu0 %396  ;;  %v4151_v32 = vld [vmem:[%s9846_s9 + $0xc0] sm:$0xff]  ;;  %v13346_v9 = vmov 1.0|1.0  }
  0xcd   : > { %2027 = vmatpush1.bf16.msra.mxu0 %v10177_v34  ;;  %13344 = vst [vmem:[#allocation19_spill] sm:$0xff] %v10206_v38  ;;  %v10219_v20 = vpop.permute.xlu1 %399  ;;  %8197 = vmatmul.mubr.msk.bf16.gmra.mrb[20].mxu1 %vm8196_vm7, %v13346_v9  ;;  %vm632_vm8 = vcmp.eq.s32.totalorder %v9858_v19, %v10206_v38  ;;  %vm631_vm11 = vcmp.eq.s32.totalorder %v9849_v13, %v10206_v38 }
  0xce   : > { %13345 = vst [vmem:[#allocation20_spill] sm:$0xff] %v10219_v20  ;;  %vm640_vm9 = vcmp.eq.s32.totalorder %v9858_v19, %v10219_v20  ;;  %3376 = vmatpush1.bf16.msra.mxu1 %v9709_v42  ;;  %8165 = vmatmul.mubr.msk.bf16.gmra.mrb[20].mxu0 %vm8164_vm6, %v13346_v9  ;;  %v10243_v42 = vld [vmem:[%s13169_s3 + $0x1b0] ss:$8 sps:$4 sm:$0xff]   ;;  %vm639_vm12 = vcmp.eq.s32.totalorder %v9849_v13, %v10219_v20 }
  0xcf   : > { %vm8198_vm10 = vmpackc.low %vm640_vm9, %vm632_vm8  ;;  %2028 = vmatprep.subr.bf16.mxu0 %v10203_v35  ;;  %4232 = vperm.xlu0 %9166, %v4151_v32   ;;  %v4154_v32 = vld [vmem:[%s9846_s9 + $0xd8] sm:$0xff] }
  0xd0   : > { %4235 = vperm.xlu1 %9167, %v4152_v56   ;;  %v10238_v57 = vpop.permute.xlu0 %348  ;;  %8199 = vmatprep.mubr.msk.bf16.mxu1 %vm8198_vm10, %v13346_v9  ;;  %vm8200_vm3 = vmpackc.low %vm639_vm12, %vm631_vm11 }
  0xd1   : > { %2029 = vmatpush1.bf16.msra.mxu0 %v10217_v1  ;;  %v10245_v30 = vpop.permute.xlu1 %351  ;;  %3377 = vmatprep.subr.bf16.mxu1 %v9716_v43  ;;  %vm504_vm13 = vcmp.eq.s32.totalorder %v9858_v19, %v10238_v57  ;;  %vm503_vm15 = vcmp.eq.s32.totalorder %v9849_v13, %v10238_v57  ;;  %v10269_v43 = vld [vmem:[%s13169_s3 + $0x1c4] ss:$8 sps:$4 sm:$0xff]  }
  0xd2   : > { %vm512_vm14 = vcmp.eq.s32.totalorder %v9858_v19, %v10245_v30  ;;  %3378 = vmatpush1.bf16.msra.mxu1 %v9725_v46  ;;  %2030 = vmatprep.subr.bf16.mxu0 %v10234_v39  ;;  %vm511_vm1 = vcmp.eq.s32.totalorder %v9849_v13, %v10245_v30 }
  0xd3   : > { %vm8166_vm0 = vmpackc.low %vm512_vm14, %vm504_vm13  ;;  %4238 = vperm.xlu0 %9166, %v4153_v22   ;;  %v10283_v22 = vld [vmem:[%s13169_s3 + $0x1c0] ss:$8 sps:$4 sm:$0xff]   ;;  %3379 = vmatprep.subr.bf16.mxu1 %v9732_v47  ;;  %v10300_v47 = vld [vmem:[%s13169_s3 + $0x1d4] ss:$8 sps:$4 sm:$0xff]  }
  0xd4   : > { %8167 = vmatprep.mubr.msk.bf16.mxu0 %vm8166_vm0, %v13346_v9  ;;  %vm8168_vm2 = vmpackc.low %vm511_vm1, %vm503_vm15  ;;  %4241 = vperm.xlu1 %9167, %v4154_v32   ;;  %v10272_v46 = vpop.permute.xlu0 %402  ;;  %v4156_v32 = vld [vmem:[%s9846_s9 + $0xe8] sm:$0xff] }
  0xd5   : > { %2031 = vmatpush1.bf16.msra.mxu0 %v10243_v42  ;;  %13347 = vst [vmem:[#allocation21_spill] sm:$0xff] %v10272_v46  ;;  %v10285_v56 = vpop.permute.xlu1 %405  ;;  %8201 = vmatmul.mubr.msk.bf16.gmra.mrb[24].mxu1 %vm8200_vm3, %v13346_v9  ;;  %vm648_vm4 = vcmp.eq.s32.totalorder %v9858_v19, %v10272_v46  ;;  %vm647_vm7 = vcmp.eq.s32.totalorder %v9849_v13, %v10272_v46 }
  0xd6   : > { %13348 = vst [vmem:[#allocation22_spill] sm:$0xff] %v10285_v56  ;;  %vm656_vm5 = vcmp.eq.s32.totalorder %v9858_v19, %v10285_v56  ;;  %3380 = vmatpush1.bf16.msra.mxu1 %v9741_v50  ;;  %8169 = vmatmul.mubr.msk.bf16.gmra.mrb[24].mxu0 %vm8168_vm2, %v13346_v9  ;;  %v10309_v50 = vld [vmem:[%s13169_s3 + $0x1d0] ss:$8 sps:$4 sm:$0xff]   ;;  %vm655_vm8 = vcmp.eq.s32.totalorder %v9849_v13, %v10285_v56 }
  0xd7   : > { %vm8202_vm6 = vmpackc.low %vm656_vm5, %vm648_vm4  ;;  %2032 = vmatprep.subr.bf16.mxu0 %v10269_v43  ;;  %4244 = vperm.xlu0 %9166, %v4155_v14   ;;  %v10319_v14 = vadd.s32 384, %v9849_v13  ;;  %v10382_v56 = vld [vmem:[%s13169_s3 + $0x1f0] ss:$8 sps:$4 sm:$0xff]  }
  0xd8   : > { %4247 = vperm.xlu1 %9167, %v4156_v32   ;;  %v10304_v20 = vpop.permute.xlu0 %354  ;;  %8203 = vmatprep.mubr.msk.bf16.mxu1 %vm8202_vm6, %v13346_v9  ;;  %v4158_v32 = vld [vmem:[%s9846_s9 + $0xf8] sm:$0xff]  ;;  %vm8204_vm1 = vmpackc.low %vm655_vm8, %vm647_vm7  ;;  %s9384_s9 = scalar_lea.vmem %s13124_s13, 32 }
  0xd9   : > { %2033 = vmatpush1.bf16.msra.mxu0 %v10283_v22  ;;  %v10311_v38 = vpop.permute.xlu1 %357  ;;  %3381 = vmatprep.subr.bf16.mxu1 %v9748_v51  ;;  %vm520_vm9 = vcmp.eq.s32.totalorder %v9858_v19, %v10304_v20  ;;  %vm519_vm11 = vcmp.eq.s32.totalorder %v9849_v13, %v10304_v20  ;;  %vm410_vm14 = vcmp.eq.s32.totalorder %v10319_v14, %v9855_v18  ;;  %v10342_v51 = vld [vmem:[%s13169_s3 + $0x1e4] ss:$8 sps:$4 sm:$0xff]   ;;  %p9385_p11 = scmp.ne.s32.totalorder %s13124_s13, %s9384_s9  ;;  %p9392_p1 = scmp.lt.s32.totalorder %s9390_s6, %s9384_s9 }
  0xda   : > { %vm528_vm10 = vcmp.eq.s32.totalorder %v9858_v19, %v10311_v38  ;;  %3382 = vmatpush1.bf16.msra.mxu1 %v9757_v54  ;;  %2034 = vmatprep.subr.bf16.mxu0 %v10300_v47  ;;  %vm527_vm13 = vcmp.eq.s32.totalorder %v9849_v13, %v10311_v38  ;;  %vm418_vm15 = vcmp.eq.s32.totalorder %v10319_v14, %v9866_v28 }
  0xdb   : > { %vm8170_vm12 = vmpackc.low %vm528_vm10, %vm520_vm9  ;;  %4250 = vperm.xlu0 %9166, %v4157_v10   ;;  %v10356_v10 = vld [vmem:[%s13169_s3 + $0x1e0] ss:$8 sps:$4 sm:$0xff]   ;;  %3383 = vmatprep.subr.bf16.mxu1 %v9764_v55  ;;  %p9386_p12 = pnand %p9385_p11, %p9517_p5  ;;  %p9393_p2 = por %p9392_p1, %p9391_p0 }
  0xdc   : > { %8171 = vmatprep.mubr.msk.bf16.mxu0 %vm8170_vm12, %v13346_v9  ;;  %vm8172_vm0 = vmpackc.low %vm527_vm13, %vm519_vm11  ;;  %4253 = vperm.xlu1 %9167, %v4158_v32   ;;  %v10345_v54 = vpop.permute.xlu0 %2620  ;;  %v10369_v32 = vld [vmem:[%s13169_s3 + $0x1f4] ss:$8 sps:$4 sm:$0xff]   ;;  %vm426_vm13 = vcmp.eq.s32.totalorder %v10319_v14, %v9916_v48 }
  0xdd   : > { %2035 = vmatpush1.bf16.msra.mxu0 %v10309_v50  ;;  %v10358_v4 = vpop.permute.xlu1 %2623  ;;  %8205 = vmatmul.mubr.msk.bf16.gmra.mrb[28].mxu1 %vm8204_vm1, %v13346_v9  ;;  %vm8206_vm2 = vmpackc.low %vm418_vm15, %vm410_vm14  ;;  %vm2716_vm3 = vcmp.eq.s32.totalorder %v9858_v19, %v10345_v54  ;;  %vm2715_vm6 = vcmp.eq.s32.totalorder %v9849_v13, %v10345_v54  ;;  %vm434_vm14 = vcmp.eq.s32.totalorder %v10319_v14, %v9918_v49  ;;  %p9387_p13 = pneg %p9386_p12 }
  0xde   : > { %13349 = vst [vmem:[#allocation23_spill] sm:$0xff] %v10358_v4  ;;  %vm2724_vm4 = vcmp.eq.s32.totalorder %v9858_v19, %v10358_v4  ;;  %3384 = vmatpush1.bf16.msra.mxu1 %v9773_v58  ;;  %8173 = vmatmul.mubr.msk.bf16.gmra.mrb[28].mxu0 %vm8172_vm0, %v13346_v9  ;;  %v10389_v58 = vadd.s32 256, %v9849_v13  ;;  %vm2723_vm7 = vcmp.eq.s32.totalorder %v9849_v13, %v10358_v4  ;;  %vm8210_vm1 = vmpackc.low %vm434_vm14, %vm426_vm13  ;;  %v10440_v4 = vld [vmem:[%s13169_s3 + $0x210] ss:$8 sps:$4 sm:$0xff]  }
  0xdf   : > { %vm8398_vm5 = vmpackc.low %vm2724_vm4, %vm2716_vm3  ;;  %2036 = vmatprep.subr.bf16.mxu0 %v10342_v51  ;;  %8207 = vmatprep.mubr.msk.bf16.mxu0 %vm8206_vm2, %v13346_v9  ;;  %13350 = vst [vmem:[#allocation24_spill] sm:$0xff] %v10440_v4  ;;  %p9394_p3 = pnand %p9393_p2, %p9387_p13 }
  0xe0   : > { %3385 = vmatprep.subr.bf16.mxu1 %v9780_v59  ;;  %v10377_v55 = vpop.permute.xlu0 %2626  ;;  %8399 = vmatprep.mubr.msk.bf16.mxu1 %vm8398_vm5, %v13346_v9  ;;  %v10398_v59 = vld [vmem:[%s13169_s3 + $0x204] ss:$8 sps:$4 sm:$0xff]   ;;  %vm409_vm10 = vcmp.eq.s32.totalorder %v10389_v58, %v9855_v18  ;;  %vm417_vm11 = vcmp.eq.s32.totalorder %v10389_v58, %v9866_v28  ;;  %vm8400_vm12 = vmpackc.low %vm2723_vm7, %vm2715_vm6  ;;  %vm425_vm6 = vcmp.eq.s32.totalorder %v10389_v58, %v9916_v48 }
  0xe1   : > { %2037 = vmatpush1.bf16.msra.mxu0 %v10356_v10  ;;  %v10384_v46 = vpop.permute.xlu1 %2629  ;;  %vm2732_vm8 = vcmp.eq.s32.totalorder %v9858_v19, %v10377_v55  ;;  %vm8208_vm0 = vmpackc.low %vm417_vm11, %vm409_vm10  ;;  %vm2731_vm2 = vcmp.eq.s32.totalorder %v9849_v13, %v10377_v55  ;;  %vm433_vm7 = vcmp.eq.s32.totalorder %v10389_v58, %v9918_v49  ;;  %vm450_vm10 = vcmp.eq.s32.totalorder %v10319_v14, %v9982_v6 }
  0xe2   : > { %2038 = vmatprep.subr.bf16.mxu0 %v10369_v32  ;;  %3386 = vmatpush1.bf16.msra.mxu1 %v9789_v62  ;;  %vm2740_vm9 = vcmp.eq.s32.totalorder %v9858_v19, %v10384_v46  ;;  %v10418_v62 = vld [vmem:[%s13169_s3 + $0x200] ss:$8 sps:$4 sm:$0xff]   ;;  %vm2739_vm3 = vcmp.eq.s32.totalorder %v9849_v13, %v10384_v46 }
  0xe3   : > { %3548 = vmatprep.subr.bf16.mxu1 %v9796_v63  ;;  %vm8402_vm15 = vmpackc.low %vm2740_vm9, %vm2732_vm8  ;;  %v10425_v63 = vld [vmem:[%s13169_s3 + $0x214] ss:$8 sps:$4 sm:$0xff]   ;;  %vm442_vm9 = vcmp.eq.s32.totalorder %v10319_v14, %v9975_v60 }
  0xe4   : > { %v10429_v28 = vpop.permute.xlu0 %2632  ;;  %vm8404_vm8 = vmpackc.low %vm2739_vm3, %vm2731_vm2  ;;  %vm441_vm2 = vcmp.eq.s32.totalorder %v10389_v58, %v9975_v60  ;;  %vm449_vm3 = vcmp.eq.s32.totalorder %v10389_v58, %v9982_v6 }
  0xe5   : > { %2039 = vmatpush1.bf16.msra.mxu0 %v10382_v56  ;;  %8401 = vmatmul.mubr.msk.bf16.vlgmr.msra.gmra.mrb[32].mxu1 %vm8400_vm12, %v13346_v9  ;;  %v10432_v18 = vpop.permute.xlu1 %2635  ;;  %vm2748_vm4 = vcmp.eq.s32.totalorder %v9858_v19, %v10429_v28  ;;  %vm8212_vm12 = vmpackc.low %vm433_vm7, %vm425_vm6  ;;  %vm2747_vm14 = vcmp.eq.s32.totalorder %v9849_v13, %v10429_v28  ;;  %vm466_vm6 = vcmp.eq.s32.totalorder %v10319_v14, %v10047_v29 }
  0xe6   : > { %2201 = vmatprep.subr.bf16.mxu0 %v10398_v59  ;;  %3549 = vmatpush1.bf16.msra.mxu1 %v9887_v33  ;;  %v10450_v33 = vld [vmem:[%s13169_s3 + $0x224] ss:$8 sps:$4 sm:$0xff]   ;;  %vm2756_vm5 = vcmp.eq.s32.totalorder %v9858_v19, %v10432_v18  ;;  %vm8214_vm13 = vmpackc.low %vm450_vm10, %vm442_vm9 }
  0xe7   : > { %8403 = vmatprep.mubr.msk.bf16.mxu1 %vm8402_vm15, %v13346_v9  ;;  %3550 = vmatprep.subr.bf16.mxu1 %v9903_v41  ;;  %13351 = vst [vmem:[#allocation25_spill] sm:$0xff] %v10450_v33  ;;  %v10470_v41 = vld [vmem:[%s13169_s3 + $0x220] ss:$8 sps:$4 sm:$0xff]   ;;  %vm8406_vm11 = vmpackc.low %vm2756_vm5, %vm2748_vm4  ;;  %vm2755_vm15 = vcmp.eq.s32.totalorder %v9849_v13, %v10432_v18  ;;  %vm458_vm5 = vcmp.eq.s32.totalorder %v10319_v14, %v10040_v24 }
  0xe8   : > { %8209 = vmatmul.mubr.msk.bf16.vlgmr.msra.gmra.mrb[0].mxu0 %vm8208_vm0, %v13346_v9  ;;  %vm8408_vm4 = vmpackc.low %vm2755_vm15, %vm2747_vm14  ;;  %vm457_vm14 = vcmp.eq.s32.totalorder %v10389_v58, %v10040_v24  ;;  %vm465_vm15 = vcmp.eq.s32.totalorder %v10389_v58, %v10047_v29 }
  0xe9   : > { %8211 = vmatprep.mubr.msk.bf16.mxu0 %vm8210_vm1, %v13346_v9  ;;  %2202 = vmatpush1.bf16.msra.mxu0 %v10418_v62  ;;  %vm8218_vm9 = vmpackc.low %vm466_vm6, %vm458_vm5 }
  0xea   : > { %2203 = vmatprep.subr.bf16.mxu0 %v10425_v63  ;;  %3551 = vmatpush1.bf16.msra.mxu1 %v9912_v45  ;;  %v10477_v45 = vld [vmem:[%s13169_s3 + $0x234] ss:$8 sps:$4 sm:$0xff]  }
  0xeb   : > { %3552 = vmatprep.subr.bf16.mxu1 %v9935_v3  ;;  %v10481_v3 = vpop.permute.xlu0 %2638 }
  0xec   : > { %vm2764_vm0 = vcmp.eq.s32.totalorder %v9858_v19, %v10481_v3  ;;  %vm2763_vm10 = vcmp.eq.s32.totalorder %v9849_v13, %v10481_v3 }
  0xed   : > { %2204 = vmatpush1.bf16.msra.mxu0 %v10440_v4  ;;  %8405 = vmatmul.mubr.msk.bf16.gmra.mrb[36].mxu1 %vm8404_vm8, %v13346_v9  ;;  %v10483_v4 = vpop.permute.xlu1 %2641  ;;  %vm8216_vm8 = vmpackc.low %vm449_vm3, %vm441_vm2  ;;  %vm482_vm2 = vcmp.eq.s32.totalorder %v10319_v14, %v10113_v17 }
  0xee   : > { %2205 = vmatprep.subr.bf16.mxu0 %v10450_v33  ;;  %8407 = vmatprep.mubr.msk.bf16.mxu1 %vm8406_vm11, %v13346_v9  ;;  %v10492_v33 = vld [vmem:[%s13169_s3 + $0x230] ss:$8 sps:$4 sm:$0xff]   ;;  %vm2772_vm1 = vcmp.eq.s32.totalorder %v9858_v19, %v10483_v4  ;;  %vm2771_vm11 = vcmp.eq.s32.totalorder %v9849_v13, %v10483_v4 }
  0xef   : > { %3553 = vmatpush1.bf16.msra.mxu1 %v9944_v52  ;;  %13352 = vst [vmem:[#allocation26_spill] sm:$0xff] %v10492_v33  ;;  %v10502_v52 = vld [vmem:[%s13169_s3 + $0x244] ss:$8 sps:$4 sm:$0xff]   ;;  %vm8410_vm7 = vmpackc.low %vm2772_vm1, %vm2764_vm0  ;;  %vm474_vm1 = vcmp.eq.s32.totalorder %v10319_v14, %v10106_v8 }
  0xf0   : > { %8213 = vmatmul.mubr.msk.bf16.gmra.mrb[4].mxu0 %vm8212_vm12, %v13346_v9  ;;  %3554 = vmatprep.subr.bf16.mxu1 %v9969_v5  ;;  %13353 = vst [vmem:[#allocation27_spill] sm:$0xff] %v10502_v52  ;;  %v10522_v5 = vld [vmem:[%s13169_s3 + $0x240] ss:$8 sps:$4 sm:$0xff]   ;;  %vm8412_vm0 = vmpackc.low %vm2771_vm11, %vm2763_vm10  ;;  %vm473_vm10 = vcmp.eq.s32.totalorder %v10389_v58, %v10106_v8  ;;  %vm481_vm11 = vcmp.eq.s32.totalorder %v10389_v58, %v10113_v17 }
  0xf1   : > { %8215 = vmatprep.mubr.msk.bf16.mxu0 %vm8214_vm13, %v13346_v9  ;;  %2206 = vmatpush1.bf16.msra.mxu0 %v10470_v41  ;;  %vm8222_vm5 = vmpackc.low %vm482_vm2, %vm474_vm1 }
  0xf2   : > { %2207 = vmatprep.subr.bf16.mxu0 %v10477_v45 }
  0xf3   : > { %3555 = vmatpush1.bf16.msra.mxu1 %v9980_v61  ;;  %v10529_v61 = vld [vmem:[%s13169_s3 + $0x254] ss:$8 sps:$4 sm:$0xff]  }
  0xf4   : > { %3556 = vmatprep.subr.bf16.mxu1 %v10004_v11  ;;  %v10533_v11 = vpop.permute.xlu0 %2644 }
  0xf5   : > { %2208 = vmatpush1.bf16.msra.mxu0 %v10492_v33  ;;  %8409 = vmatmul.mubr.msk.bf16.gmra.mrb[40].mxu1 %vm8408_vm4, %v13346_v9  ;;  %v10535_v33 = vpop.permute.xlu1 %2647  ;;  %vm2780_vm12 = vcmp.eq.s32.totalorder %v9858_v19, %v10533_v11  ;;  %vm8220_vm4 = vmpackc.low %vm465_vm15, %vm457_vm14  ;;  %vm2779_vm6 = vcmp.eq.s32.totalorder %v9849_v13, %v10533_v11  ;;  %vm498_vm14 = vcmp.eq.s32.totalorder %v10319_v14, %v10179_v7 }
  0xf6   : > { %2209 = vmatprep.subr.bf16.mxu0 %v10502_v52  ;;  %8411 = vmatprep.mubr.msk.bf16.mxu1 %vm8410_vm7, %v13346_v9  ;;  %v10544_v52 = vld [vmem:[%s13169_s3 + $0x250] ss:$8 sps:$4 sm:$0xff]   ;;  %vm2788_vm13 = vcmp.eq.s32.totalorder %v9858_v19, %v10535_v33  ;;  %vm2787_vm7 = vcmp.eq.s32.totalorder %v9849_v13, %v10535_v33 }
  0xf7   : > { %3557 = vmatpush1.bf16.msra.mxu1 %v10019_v12  ;;  %13354 = vst [vmem:[#allocation28_spill] sm:$0xff] %v10544_v52  ;;  %v10554_v12 = vld [vmem:[%s13169_s3 + $0x264] ss:$8 sps:$4 sm:$0xff]   ;;  %vm8414_vm3 = vmpackc.low %vm2788_vm13, %vm2780_vm12  ;;  %vm490_vm13 = vcmp.eq.s32.totalorder %v10319_v14, %v10172_v40 }
  0xf8   : > { %8217 = vmatmul.mubr.msk.bf16.gmra.mrb[8].mxu0 %vm8216_vm8, %v13346_v9  ;;  %3558 = vmatprep.subr.bf16.mxu1 %v10036_v15  ;;  %13355 = vst [vmem:[#allocation29_spill] sm:$0xff] %v10554_v12  ;;  %v10574_v15 = vld [vmem:[%s13169_s3 + $0x260] ss:$8 sps:$4 sm:$0xff]   ;;  %vm8416_vm12 = vmpackc.low %vm2787_vm7, %vm2779_vm6  ;;  %vm489_vm6 = vcmp.eq.s32.totalorder %v10389_v58, %v10172_v40  ;;  %vm497_vm7 = vcmp.eq.s32.totalorder %v10389_v58, %v10179_v7 }
  0xf9   : > { %8219 = vmatprep.mubr.msk.bf16.mxu0 %vm8218_vm9, %v13346_v9  ;;  %2210 = vmatpush1.bf16.msra.mxu0 %v10522_v5  ;;  %vm8226_vm1 = vmpackc.low %vm498_vm14, %vm490_vm13 }
  0xfa   : > { %2211 = vmatprep.subr.bf16.mxu0 %v10529_v61 }
  0xfb   : > { %3559 = vmatpush1.bf16.msra.mxu1 %v10045_v16  ;;  %v10581_v16 = vld [vmem:[%s13169_s3 + $0x274] ss:$8 sps:$4 sm:$0xff]  }
  0xfc   : > { %3560 = vmatprep.subr.bf16.mxu1 %v10071_v21  ;;  %v10585_v21 = vpop.permute.xlu0 %2650 }
  0xfd   : > { %2212 = vmatpush1.bf16.msra.mxu0 %v10544_v52  ;;  %8413 = vmatmul.mubr.msk.bf16.gmra.mrb[44].mxu1 %vm8412_vm0, %v13346_v9  ;;  %v10587_v52 = vpop.permute.xlu1 %2653  ;;  %vm2796_vm8 = vcmp.eq.s32.totalorder %v9858_v19, %v10585_v21  ;;  %vm8224_vm0 = vmpackc.low %vm481_vm11, %vm473_vm10  ;;  %vm2795_vm2 = vcmp.eq.s32.totalorder %v9849_v13, %v10585_v21  ;;  %vm514_vm10 = vcmp.eq.s32.totalorder %v10319_v14, %v10245_v30 }
  0xfe   : > { %2213 = vmatprep.subr.bf16.mxu0 %v10554_v12  ;;  %8415 = vmatprep.mubr.msk.bf16.mxu1 %vm8414_vm3, %v13346_v9  ;;  %v10596_v12 = vld [vmem:[%s13169_s3 + $0x270] ss:$8 sps:$4 sm:$0xff]   ;;  %vm2804_vm9 = vcmp.eq.s32.totalorder %v9858_v19, %v10587_v52  ;;  %vm2803_vm3 = vcmp.eq.s32.totalorder %v9849_v13, %v10587_v52 }
  0xff   : > { %3561 = vmatpush1.bf16.msra.mxu1 %v10085_v2  ;;  %13356 = vst [vmem:[#allocation30_spill] sm:$0xff] %v10596_v12  ;;  %v10606_v2 = vld [vmem:[%s13169_s3 + $0x284] ss:$8 sps:$4 sm:$0xff]   ;;  %vm8418_vm15 = vmpackc.low %vm2804_vm9, %vm2796_vm8  ;;  %vm506_vm9 = vcmp.eq.s32.totalorder %v10319_v14, %v10238_v57 }
 0x100   : > { %8221 = vmatmul.mubr.msk.bf16.gmra.mrb[12].mxu0 %vm8220_vm4, %v13346_v9  ;;  %3562 = vmatprep.subr.bf16.mxu1 %v10102_v23  ;;  %13357 = vst [vmem:[#allocation31_spill] sm:$0xff] %v10606_v2  ;;  %v10626_v23 = vld [vmem:[%s13169_s3 + $0x280] ss:$8 sps:$4 sm:$0xff]   ;;  %vm8420_vm8 = vmpackc.low %vm2803_vm3, %vm2795_vm2  ;;  %vm505_vm2 = vcmp.eq.s32.totalorder %v10389_v58, %v10238_v57  ;;  %vm513_vm3 = vcmp.eq.s32.totalorder %v10389_v58, %v10245_v30 }
 0x101   : > { %8223 = vmatprep.mubr.msk.bf16.mxu0 %vm8222_vm5, %v13346_v9  ;;  %2214 = vmatpush1.bf16.msra.mxu0 %v10574_v15  ;;  %vm8230_vm13 = vmpackc.low %vm514_vm10, %vm506_vm9 }
 0x102   : > { %2215 = vmatprep.subr.bf16.mxu0 %v10581_v16 }
 0x103   : > { %3563 = vmatpush1.bf16.msra.mxu1 %v10111_v26  ;;  %v10633_v26 = vld [vmem:[%s13169_s3 + $0x294] ss:$8 sps:$4 sm:$0xff]  }
 0x104   : > { %3564 = vmatprep.subr.bf16.mxu1 %v10137_v27  ;;  %v10637_v27 = vpop.permute.xlu0 %2656 }
 0x105   : > { %2216 = vmatpush1.bf16.msra.mxu0 %v10596_v12  ;;  %8417 = vmatmul.mubr.msk.bf16.gmra.mrb[48].mxu1 %vm8416_vm12, %v13346_v9  ;;  %v10639_v12 = vpop.permute.xlu1 %2659  ;;  %vm2812_vm4 = vcmp.eq.s32.totalorder %v9858_v19, %v10637_v27  ;;  %vm8228_vm12 = vmpackc.low %vm497_vm7, %vm489_vm6  ;;  %vm2811_vm14 = vcmp.eq.s32.totalorder %v9849_v13, %v10637_v27  ;;  %vm530_vm6 = vcmp.eq.s32.totalorder %v10319_v14, %v10311_v38 }
 0x106   : > { %2217 = vmatprep.subr.bf16.mxu0 %v10606_v2  ;;  %8419 = vmatprep.mubr.msk.bf16.mxu1 %vm8418_vm15, %v13346_v9  ;;  %v10648_v2 = vld [vmem:[%s13169_s3 + $0x290] ss:$8 sps:$4 sm:$0xff]   ;;  %vm2820_vm5 = vcmp.eq.s32.totalorder %v9858_v19, %v10639_v12  ;;  %vm2819_vm15 = vcmp.eq.s32.totalorder %v9849_v13, %v10639_v12 }
 0x107   : > { %3565 = vmatpush1.bf16.msra.mxu1 %v10151_v44  ;;  %13358 = vst [vmem:[#allocation32_spill] sm:$0xff] %v10648_v2  ;;  %v10658_v44 = vld [vmem:[%s13169_s3 + $0x2a4] ss:$8 sps:$4 sm:$0xff]   ;;  %vm8422_vm11 = vmpackc.low %vm2820_vm5, %vm2812_vm4  ;;  %vm522_vm5 = vcmp.eq.s32.totalorder %v10319_v14, %v10304_v20 }
 0x108   : > { %8225 = vmatmul.mubr.msk.bf16.gmra.mrb[16].mxu0 %vm8224_vm0, %v13346_v9  ;;  %3566 = vmatprep.subr.bf16.mxu1 %v10168_v31  ;;  %13359 = vst [vmem:[#allocation33_spill] sm:$0xff] %v10658_v44  ;;  %v10678_v31 = vld [vmem:[%s13169_s3 + $0x2a0] ss:$8 sps:$4 sm:$0xff]   ;;  %vm8424_vm4 = vmpackc.low %vm2819_vm15, %vm2811_vm14  ;;  %vm521_vm14 = vcmp.eq.s32.totalorder %v10389_v58, %v10304_v20  ;;  %vm529_vm15 = vcmp.eq.s32.totalorder %v10389_v58, %v10311_v38 }
 0x109   : > { %8227 = vmatprep.mubr.msk.bf16.mxu0 %vm8226_vm1, %v13346_v9  ;;  %2218 = vmatpush1.bf16.msra.mxu0 %v10626_v23  ;;  %vm8234_vm9 = vmpackc.low %vm530_vm6, %vm522_vm5 }
 0x10a   : > { %2219 = vmatprep.subr.bf16.mxu0 %v10633_v26 }
 0x10b   : > { %3567 = vmatpush1.bf16.msra.mxu1 %v10177_v34  ;;  %v10685_v34 = vld [vmem:[%s13169_s3 + $0x2b4] ss:$8 sps:$4 sm:$0xff]  }
 0x10c   : > { %3568 = vmatprep.subr.bf16.mxu1 %v10203_v35  ;;  %v10689_v35 = vpop.permute.xlu0 %2662 }
 0x10d   : > { %2220 = vmatpush1.bf16.msra.mxu0 %v10648_v2  ;;  %8421 = vmatmul.mubr.msk.bf16.gmra.mrb[52].mxu1 %vm8420_vm8, %v13346_v9  ;;  %v10691_v2 = vpop.permute.xlu1 %2665  ;;  %vm2828_vm0 = vcmp.eq.s32.totalorder %v9858_v19, %v10689_v35  ;;  %vm8232_vm8 = vmpackc.low %vm513_vm3, %vm505_vm2  ;;  %vm2827_vm10 = vcmp.eq.s32.totalorder %v9849_v13, %v10689_v35 }
 0x10e   : > { %2221 = vmatprep.subr.bf16.mxu0 %v10658_v44  ;;  %8423 = vmatprep.mubr.msk.bf16.mxu1 %vm8422_vm11, %v13346_v9  ;;  %v10700_v44 = vld [vmem:[%s13169_s3 + $0x2b0] ss:$8 sps:$4 sm:$0xff]   ;;  %vm2836_vm1 = vcmp.eq.s32.totalorder %v9858_v19, %v10691_v2  ;;  %vm2835_vm11 = vcmp.eq.s32.totalorder %v9849_v13, %v10691_v2  ;;  %vm8236_vm3 = vmpackc.low %vm529_vm15, %vm521_vm14  ;;  %vm537_vm14 = vcmp.eq.s32.totalorder %v10389_v58, %v9853_v0 }
 0x10f   : > { %3569 = vmatpush1.bf16.msra.mxu1 %v10217_v1  ;;  %13360 = vst [vmem:[#allocation34_spill] sm:$0xff] %v10700_v44  ;;  %v10710_v1 = vld [vmem:[%s13169_s3 + $0x2c4] ss:$8 sps:$4 sm:$0xff]   ;;  %vm8426_vm7 = vmpackc.low %vm2836_vm1, %vm2828_vm0  ;;  %vm546_vm1 = vcmp.eq.s32.totalorder %v10319_v14, %v9864_v25 }
 0x110   : > { %8229 = vmatmul.mubr.msk.bf16.gmra.mrb[20].mxu0 %vm8228_vm12, %v13346_v9  ;;  %3570 = vmatprep.subr.bf16.mxu1 %v10234_v39  ;;  %13361 = vst [vmem:[#allocation35_spill] sm:$0xff] %v10710_v1  ;;  %v10730_v39 = vld [vmem:[%s13169_s3 + $0x2c0] ss:$8 sps:$4 sm:$0xff]   ;;  %vm8428_vm0 = vmpackc.low %vm2835_vm11, %vm2827_vm10  ;;  %vm545_vm10 = vcmp.eq.s32.totalorder %v10389_v58, %v9864_v25 }
 0x111   : > { %8231 = vmatprep.mubr.msk.bf16.mxu0 %vm8230_vm13, %v13346_v9  ;;  %2222 = vmatpush1.bf16.msra.mxu0 %v10678_v31 }
 0x112   : > { %2223 = vmatprep.subr.bf16.mxu0 %v10685_v34 }
 0x113   : > { %3571 = vmatpush1.bf16.msra.mxu1 %v10243_v42  ;;  %v10737_v42 = vld [vmem:[%s13169_s3 + $0x2d4] ss:$8 sps:$4 sm:$0xff]  }
 0x114   : > { %3572 = vmatprep.subr.bf16.mxu1 %v10269_v43  ;;  %v10741_v43 = vpop.permute.xlu0 %2668 }
 0x115   : > { %2224 = vmatpush1.bf16.msra.mxu0 %v10700_v44  ;;  %8425 = vmatmul.mubr.msk.bf16.gmra.mrb[56].mxu1 %vm8424_vm4, %v13346_v9  ;;  %v10743_v44 = vpop.permute.xlu1 %2671  ;;  %vm2844_vm12 = vcmp.eq.s32.totalorder %v9858_v19, %v10741_v43  ;;  %vm538_vm4 = vcmp.eq.s32.totalorder %v10319_v14, %v9853_v0  ;;  %vm2843_vm6 = vcmp.eq.s32.totalorder %v9849_v13, %v10741_v43 }
 0x116   : > { %2225 = vmatprep.subr.bf16.mxu0 %v10710_v1  ;;  %8427 = vmatprep.mubr.msk.bf16.mxu1 %vm8426_vm7, %v13346_v9  ;;  %v10752_v1 = vld [vmem:[%s13169_s3 + $0x2d0] ss:$8 sps:$4 sm:$0xff]   ;;  %vm2852_vm13 = vcmp.eq.s32.totalorder %v9858_v19, %v10743_v44  ;;  %vm8238_vm5 = vmpackc.low %vm546_vm1, %vm538_vm4  ;;  %vm2851_vm7 = vcmp.eq.s32.totalorder %v9849_v13, %v10743_v44 }
 0x117   : > { %3573 = vmatpush1.bf16.msra.mxu1 %v10283_v22  ;;  %13362 = vst [vmem:[#allocation36_spill] sm:$0xff] %v10752_v1  ;;  %v10762_v22 = vld [vmem:[%s13169_s3 + $0x2e4] ss:$8 sps:$4 sm:$0xff]   ;;  %vm8430_vm2 = vmpackc.low %vm2852_vm13, %vm2844_vm12  ;;  %vm554_vm12 = vcmp.eq.s32.totalorder %v10319_v14, %v9890_v36  ;;  %vm562_vm13 = vcmp.eq.s32.totalorder %v10319_v14, %v9892_v37 }
 0x118   : > { %8233 = vmatmul.mubr.msk.bf16.gmra.mrb[24].mxu0 %vm8232_vm8, %v13346_v9  ;;  %3574 = vmatprep.subr.bf16.mxu1 %v10300_v47  ;;  %13363 = vst [vmem:[#allocation37_spill] sm:$0xff] %v10762_v22  ;;  %v10780_v47 = vld [vmem:[%s13169_s3 + $0x2e0] ss:$8 sps:$4 sm:$0xff]   ;;  %vm8432_vm11 = vmpackc.low %vm2851_vm7, %vm2843_vm6  ;;  %vm553_vm6 = vcmp.eq.s32.totalorder %v10389_v58, %v9890_v36  ;;  %vm561_vm7 = vcmp.eq.s32.totalorder %v10389_v58, %v9892_v37 }
 0x119   : > { %8235 = vmatprep.mubr.msk.bf16.mxu0 %vm8234_vm9, %v13346_v9  ;;  %2226 = vmatpush1.bf16.msra.mxu0 %v10730_v39  ;;  %vm8242_vm1 = vmpackc.low %vm562_vm13, %vm554_vm12  ;;  %v13373_v37 = vld [vmem:[#allocation13_spill] sm:$0xff] }
 0x11a   : > { %2227 = vmatprep.subr.bf16.mxu0 %v10737_v42  ;;  %vm8244_vm12 = vmpackc.low %vm561_vm7, %vm553_vm6 }
 0x11b   : > { %3575 = vmatpush1.bf16.msra.mxu1 %v10309_v50  ;;  %v10787_v50 = vld [vmem:[%s13169_s3 + $0x2f4] ss:$8 sps:$4 sm:$0xff]  }
 0x11c   : > { %3576 = vmatprep.subr.bf16.mxu1 %v10342_v51  ;;  %v10793_v51 = vpop.permute.xlu0 %2674 }
 0x11d   : > { %2228 = vmatpush1.bf16.msra.mxu0 %v10752_v1  ;;  %8429 = vmatmul.mubr.msk.bf16.gmra.mrb[60].mxu1 %vm8428_vm0, %v13346_v9  ;;  %13364 = vst [vmem:[#allocation38_spill] sm:$0xff] %v10793_v51  ;;  %v10795_v1 = vpop.permute.xlu1 %2677  ;;  %vm2860_vm8 = vcmp.eq.s32.totalorder %v9858_v19, %v10793_v51  ;;  %vm8240_vm0 = vmpackc.low %vm545_vm10, %vm537_vm14 }
 0x11e   : > { %2229 = vmatprep.subr.bf16.mxu0 %v10762_v22  ;;  %8431 = vmatprep.mubr.msk.bf16.mxu1 %vm8430_vm2, %v13346_v9  ;;  %13365 = vst [vmem:[#allocation39_spill] sm:$0xff] %v10795_v1  ;;  %v10804_v22 = vld [vmem:[%s13169_s3 + $0x2f0] ss:$8 sps:$4 sm:$0xff]   ;;  %vm2868_vm9 = vcmp.eq.s32.totalorder %v9858_v19, %v10795_v1  ;;  %vm2859_vm2 = vcmp.eq.s32.totalorder %v9849_v13, %v10793_v51 }
 0x11f   : > { %3577 = vmatpush1.bf16.msra.mxu1 %v10356_v10  ;;  %13366 = vst [vmem:[#allocation40_spill] sm:$0xff] %v10804_v22  ;;  %v10814_v10 = vld [vmem:[%s13169_s3 + $0x304] ss:$8 sps:$4 sm:$0xff]   ;;  %vm8434_vm15 = vmpackc.low %vm2868_vm9, %vm2860_vm8  ;;  %vm570_vm9 = vcmp.eq.s32.totalorder %v10319_v14, %v9948_v53 }
 0x120   : > { %8237 = vmatmul.mubr.msk.bf16.gmra.mrb[28].mxu0 %vm8236_vm3, %v13346_v9  ;;  %3578 = vmatprep.subr.bf16.mxu1 %v10369_v32  ;;  %13367 = vst [vmem:[#allocation41_spill] sm:$0xff] %v10814_v10  ;;  %vm2867_vm3 = vcmp.eq.s32.totalorder %v9849_v13, %v10795_v1 }
 0x121   : > { %8239 = vmatprep.mubr.msk.bf16.mxu0 %vm8238_vm5, %v13346_v9  ;;  %2230 = vmatpush1.bf16.msra.mxu0 %v10780_v47  ;;  %v10836_v32 = vpop.permute.xlu1 %2683  ;;  %vm8436_vm8 = vmpackc.low %vm2867_vm3, %vm2859_vm2  ;;  %vm569_vm2 = vcmp.eq.s32.totalorder %v10389_v58, %v9948_v53 }
 0x122   : > { %2231 = vmatprep.subr.bf16.mxu0 %v10787_v50  ;;  %13369 = vst [vmem:[#allocation43_spill] sm:$0xff] %v10836_v32  ;;  %vm2884_vm5 = vcmp.eq.s32.totalorder %v9858_v19, %v10836_v32 }
 0x123   : > { %3579 = vmatpush1.bf16.msra.mxu1 %v10382_v56  ;;  %v10834_v56 = vpop.permute.xlu0 %2680 }
 0x124   : > { %3741 = vmatprep.subr.bf16.mxu1 %v10398_v59  ;;  %13368 = vst [vmem:[#allocation42_spill] sm:$0xff] %v10834_v56  ;;  %vm2876_vm4 = vcmp.eq.s32.totalorder %v9858_v19, %v10834_v56  ;;  %v13370_v59 = vld [vmem:[#allocation12_spill] sm:$0xff]  ;;  %vm2875_vm14 = vcmp.eq.s32.totalorder %v9849_v13, %v10834_v56  ;;  %v13374_v56 = vld [vmem:[#allocation14_spill] sm:$0xff] }
 0x125   : > { %2232 = vmatpush1.bf16.msra.mxu0 %v10804_v22  ;;  %8433 = vmatmul.mubr.msk.bf16.gmra.mrb[64].mxu1 %vm8432_vm11, %v13346_v9  ;;  %vm578_vm10 = vcmp.eq.s32.totalorder %v10319_v14, %v13370_v59  ;;  %vm8438_vm11 = vmpackc.low %vm2884_vm5, %vm2876_vm4  ;;  %v10860_v22 = vpop.permute.xlu1 %2689  ;;  %vm577_vm3 = vcmp.eq.s32.totalorder %v10389_v58, %v13370_v59  ;;  %vm586_vm5 = vcmp.eq.s32.totalorder %v10319_v14, %v13373_v37  ;;  %v13377_v59 = vld [vmem:[#allocation15_spill] sm:$0xff] }
 0x126   : > { %2394 = vmatprep.subr.bf16.mxu0 %v10814_v10  ;;  %8435 = vmatprep.mubr.msk.bf16.mxu1 %vm8434_vm15, %v13346_v9  ;;  %13372 = vst [vmem:[#allocation45_spill] sm:$0xff] %v10860_v22  ;;  %vm8246_vm13 = vmpackc.low %vm578_vm10, %vm570_vm9  ;;  %vm2883_vm15 = vcmp.eq.s32.totalorder %v9849_v13, %v10836_v32  ;;  %vm594_vm6 = vcmp.eq.s32.totalorder %v10319_v14, %v13374_v56 }
 0x127   : > { %v10858_v10 = vpop.permute.xlu0 %2686  ;;  %vm8440_vm4 = vmpackc.low %vm2883_vm15, %vm2875_vm14  ;;  %vm585_vm14 = vcmp.eq.s32.totalorder %v10389_v58, %v13373_v37  ;;  %vm593_vm15 = vcmp.eq.s32.totalorder %v10389_v58, %v13374_v56  ;;  %v13381_v56 = vld [vmem:[#allocation17_spill] sm:$0xff] }
 0x128   : > { %8241 = vmatmul.mubr.msk.bf16.gmra.mrb[32].mxu0 %vm8240_vm0, %v13346_v9  ;;  %13371 = vst [vmem:[#allocation44_spill] sm:$0xff] %v10858_v10  ;;  %vm2892_vm0 = vcmp.eq.s32.totalorder %v9858_v19, %v10858_v10  ;;  %vm8250_vm9 = vmpackc.low %vm594_vm6, %vm586_vm5  ;;  %vm2891_vm10 = vcmp.eq.s32.totalorder %v9849_v13, %v10858_v10  ;;  %v13378_v10 = vld [vmem:[#allocation16_spill] sm:$0xff] }
 0x129   : > { %8243 = vmatprep.mubr.msk.bf16.mxu0 %vm8242_vm1, %v13346_v9  ;;  %vm2900_vm1 = vcmp.eq.s32.totalorder %v9858_v19, %v10860_v22  ;;  %v10884_v36 = vpop.permute.xlu1 %2695 }
 0x12a   : > { %vm8442_vm7 = vmpackc.low %vm2900_vm1, %vm2892_vm0  ;;  %13376 = vst [vmem:[#allocation47_spill] sm:$0xff] %v10884_v36  ;;  %vm602_vm1 = vcmp.eq.s32.totalorder %v10319_v14, %v13377_v59 }
 0x12b   : > { %v10882_v32 = vpop.permute.xlu0 %2692 }
 0x12c   : > { %13375 = vst [vmem:[#allocation46_spill] sm:$0xff] %v10882_v32  ;;  %vm2907_vm6 = vcmp.eq.s32.totalorder %v9849_v13, %v10882_v32 }
 0x12d   : > { %8437 = vmatmul.mubr.msk.bf16.gmra.mrb[68].mxu1 %vm8436_vm8, %v13346_v9  ;;  %vm8248_vm8 = vmpackc.low %vm577_vm3, %vm569_vm2  ;;  %vm610_vm2 = vcmp.eq.s32.totalorder %v10319_v14, %v13378_v10  ;;  %v10908_v53 = vpop.permute.xlu1 %2701 }
 0x12e   : > { %8439 = vmatprep.mubr.msk.bf16.mxu1 %vm8438_vm11, %v13346_v9  ;;  %vm2899_vm11 = vcmp.eq.s32.totalorder %v9849_v13, %v10860_v22  ;;  %13380 = vst [vmem:[#allocation49_spill] sm:$0xff] %v10908_v53  ;;  %vm8254_vm5 = vmpackc.low %vm610_vm2, %vm602_vm1 }
 0x12f   : > { %vm8444_vm0 = vmpackc.low %vm2899_vm11, %vm2891_vm10  ;;  %v10906_v22 = vpop.permute.xlu0 %2698  ;;  %vm601_vm10 = vcmp.eq.s32.totalorder %v10389_v58, %v13377_v59  ;;  %vm609_vm11 = vcmp.eq.s32.totalorder %v10389_v58, %v13378_v10  ;;  %v13384_v10 = vld [vmem:[#allocation19_spill] sm:$0xff] }
 0x130   : > { %8245 = vmatmul.mubr.msk.bf16.gmra.mrb[36].mxu0 %vm8244_vm12, %v13346_v9  ;;  %vm2908_vm12 = vcmp.eq.s32.totalorder %v9858_v19, %v10882_v32  ;;  %13379 = vst [vmem:[#allocation48_spill] sm:$0xff] %v10906_v22  ;;  %v13382_v32 = vld [vmem:[#allocation18_spill] sm:$0xff]  ;;  %vm2923_vm2 = vcmp.eq.s32.totalorder %v9849_v13, %v10906_v22 }
 0x131   : > { %8247 = vmatprep.mubr.msk.bf16.mxu0 %vm8246_vm13, %v13346_v9  ;;  %vm2916_vm13 = vcmp.eq.s32.totalorder %v9858_v19, %v10884_v36  ;;  %v10932_v37 = vpop.permute.xlu1 %2707 }
 0x132   : > { %vm8446_vm3 = vmpackc.low %vm2916_vm13, %vm2908_vm12  ;;  %vm618_vm13 = vcmp.eq.s32.totalorder %v10319_v14, %v13381_v56 }
 0x135   : > { %8441 = vmatmul.mubr.msk.bf16.gmra.mrb[72].mxu1 %vm8440_vm4, %v13346_v9  ;;  %vm8252_vm4 = vmpackc.low %vm593_vm15, %vm585_vm14  ;;  %vm626_vm14 = vcmp.eq.s32.totalorder %v10319_v14, %v13382_v32  ;;  %v10956_v59 = vpop.permute.xlu1 %2713 }
 0x136   : > { %8443 = vmatprep.mubr.msk.bf16.mxu1 %vm8442_vm7, %v13346_v9  ;;  %vm2915_vm7 = vcmp.eq.s32.totalorder %v9849_v13, %v10884_v36  ;;  %v10930_v36 = vpop.permute.xlu0 %2704  ;;  %vm8258_vm1 = vmpackc.low %vm626_vm14, %vm618_vm13  ;;  %13387 = vst [vmem:[#allocation51_spill] sm:$0xff] %v10956_v59 }
 0x137   : > { %vm8448_vm12 = vmpackc.low %vm2915_vm7, %vm2907_vm6  ;;  %13383 = vst [vmem:[#allocation50_spill] sm:$0xff] %v10930_v36  ;;  %vm617_vm6 = vcmp.eq.s32.totalorder %v10389_v58, %v13381_v56  ;;  %vm625_vm7 = vcmp.eq.s32.totalorder %v10389_v58, %v13382_v32  ;;  %vm2939_vm14 = vcmp.eq.s32.totalorder %v9849_v13, %v10930_v36  ;;  %v13388_v32 = vld [vmem:[#allocation21_spill] sm:$0xff] }
 0x138   : > { %8249 = vmatmul.mubr.msk.bf16.gmra.mrb[40].mxu0 %vm8248_vm8, %v13346_v9  ;;  %vm2924_vm8 = vcmp.eq.s32.totalorder %v9858_v19, %v10906_v22  ;;  %v13385_v22 = vld [vmem:[#allocation20_spill] sm:$0xff] }
 0x139   : > { %8251 = vmatprep.mubr.msk.bf16.mxu0 %vm8250_vm9, %v13346_v9  ;;  %vm2932_vm9 = vcmp.eq.s32.totalorder %v9858_v19, %v10908_v53 }
 0x13a   : > { %vm8450_vm15 = vmpackc.low %vm2932_vm9, %vm2924_vm8  ;;  %vm634_vm9 = vcmp.eq.s32.totalorder %v10319_v14, %v13384_v10 }
 0x13d   : > { %8445 = vmatmul.mubr.msk.bf16.gmra.mrb[76].mxu1 %vm8444_vm0, %v13346_v9  ;;  %vm8256_vm0 = vmpackc.low %vm609_vm11, %vm601_vm10  ;;  %vm642_vm10 = vcmp.eq.s32.totalorder %v10319_v14, %v13385_v22 }
 0x13e   : > { %8447 = vmatprep.mubr.msk.bf16.mxu1 %vm8446_vm3, %v13346_v9  ;;  %vm2931_vm3 = vcmp.eq.s32.totalorder %v9849_v13, %v10908_v53  ;;  %v10954_v53 = vpop.permute.xlu0 %2710  ;;  %vm8262_vm13 = vmpackc.low %vm642_vm10, %vm634_vm9 }
 0x13f   : > { %vm8452_vm8 = vmpackc.low %vm2931_vm3, %vm2923_vm2  ;;  %13386 = vst [vmem:[#allocation19_spill] sm:$0xff] %v10954_v53  ;;  %vm633_vm2 = vcmp.eq.s32.totalorder %v10389_v58, %v13384_v10  ;;  %vm641_vm3 = vcmp.eq.s32.totalorder %v10389_v58, %v13385_v22  ;;  %vm2955_vm10 = vcmp.eq.s32.totalorder %v9849_v13, %v10954_v53  ;;  %v13390_v22 = vld [vmem:[#allocation23_spill] sm:$0xff] }
 0x140   : > { %8253 = vmatmul.mubr.msk.bf16.gmra.mrb[44].mxu0 %vm8252_vm4, %v13346_v9  ;;  %vm2940_vm4 = vcmp.eq.s32.totalorder %v9858_v19, %v10930_v36  ;;  %v13389_v36 = vld [vmem:[#allocation22_spill] sm:$0xff] }
 0x141   : > { %8255 = vmatprep.mubr.msk.bf16.mxu0 %vm8254_vm5, %v13346_v9  ;;  %vm2948_vm5 = vcmp.eq.s32.totalorder %v9858_v19, %v10932_v37 }
 0x142   : > { %vm8454_vm11 = vmpackc.low %vm2948_vm5, %vm2940_vm4  ;;  %vm650_vm5 = vcmp.eq.s32.totalorder %v10319_v14, %v13388_v32 }
 0x145   : > { %8449 = vmatmul.mubr.msk.bf16.gmra.mrb[80].mxu1 %vm8448_vm12, %v13346_v9  ;;  %vm8260_vm12 = vmpackc.low %vm625_vm7, %vm617_vm6  ;;  %vm658_vm6 = vcmp.eq.s32.totalorder %v10319_v14, %v13389_v36 }
 0x146   : > { %8451 = vmatprep.mubr.msk.bf16.mxu1 %vm8450_vm15, %v13346_v9  ;;  %vm2947_vm15 = vcmp.eq.s32.totalorder %v9849_v13, %v10932_v37  ;;  %vm8266_vm9 = vmpackc.low %vm658_vm6, %vm650_vm5  ;;  %vm2717_vm6 = vcmp.eq.s32.totalorder %v10389_v58, %v10345_v54 }
 0x147   : > { %vm8456_vm4 = vmpackc.low %vm2947_vm15, %vm2939_vm14  ;;  %vm649_vm14 = vcmp.eq.s32.totalorder %v10389_v58, %v13388_v32  ;;  %vm657_vm15 = vcmp.eq.s32.totalorder %v10389_v58, %v13389_v36  ;;  %v11004_v36 = vadd.s32 512, %v9849_v13 }
 0x148   : > { %8257 = vmatmul.mubr.msk.bf16.gmra.mrb[48].mxu0 %vm8256_vm0, %v13346_v9  ;;  %vm2956_vm0 = vcmp.eq.s32.totalorder %v9858_v19, %v10954_v53  ;;  %v13391_v53 = vld [vmem:[#allocation7_spill] sm:$0xff] }
 0x149   : > { %8259 = vmatprep.mubr.msk.bf16.mxu0 %vm8258_vm1, %v13346_v9  ;;  %vm2964_vm1 = vcmp.eq.s32.totalorder %v9858_v19, %v10956_v59  ;;  %v10985_v19 = vadd.s32 640, %v9849_v13 }
 0x14a   : > { %vm8458_vm7 = vmpackc.low %vm2964_vm1, %vm2956_vm0 }
 0x14b   : > { %vm412_vm1 = vcmp.eq.s32.totalorder %v10985_v19, %v13391_v53 }
 0x14d   : > { %8453 = vmatmul.mubr.msk.bf16.gmra.mrb[84].mxu1 %vm8452_vm8, %v13346_v9  ;;  %vm8264_vm8 = vmpackc.low %vm641_vm3, %vm633_vm2 }
 0x14e   : > { %8455 = vmatprep.mubr.msk.bf16.mxu1 %vm8454_vm11, %v13346_v9  ;;  %vm2963_vm11 = vcmp.eq.s32.totalorder %v9849_v13, %v10956_v59  ;;  %v13392_v59 = vld [vmem:[#allocation8_spill] sm:$0xff] }
 0x14f   : > { %vm8460_vm0 = vmpackc.low %vm2963_vm11, %vm2955_vm10  ;;  %vm420_vm2 = vcmp.eq.s32.totalorder %v10985_v19, %v13392_v59  ;;  %vm411_vm10 = vcmp.eq.s32.totalorder %v11004_v36, %v13391_v53  ;;  %vm419_vm11 = vcmp.eq.s32.totalorder %v11004_v36, %v13392_v59  ;;  %v11031_v53 = vld [vmem:[%s13169_s3 + $0x314] ss:$8 sps:$4 sm:$0xff]   ;;  %v11042_v59 = vld [vmem:[%s13169_s3 + $0x310] ss:$8 sps:$4 sm:$0xff]  }
 0x150   : > { %8261 = vmatmul.mubr.msk.bf16.gmra.mrb[52].mxu0 %vm8260_vm12, %v13346_v9  ;;  %vm2718_vm12 = vcmp.eq.s32.totalorder %v10319_v14, %v10345_v54  ;;  %vm8270_vm5 = vmpackc.low %vm420_vm2, %vm412_vm1  ;;  %13393 = vst [vmem:[#allocation21_spill] sm:$0xff] %v11031_v53  ;;  %vm2733_vm2 = vcmp.eq.s32.totalorder %v10389_v58, %v10377_v55 }
 0x151   : > { %8263 = vmatprep.mubr.msk.bf16.mxu0 %vm8262_vm13, %v13346_v9  ;;  %vm2726_vm13 = vcmp.eq.s32.totalorder %v10319_v14, %v13390_v22 }
 0x152   : > { %vm8462_vm3 = vmpackc.low %vm2726_vm13, %vm2718_vm12  ;;  %vm428_vm13 = vcmp.eq.s32.totalorder %v10985_v19, %v9916_v48 }
 0x155   : > { %8457 = vmatmul.mubr.msk.bf16.gmra.mrb[88].mxu1 %vm8456_vm4, %v13346_v9  ;;  %vm8268_vm4 = vmpackc.low %vm657_vm15, %vm649_vm14  ;;  %vm436_vm14 = vcmp.eq.s32.totalorder %v10985_v19, %v9918_v49 }
 0x156   : > { %8459 = vmatprep.mubr.msk.bf16.mxu1 %vm8458_vm7, %v13346_v9  ;;  %vm2725_vm7 = vcmp.eq.s32.totalorder %v10389_v58, %v13390_v22  ;;  %v11025_v22 = vld [vmem:[%s13169_s3 + $0x300] ss:$8 sps:$4 sm:$0xff]   ;;  %vm8274_vm1 = vmpackc.low %vm436_vm14, %vm428_vm13  ;;  %vm2749_vm14 = vcmp.eq.s32.totalorder %v10389_v58, %v10429_v28 }
 0x157   : > { %vm8464_vm12 = vmpackc.low %vm2725_vm7, %vm2717_vm6  ;;  %vm427_vm6 = vcmp.eq.s32.totalorder %v11004_v36, %v9916_v48  ;;  %vm435_vm7 = vcmp.eq.s32.totalorder %v11004_v36, %v9918_v49 }
 0x158   : > { %8265 = vmatmul.mubr.msk.bf16.gmra.mrb[56].mxu0 %vm8264_vm8, %v13346_v9  ;;  %vm2734_vm8 = vcmp.eq.s32.totalorder %v10319_v14, %v10377_v55 }
 0x159   : > { %8267 = vmatprep.mubr.msk.bf16.mxu0 %vm8266_vm9, %v13346_v9  ;;  %vm2742_vm9 = vcmp.eq.s32.totalorder %v10319_v14, %v10384_v46 }
 0x15a   : > { %vm8466_vm15 = vmpackc.low %vm2742_vm9, %vm2734_vm8  ;;  %vm444_vm9 = vcmp.eq.s32.totalorder %v10985_v19, %v9975_v60 }
 0x15d   : > { %8461 = vmatmul.mubr.msk.bf16.gmra.mrb[92].mxu1 %vm8460_vm0, %v13346_v9  ;;  %vm8272_vm0 = vmpackc.low %vm419_vm11, %vm411_vm10  ;;  %vm452_vm10 = vcmp.eq.s32.totalorder %v10985_v19, %v9982_v6 }
 0x15e   : > { %8463 = vmatprep.mubr.msk.bf16.mxu1 %vm8462_vm3, %v13346_v9  ;;  %vm2741_vm3 = vcmp.eq.s32.totalorder %v10389_v58, %v10384_v46  ;;  %vm8278_vm13 = vmpackc.low %vm452_vm10, %vm444_vm9  ;;  %vm2765_vm10 = vcmp.eq.s32.totalorder %v10389_v58, %v10481_v3 }
 0x15f   : > { %vm8468_vm8 = vmpackc.low %vm2741_vm3, %vm2733_vm2  ;;  %vm443_vm2 = vcmp.eq.s32.totalorder %v11004_v36, %v9975_v60  ;;  %vm451_vm3 = vcmp.eq.s32.totalorder %v11004_v36, %v9982_v6 }
 0x160   : > { %8269 = vmatmul.mubr.msk.bf16.gmra.mrb[60].mxu0 %vm8268_vm4, %v13346_v9  ;;  %vm2750_vm4 = vcmp.eq.s32.totalorder %v10319_v14, %v10429_v28 }
 0x161   : > { %8271 = vmatprep.mubr.msk.bf16.mxu0 %vm8270_vm5, %v13346_v9  ;;  %vm2758_vm5 = vcmp.eq.s32.totalorder %v10319_v14, %v10432_v18 }
 0x162   : > { %vm8470_vm11 = vmpackc.low %vm2758_vm5, %vm2750_vm4  ;;  %vm460_vm5 = vcmp.eq.s32.totalorder %v10985_v19, %v10040_v24 }
 0x165   : > { %8465 = vmatmul.mubr.msk.bf16.vlgmr.msra.gmra.mrb[32].mxu1 %vm8464_vm12, %v13346_v9  ;;  %vm8276_vm12 = vmpackc.low %vm435_vm7, %vm427_vm6  ;;  %vm468_vm6 = vcmp.eq.s32.totalorder %v10985_v19, %v10047_v29 }
 0x166   : > { %3742 = vmatpush1.bf16.msra.mxu1 %v10418_v62  ;;  %8467 = vmatprep.mubr.msk.bf16.mxu1 %vm8466_vm15, %v13346_v9  ;;  %v11052_v62 = vld [vmem:[%s13169_s3 + $0x324] ss:$8 sps:$4 sm:$0xff]   ;;  %vm2757_vm15 = vcmp.eq.s32.totalorder %v10389_v58, %v10432_v18  ;;  %vm8282_vm9 = vmpackc.low %vm468_vm6, %vm460_vm5  ;;  %vm2781_vm6 = vcmp.eq.s32.totalorder %v10389_v58, %v10533_v11 }
 0x167   : > { %3743 = vmatprep.subr.bf16.mxu1 %v10425_v63  ;;  %13394 = vst [vmem:[#allocation52_spill] sm:$0xff] %v11052_v62  ;;  %v13395_v63 = vld [vmem:[#allocation24_spill] sm:$0xff]  ;;  %vm8472_vm4 = vmpackc.low %vm2757_vm15, %vm2749_vm14  ;;  %vm459_vm14 = vcmp.eq.s32.totalorder %v11004_v36, %v10040_v24  ;;  %vm467_vm15 = vcmp.eq.s32.totalorder %v11004_v36, %v10047_v29 }
 0x168   : > { %8273 = vmatmul.mubr.msk.bf16.vlgmr.msra.gmra.mrb[0].mxu0 %vm8272_vm0, %v13346_v9  ;;  %vm2766_vm0 = vcmp.eq.s32.totalorder %v10319_v14, %v10481_v3 }
 0x169   : > { %8275 = vmatprep.mubr.msk.bf16.mxu0 %vm8274_vm1, %v13346_v9  ;;  %2395 = vmatpush1.bf16.msra.mxu0 %v11025_v22  ;;  %vm2774_vm1 = vcmp.eq.s32.totalorder %v10319_v14, %v10483_v4 }
 0x16a   : > { %2396 = vmatprep.subr.bf16.mxu0 %v11031_v53  ;;  %3744 = vmatpush1.bf16.msra.mxu1 %v13395_v63  ;;  %v13396_v53 = vld [vmem:[#allocation25_spill] sm:$0xff]  ;;  %vm8474_vm7 = vmpackc.low %vm2774_vm1, %vm2766_vm0  ;;  %vm476_vm1 = vcmp.eq.s32.totalorder %v10985_v19, %v10106_v8 }
 0x16b   : > { %3745 = vmatprep.subr.bf16.mxu1 %v13396_v53  ;;  %v11072_v63 = vld [vmem:[%s13169_s3 + $0x320] ss:$8 sps:$4 sm:$0xff]   ;;  %v11079_v53 = vld [vmem:[%s13169_s3 + $0x334] ss:$8 sps:$4 sm:$0xff]  }
 0x16c   : > { %13397 = vst [vmem:[#allocation24_spill] sm:$0xff] %v11072_v63  ;;  %13398 = vst [vmem:[#allocation25_spill] sm:$0xff] %v11079_v53 }
 0x16d   : > { %2397 = vmatpush1.bf16.msra.mxu0 %v11042_v59  ;;  %8469 = vmatmul.mubr.msk.bf16.gmra.mrb[36].mxu1 %vm8468_vm8, %v13346_v9  ;;  %vm8280_vm8 = vmpackc.low %vm451_vm3, %vm443_vm2  ;;  %vm484_vm2 = vcmp.eq.s32.totalorder %v10985_v19, %v10113_v17 }
 0x16e   : > { %2398 = vmatprep.subr.bf16.mxu0 %v11052_v62  ;;  %8471 = vmatprep.mubr.msk.bf16.mxu1 %vm8470_vm11, %v13346_v9  ;;  %v11090_v62 = vld [vmem:[%s13169_s3 + $0x330] ss:$8 sps:$4 sm:$0xff]   ;;  %vm2773_vm11 = vcmp.eq.s32.totalorder %v10389_v58, %v10483_v4  ;;  %vm8286_vm5 = vmpackc.low %vm484_vm2, %vm476_vm1  ;;  %vm2797_vm2 = vcmp.eq.s32.totalorder %v10389_v58, %v10585_v21 }
 0x16f   : > { %3746 = vmatpush1.bf16.msra.mxu1 %v10470_v41  ;;  %13399 = vst [vmem:[#allocation53_spill] sm:$0xff] %v11090_v62  ;;  %v11100_v41 = vld [vmem:[%s13169_s3 + $0x344] ss:$8 sps:$4 sm:$0xff]   ;;  %vm8476_vm0 = vmpackc.low %vm2773_vm11, %vm2765_vm10  ;;  %vm475_vm10 = vcmp.eq.s32.totalorder %v11004_v36, %v10106_v8  ;;  %vm483_vm11 = vcmp.eq.s32.totalorder %v11004_v36, %v10113_v17 }
 0x170   : > { %8277 = vmatmul.mubr.msk.bf16.gmra.mrb[4].mxu0 %vm8276_vm12, %v13346_v9  ;;  %3747 = vmatprep.subr.bf16.mxu1 %v10477_v45  ;;  %13400 = vst [vmem:[#allocation54_spill] sm:$0xff] %v11100_v41  ;;  %v13401_v45 = vld [vmem:[#allocation26_spill] sm:$0xff]  ;;  %vm2782_vm12 = vcmp.eq.s32.totalorder %v10319_v14, %v10533_v11 }
 0x171   : > { %8279 = vmatprep.mubr.msk.bf16.mxu0 %vm8278_vm13, %v13346_v9  ;;  %2399 = vmatpush1.bf16.msra.mxu0 %v11072_v63  ;;  %vm2790_vm13 = vcmp.eq.s32.totalorder %v10319_v14, %v10535_v33 }
 0x172   : > { %2400 = vmatprep.subr.bf16.mxu0 %v11079_v53  ;;  %v13402_v53 = vld [vmem:[#allocation27_spill] sm:$0xff]  ;;  %vm8478_vm3 = vmpackc.low %vm2790_vm13, %vm2782_vm12  ;;  %vm492_vm13 = vcmp.eq.s32.totalorder %v10985_v19, %v10172_v40 }
 0x173   : > { %3748 = vmatpush1.bf16.msra.mxu1 %v13401_v45  ;;  %v11120_v45 = vld [vmem:[%s13169_s3 + $0x340] ss:$8 sps:$4 sm:$0xff]  }
 0x174   : > { %3749 = vmatprep.subr.bf16.mxu1 %v13402_v53  ;;  %v11127_v53 = vld [vmem:[%s13169_s3 + $0x354] ss:$8 sps:$4 sm:$0xff]  }
 0x175   : > { %2401 = vmatpush1.bf16.msra.mxu0 %v11090_v62  ;;  %8473 = vmatmul.mubr.msk.bf16.gmra.mrb[40].mxu1 %vm8472_vm4, %v13346_v9  ;;  %13403 = vst [vmem:[#allocation26_spill] sm:$0xff] %v11127_v53  ;;  %vm8284_vm4 = vmpackc.low %vm467_vm15, %vm459_vm14  ;;  %vm500_vm14 = vcmp.eq.s32.totalorder %v10985_v19, %v10179_v7 }
 0x176   : > { %2402 = vmatprep.subr.bf16.mxu0 %v11100_v41  ;;  %8475 = vmatprep.mubr.msk.bf16.mxu1 %vm8474_vm7, %v13346_v9  ;;  %v11140_v41 = vld [vmem:[%s13169_s3 + $0x350] ss:$8 sps:$4 sm:$0xff]   ;;  %vm2789_vm7 = vcmp.eq.s32.totalorder %v10389_v58, %v10535_v33  ;;  %vm8290_vm1 = vmpackc.low %vm500_vm14, %vm492_vm13  ;;  %vm2813_vm14 = vcmp.eq.s32.totalorder %v10389_v58, %v10637_v27 }
 0x177   : > { %3750 = vmatpush1.bf16.msra.mxu1 %v10522_v5  ;;  %v11152_v5 = vld [vmem:[%s13169_s3 + $0x364] ss:$8 sps:$4 sm:$0xff]   ;;  %vm8480_vm12 = vmpackc.low %vm2789_vm7, %vm2781_vm6  ;;  %vm491_vm6 = vcmp.eq.s32.totalorder %v11004_v36, %v10172_v40  ;;  %vm499_vm7 = vcmp.eq.s32.totalorder %v11004_v36, %v10179_v7 }
 0x178   : > { %8281 = vmatmul.mubr.msk.bf16.gmra.mrb[8].mxu0 %vm8280_vm8, %v13346_v9  ;;  %3751 = vmatprep.subr.bf16.mxu1 %v10529_v61  ;;  %v11134_v62 = vpop.f32.mrb[0].mxu1  ;;  %13406 = vst [vmem:[#allocation56_spill] sm:$0xff] %v11152_v5  ;;  %vm2798_vm8 = vcmp.eq.s32.totalorder %v10319_v14, %v10585_v21 }
 0x179   : > { %8283 = vmatprep.mubr.msk.bf16.mxu0 %vm8282_vm9, %v13346_v9  ;;  %13404 = vst [vmem:[#allocation27_spill] sm:$0xff] %v11134_v62  ;;  %2403 = vmatpush1.bf16.msra.mxu0 %v11120_v45  ;;  %v11142_v63 = vpop.f32.mrb[1].mxu1  ;;  %vm2806_vm9 = vcmp.eq.s32.totalorder %v10319_v14, %v10587_v52 }
 0x17a   : > { %13405 = vst [vmem:[#allocation55_spill] sm:$0xff] %v11142_v63  ;;  %2404 = vmatprep.subr.bf16.mxu0 %v11127_v53  ;;  %v11154_v61 = vpop.f32.mrb[2].mxu1  ;;  %v13408_v63 = vld [vmem:[#allocation28_spill] sm:$0xff]  ;;  %v13410_v53 = vld [vmem:[#allocation29_spill] sm:$0xff]  ;;  %vm8482_vm15 = vmpackc.low %vm2806_vm9, %vm2798_vm8  ;;  %vm508_vm9 = vcmp.eq.s32.totalorder %v10985_v19, %v10238_v57 }
 0x17b   : > { %13407 = vst [vmem:[#allocation57_spill] sm:$0xff] %v11154_v61  ;;  %3752 = vmatpush1.bf16.msra.mxu1 %v13408_v63  ;;  %v11161_v62 = vpop.f32.mrb[3].mxu1  ;;  %v11176_v63 = vld [vmem:[%s13169_s3 + $0x360] ss:$8 sps:$4 sm:$0xff]   ;;  %v11196_v61 = vld [vmem:[%s13169_s3 + $0x370] ss:$8 sps:$4 sm:$0xff]  }
 0x17c   : > { %13409 = vst [vmem:[#allocation28_spill] sm:$0xff] %v11161_v62  ;;  %3753 = vmatprep.subr.bf16.mxu1 %v13410_v53  ;;  %v11183_v53 = vld [vmem:[%s13169_s3 + $0x374] ss:$8 sps:$4 sm:$0xff]  }
 0x17d   : > { %2405 = vmatpush1.bf16.msra.mxu0 %v11140_v41  ;;  %8477 = vmatmul.mubr.msk.bf16.gmra.mrb[44].mxu1 %vm8476_vm0, %v13346_v9  ;;  %13411 = vst [vmem:[#allocation29_spill] sm:$0xff] %v11183_v53  ;;  %vm8288_vm0 = vmpackc.low %vm483_vm11, %vm475_vm10  ;;  %vm516_vm10 = vcmp.eq.s32.totalorder %v10985_v19, %v10245_v30 }
 0x17e   : > { %2406 = vmatprep.subr.bf16.mxu0 %v11152_v5  ;;  %8479 = vmatprep.mubr.msk.bf16.mxu1 %vm8478_vm3, %v13346_v9  ;;  %vm2805_vm3 = vcmp.eq.s32.totalorder %v10389_v58, %v10587_v52  ;;  %vm8294_vm13 = vmpackc.low %vm516_vm10, %vm508_vm9  ;;  %vm2829_vm10 = vcmp.eq.s32.totalorder %v10389_v58, %v10689_v35 }
 0x17f   : > { %3754 = vmatpush1.bf16.msra.mxu1 %v10574_v15  ;;  %v11208_v15 = vld [vmem:[%s13169_s3 + $0x384] ss:$8 sps:$4 sm:$0xff]   ;;  %vm8484_vm8 = vmpackc.low %vm2805_vm3, %vm2797_vm2  ;;  %vm507_vm2 = vcmp.eq.s32.totalorder %v11004_v36, %v10238_v57  ;;  %vm515_vm3 = vcmp.eq.s32.totalorder %v11004_v36, %v10245_v30 }
 0x180   : > { %8285 = vmatmul.mubr.msk.bf16.gmra.mrb[12].mxu0 %vm8284_vm4, %v13346_v9  ;;  %3755 = vmatprep.subr.bf16.mxu1 %v10581_v16  ;;  %v11190_v62 = vpop.f32.mrb[4].mxu1  ;;  %13414 = vst [vmem:[#allocation60_spill] sm:$0xff] %v11208_v15  ;;  %vm2814_vm4 = vcmp.eq.s32.totalorder %v10319_v14, %v10637_v27 }
 0x181   : > { %8287 = vmatprep.mubr.msk.bf16.mxu0 %vm8286_vm5, %v13346_v9  ;;  %13412 = vst [vmem:[#allocation58_spill] sm:$0xff] %v11190_v62  ;;  %2407 = vmatpush1.bf16.msra.mxu0 %v11176_v63  ;;  %v11198_v5 = vpop.f32.mrb[5].mxu1  ;;  %vm2822_vm5 = vcmp.eq.s32.totalorder %v10319_v14, %v10639_v12 }
 0x182   : > { %13413 = vst [vmem:[#allocation59_spill] sm:$0xff] %v11198_v5  ;;  %2408 = vmatprep.subr.bf16.mxu0 %v11183_v53  ;;  %v11210_v16 = vpop.f32.mrb[6].mxu1  ;;  %v13416_v5 = vld [vmem:[#allocation30_spill] sm:$0xff]  ;;  %v13418_v53 = vld [vmem:[#allocation31_spill] sm:$0xff]  ;;  %vm8486_vm11 = vmpackc.low %vm2822_vm5, %vm2814_vm4  ;;  %vm524_vm5 = vcmp.eq.s32.totalorder %v10985_v19, %v10304_v20 }
 0x183   : > { %13415 = vst [vmem:[#allocation61_spill] sm:$0xff] %v11210_v16  ;;  %3756 = vmatpush1.bf16.msra.mxu1 %v13416_v5  ;;  %v11217_v62 = vpop.f32.mrb[7].mxu1  ;;  %v11232_v5 = vld [vmem:[%s13169_s3 + $0x380] ss:$8 sps:$4 sm:$0xff]   ;;  %v11252_v16 = vld [vmem:[%s13169_s3 + $0x390] ss:$8 sps:$4 sm:$0xff]  }
 0x184   : > { %13417 = vst [vmem:[#allocation30_spill] sm:$0xff] %v11217_v62  ;;  %3757 = vmatprep.subr.bf16.mxu1 %v13418_v53  ;;  %v11239_v53 = vld [vmem:[%s13169_s3 + $0x394] ss:$8 sps:$4 sm:$0xff]  }
 0x185   : > { %2409 = vmatpush1.bf16.msra.mxu0 %v11196_v61  ;;  %8481 = vmatmul.mubr.msk.bf16.gmra.mrb[48].mxu1 %vm8480_vm12, %v13346_v9  ;;  %13419 = vst [vmem:[#allocation31_spill] sm:$0xff] %v11239_v53  ;;  %vm8292_vm12 = vmpackc.low %vm499_vm7, %vm491_vm6  ;;  %vm532_vm6 = vcmp.eq.s32.totalorder %v10985_v19, %v10311_v38 }
 0x186   : > { %2410 = vmatprep.subr.bf16.mxu0 %v11208_v15  ;;  %8483 = vmatprep.mubr.msk.bf16.mxu1 %vm8482_vm15, %v13346_v9  ;;  %vm2821_vm15 = vcmp.eq.s32.totalorder %v10389_v58, %v10639_v12  ;;  %vm8298_vm9 = vmpackc.low %vm532_vm6, %vm524_vm5  ;;  %vm2845_vm6 = vcmp.eq.s32.totalorder %v10389_v58, %v10741_v43 }
 0x187   : > { %3758 = vmatpush1.bf16.msra.mxu1 %v10626_v23  ;;  %v11264_v23 = vld [vmem:[%s13169_s3 + $0x3a4] ss:$8 sps:$4 sm:$0xff]   ;;  %vm8488_vm4 = vmpackc.low %vm2821_vm15, %vm2813_vm14  ;;  %vm523_vm14 = vcmp.eq.s32.totalorder %v11004_v36, %v10304_v20  ;;  %vm531_vm15 = vcmp.eq.s32.totalorder %v11004_v36, %v10311_v38 }
 0x188   : > { %8289 = vmatmul.mubr.msk.bf16.gmra.mrb[16].mxu0 %vm8288_vm0, %v13346_v9  ;;  %3759 = vmatprep.subr.bf16.mxu1 %v10633_v26  ;;  %v11246_v62 = vpop.f32.mrb[8].mxu1  ;;  %13422 = vst [vmem:[#allocation64_spill] sm:$0xff] %v11264_v23  ;;  %vm2830_vm0 = vcmp.eq.s32.totalorder %v10319_v14, %v10689_v35 }
 0x189   : > { %8291 = vmatprep.mubr.msk.bf16.mxu0 %vm8290_vm1, %v13346_v9  ;;  %13420 = vst [vmem:[#allocation62_spill] sm:$0xff] %v11246_v62  ;;  %2411 = vmatpush1.bf16.msra.mxu0 %v11232_v5  ;;  %v11254_v15 = vpop.f32.mrb[9].mxu1  ;;  %vm2838_vm1 = vcmp.eq.s32.totalorder %v10319_v14, %v10691_v2 }
 0x18a   : > { %13421 = vst [vmem:[#allocation63_spill] sm:$0xff] %v11254_v15  ;;  %2412 = vmatprep.subr.bf16.mxu0 %v11239_v53  ;;  %v11266_v26 = vpop.f32.mrb[10].mxu1  ;;  %v13424_v15 = vld [vmem:[#allocation32_spill] sm:$0xff]  ;;  %v13426_v53 = vld [vmem:[#allocation33_spill] sm:$0xff]  ;;  %vm8490_vm7 = vmpackc.low %vm2838_vm1, %vm2830_vm0  ;;  %vm548_vm1 = vcmp.eq.s32.totalorder %v10985_v19, %v9864_v25 }
 0x18b   : > { %13423 = vst [vmem:[#allocation65_spill] sm:$0xff] %v11266_v26  ;;  %3760 = vmatpush1.bf16.msra.mxu1 %v13424_v15  ;;  %v11273_v62 = vpop.f32.mrb[11].mxu1  ;;  %v11288_v15 = vld [vmem:[%s13169_s3 + $0x3a0] ss:$8 sps:$4 sm:$0xff]   ;;  %v11308_v26 = vld [vmem:[%s13169_s3 + $0x3b0] ss:$8 sps:$4 sm:$0xff]  }
 0x18c   : > { %13425 = vst [vmem:[#allocation32_spill] sm:$0xff] %v11273_v62  ;;  %3761 = vmatprep.subr.bf16.mxu1 %v13426_v53  ;;  %v11295_v53 = vld [vmem:[%s13169_s3 + $0x3b4] ss:$8 sps:$4 sm:$0xff]  }
 0x18d   : > { %2413 = vmatpush1.bf16.msra.mxu0 %v11252_v16  ;;  %8485 = vmatmul.mubr.msk.bf16.gmra.mrb[52].mxu1 %vm8484_vm8, %v13346_v9  ;;  %13427 = vst [vmem:[#allocation33_spill] sm:$0xff] %v11295_v53  ;;  %vm8296_vm8 = vmpackc.low %vm515_vm3, %vm507_vm2 }
 0x18e   : > { %2414 = vmatprep.subr.bf16.mxu0 %v11264_v23  ;;  %8487 = vmatprep.mubr.msk.bf16.mxu1 %vm8486_vm11, %v13346_v9  ;;  %vm2837_vm11 = vcmp.eq.s32.totalorder %v10389_v58, %v10691_v2  ;;  %vm8300_vm3 = vmpackc.low %vm531_vm15, %vm523_vm14  ;;  %vm539_vm14 = vcmp.eq.s32.totalorder %v11004_v36, %v9853_v0 }
 0x18f   : > { %3762 = vmatpush1.bf16.msra.mxu1 %v10678_v31  ;;  %v11320_v31 = vld [vmem:[%s13169_s3 + $0x3c4] ss:$8 sps:$4 sm:$0xff]   ;;  %vm8492_vm0 = vmpackc.low %vm2837_vm11, %vm2829_vm10  ;;  %vm547_vm10 = vcmp.eq.s32.totalorder %v11004_v36, %v9864_v25 }
 0x190   : > { %8293 = vmatmul.mubr.msk.bf16.gmra.mrb[20].mxu0 %vm8292_vm12, %v13346_v9  ;;  %3763 = vmatprep.subr.bf16.mxu1 %v10685_v34  ;;  %v11302_v62 = vpop.f32.mrb[12].mxu1  ;;  %13430 = vst [vmem:[#allocation68_spill] sm:$0xff] %v11320_v31  ;;  %vm2846_vm12 = vcmp.eq.s32.totalorder %v10319_v14, %v10741_v43 }
 0x191   : > { %8295 = vmatprep.mubr.msk.bf16.mxu0 %vm8294_vm13, %v13346_v9  ;;  %13428 = vst [vmem:[#allocation66_spill] sm:$0xff] %v11302_v62  ;;  %2415 = vmatpush1.bf16.msra.mxu0 %v11288_v15  ;;  %v11310_v23 = vpop.f32.mrb[13].mxu1  ;;  %vm2854_vm13 = vcmp.eq.s32.totalorder %v10319_v14, %v10743_v44 }
 0x192   : > { %13429 = vst [vmem:[#allocation67_spill] sm:$0xff] %v11310_v23  ;;  %2416 = vmatprep.subr.bf16.mxu0 %v11295_v53  ;;  %v11322_v34 = vpop.f32.mrb[14].mxu1  ;;  %v13432_v23 = vld [vmem:[#allocation34_spill] sm:$0xff]  ;;  %v13434_v53 = vld [vmem:[#allocation35_spill] sm:$0xff]  ;;  %vm8494_vm2 = vmpackc.low %vm2854_vm13, %vm2846_vm12 }
 0x193   : > { %13431 = vst [vmem:[#allocation69_spill] sm:$0xff] %v11322_v34  ;;  %3764 = vmatpush1.bf16.msra.mxu1 %v13432_v23  ;;  %v11329_v62 = vpop.f32.mrb[15].mxu1  ;;  %v11344_v23 = vld [vmem:[%s13169_s3 + $0x3c0] ss:$8 sps:$4 sm:$0xff]   ;;  %v11364_v34 = vld [vmem:[%s13169_s3 + $0x3d0] ss:$8 sps:$4 sm:$0xff]  }
 0x194   : > { %13433 = vst [vmem:[#allocation34_spill] sm:$0xff] %v11329_v62  ;;  %3765 = vmatprep.subr.bf16.mxu1 %v13434_v53  ;;  %v11351_v53 = vld [vmem:[%s13169_s3 + $0x3d4] ss:$8 sps:$4 sm:$0xff]  }
 0x195   : > { %2417 = vmatpush1.bf16.msra.mxu0 %v11308_v26  ;;  %8489 = vmatmul.mubr.msk.bf16.gmra.mrb[56].mxu1 %vm8488_vm4, %v13346_v9  ;;  %13435 = vst [vmem:[#allocation35_spill] sm:$0xff] %v11351_v53  ;;  %vm540_vm4 = vcmp.eq.s32.totalorder %v10985_v19, %v9853_v0 }
 0x196   : > { %2418 = vmatprep.subr.bf16.mxu0 %v11320_v31  ;;  %8491 = vmatprep.mubr.msk.bf16.mxu1 %vm8490_vm7, %v13346_v9  ;;  %vm8302_vm5 = vmpackc.low %vm548_vm1, %vm540_vm4  ;;  %vm2853_vm7 = vcmp.eq.s32.totalorder %v10389_v58, %v10743_v44 }
 0x197   : > { %3766 = vmatpush1.bf16.msra.mxu1 %v10730_v39  ;;  %v11376_v39 = vld [vmem:[%s13169_s3 + $0x3e4] ss:$8 sps:$4 sm:$0xff]   ;;  %vm8496_vm11 = vmpackc.low %vm2853_vm7, %vm2845_vm6 }
 0x198   : > { %8297 = vmatmul.mubr.msk.bf16.gmra.mrb[24].mxu0 %vm8296_vm8, %v13346_v9  ;;  %3767 = vmatprep.subr.bf16.mxu1 %v10737_v42  ;;  %v11358_v62 = vpop.f32.mrb[16].mxu1  ;;  %13438 = vst [vmem:[#allocation72_spill] sm:$0xff] %v11376_v39  ;;  %vm2862_vm8 = vcmp.eq.s32.totalorder %v10319_v14, %v10793_v51 }
 0x199   : > { %8299 = vmatprep.mubr.msk.bf16.mxu0 %vm8298_vm9, %v13346_v9  ;;  %13436 = vst [vmem:[#allocation70_spill] sm:$0xff] %v11358_v62  ;;  %2419 = vmatpush1.bf16.msra.mxu0 %v11344_v23  ;;  %v11366_v31 = vpop.f32.mrb[17].mxu1  ;;  %vm2870_vm9 = vcmp.eq.s32.totalorder %v10319_v14, %v10795_v1 }
 0x19a   : > { %13437 = vst [vmem:[#allocation71_spill] sm:$0xff] %v11366_v31  ;;  %2420 = vmatprep.subr.bf16.mxu0 %v11351_v53  ;;  %v11378_v42 = vpop.f32.mrb[18].mxu1  ;;  %v13440_v31 = vld [vmem:[#allocation36_spill] sm:$0xff]  ;;  %v13442_v53 = vld [vmem:[#allocation37_spill] sm:$0xff]  ;;  %vm8498_vm15 = vmpackc.low %vm2870_vm9, %vm2862_vm8 }
 0x19b   : > { %13439 = vst [vmem:[#allocation73_spill] sm:$0xff] %v11378_v42  ;;  %3768 = vmatpush1.bf16.msra.mxu1 %v13440_v31  ;;  %v11385_v62 = vpop.f32.mrb[19].mxu1  ;;  %v11398_v31 = vld [vmem:[%s13169_s3 + $0x3e0] ss:$8 sps:$4 sm:$0xff]   ;;  %v11420_v42 = vld [vmem:[%s13169_s3 + $0x3f0] ss:$8 sps:$4 sm:$0xff]  }
 0x19c   : > { %13441 = vst [vmem:[#allocation36_spill] sm:$0xff] %v11385_v62  ;;  %3769 = vmatprep.subr.bf16.mxu1 %v13442_v53  ;;  %13443 = vst [vmem:[#allocation37_spill] sm:$0xff] %v11398_v31  ;;  %v11405_v53 = vld [vmem:[%s13169_s3 + $0x3f4] ss:$8 sps:$4 sm:$0xff]  }
 0x19d   : > { %2421 = vmatpush1.bf16.msra.mxu0 %v11364_v34  ;;  %8493 = vmatmul.mubr.msk.bf16.gmra.mrb[60].mxu1 %vm8492_vm0, %v13346_v9  ;;  %13444 = vst [vmem:[#allocation74_spill] sm:$0xff] %v11405_v53  ;;  %13446 = vst [vmem:[#allocation76_spill] sm:$0xff] %v11420_v42 }
 0x19e   : > { %2422 = vmatprep.subr.bf16.mxu0 %v11376_v39  ;;  %8495 = vmatprep.mubr.msk.bf16.mxu1 %vm8494_vm2, %v13346_v9  ;;  %vm8304_vm0 = vmpackc.low %vm547_vm10, %vm539_vm14  ;;  %vm2861_vm2 = vcmp.eq.s32.totalorder %v10389_v58, %v10793_v51 }
 0x19f   : > { %3770 = vmatpush1.bf16.msra.mxu1 %v10780_v47  ;;  %v9362_v47 = vld [vmem:[%s13170_s4 + $0x4] ss:$8 sps:$4 sm:$0xff]  }
 0x1a0   : > { %8301 = vmatmul.mubr.msk.bf16.gmra.mrb[28].mxu0 %vm8300_vm3, %v13346_v9  ;;  %3771 = vmatprep.subr.bf16.mxu1 %v10787_v50  ;;  %v11414_v62 = vpop.f32.mrb[20].mxu1  ;;  %vm2869_vm3 = vcmp.eq.s32.totalorder %v10389_v58, %v10795_v1  ;;  %v13466_v1 = vld [vmem:[#allocation45_spill] sm:$0xff] }
 0x1a1   : > { %8303 = vmatprep.mubr.msk.bf16.mxu0 %vm8302_vm5, %v13346_v9  ;;  %13445 = vst [vmem:[#allocation75_spill] sm:$0xff] %v11414_v62  ;;  %2423 = vmatpush1.bf16.msra.mxu0 %v11398_v31  ;;  %v11422_v39 = vpop.f32.mrb[21].mxu1  ;;  %v13452_v31 = vld [vmem:[#allocation9_spill] sm:$0xff]  ;;  %vm8500_vm8 = vmpackc.low %vm2869_vm3, %vm2861_vm2 }
 0x1a2   : > { %13447 = vst [vmem:[#allocation77_spill] sm:$0xff] %v11422_v39  ;;  %2424 = vmatprep.subr.bf16.mxu0 %v11405_v53  ;;  %v11432_v50 = vpop.f32.mrb[22].mxu1  ;;  %v13449_v39 = vld [vmem:[#allocation40_spill] sm:$0xff]  ;;  %v13451_v53 = vld [vmem:[#allocation41_spill] sm:$0xff]  ;;  %vm556_vm12 = vcmp.eq.s32.totalorder %v10985_v19, %v13452_v31  ;;  %vm555_vm6 = vcmp.eq.s32.totalorder %v11004_v36, %v13452_v31 }
 0x1a3   : > { %13448 = vst [vmem:[#allocation78_spill] sm:$0xff] %v11432_v50  ;;  %3772 = vmatpush1.bf16.msra.mxu1 %v13449_v39  ;;  %v11439_v62 = vpop.f32.mrb[23].mxu1  ;;  %v13453_v50 = vld [vmem:[#allocation10_spill] sm:$0xff]  ;;  %v13465_v31 = vld [vmem:[#allocation44_spill] sm:$0xff] }
 0x1a4   : > { %13450 = vst [vmem:[#allocation40_spill] sm:$0xff] %v11439_v62  ;;  %3934 = vmatprep.subr.bf16.mxu1 %v13451_v53  ;;  %vm564_vm13 = vcmp.eq.s32.totalorder %v10985_v19, %v13453_v50  ;;  %vm563_vm7 = vcmp.eq.s32.totalorder %v11004_v36, %v13453_v50 }
 0x1a5   : > { %2425 = vmatpush1.bf16.msra.mxu0 %v11420_v42  ;;  %8497 = vmatmul.mubr.msk.bf16.gmra.mrb[64].mxu1 %vm8496_vm11, %v13346_v9  ;;  %vm8306_vm1 = vmpackc.low %vm564_vm13, %vm556_vm12  ;;  %v13458_v42 = vld [vmem:[#allocation43_spill] sm:$0xff] }
 0x1a6   : > { %4431 = vmatprep.subr.bf16.mxu0 %v9362_v47  ;;  %8499 = vmatprep.mubr.msk.bf16.mxu1 %vm8498_vm15, %v13346_v9  ;;  %v13457_v47 = vld [vmem:[#allocation42_spill] sm:$0xff]  ;;  %vm2886_vm5 = vcmp.eq.s32.totalorder %v10319_v14, %v13458_v42  ;;  %vm8308_vm12 = vmpackc.low %vm563_vm7, %vm555_vm6  ;;  %vm2885_vm15 = vcmp.eq.s32.totalorder %v10389_v58, %v13458_v42 }
 0x1a7   : > { %vm2878_vm4 = vcmp.eq.s32.totalorder %v10319_v14, %v13457_v47  ;;  %vm2877_vm14 = vcmp.eq.s32.totalorder %v10389_v58, %v13457_v47 }
 0x1a8   : > { %8305 = vmatmul.mubr.msk.bf16.gmra.mrb[32].mxu0 %vm8304_vm0, %v13346_v9  ;;  %v11455_v39 = vpop.f32.mrb[24].mxu1  ;;  %vm8502_vm11 = vmpackc.low %vm2886_vm5, %vm2878_vm4  ;;  %vm2894_vm0 = vcmp.eq.s32.totalorder %v10319_v14, %v13465_v31 }
 0x1a9   : > { %8307 = vmatprep.mubr.msk.bf16.mxu0 %vm8306_vm1, %v13346_v9  ;;  %13454 = vst [vmem:[#allocation41_spill] sm:$0xff] %v11455_v39  ;;  %v11457_v53 = vpop.f32.mrb[25].mxu1  ;;  %v13461_v39 = vld [vmem:[#allocation12_spill] sm:$0xff]  ;;  %vm2902_vm1 = vcmp.eq.s32.totalorder %v10319_v14, %v13466_v1  ;;  %vm8504_vm4 = vmpackc.low %vm2885_vm15, %vm2877_vm14 }
 0x1aa   : > { %13455 = vst [vmem:[#allocation79_spill] sm:$0xff] %v11457_v53  ;;  %v11463_v62 = vpop.f32.mrb[26].mxu1  ;;  %v13460_v53 = vld [vmem:[#allocation11_spill] sm:$0xff]  ;;  %vm580_vm10 = vcmp.eq.s32.totalorder %v10985_v19, %v13461_v39  ;;  %vm579_vm3 = vcmp.eq.s32.totalorder %v11004_v36, %v13461_v39  ;;  %vm8506_vm7 = vmpackc.low %vm2902_vm1, %vm2894_vm0 }
 0x1ab   : > { %13456 = vst [vmem:[#allocation80_spill] sm:$0xff] %v11463_v62  ;;  %v11469_v0 = vpop.f32.mrb[27].mxu1  ;;  %vm572_vm9 = vcmp.eq.s32.totalorder %v10985_v19, %v13460_v53  ;;  %vm571_vm2 = vcmp.eq.s32.totalorder %v11004_v36, %v13460_v53  ;;  %v13472_v39 = vld [vmem:[#allocation15_spill] sm:$0xff] }
 0x1ac   : > { %13459 = vst [vmem:[#allocation42_spill] sm:$0xff] %v11469_v0  ;;  %vm8310_vm13 = vmpackc.low %vm580_vm10, %vm572_vm9  ;;  %vm2893_vm10 = vcmp.eq.s32.totalorder %v10389_v58, %v13465_v31  ;;  %vm604_vm1 = vcmp.eq.s32.totalorder %v10985_v19, %v13472_v39  ;;  %v13473_v31 = vld [vmem:[#allocation16_spill] sm:$0xff] }
 0x1ad   : > { %8501 = vmatmul.mubr.msk.bf16.gmra.mrb[68].mxu1 %vm8500_vm8, %v13346_v9  ;;  %vm8312_vm8 = vmpackc.low %vm579_vm3, %vm571_vm2  ;;  %vm612_vm2 = vcmp.eq.s32.totalorder %v10985_v19, %v13473_v31 }
 0x1ae   : > { %8503 = vmatprep.mubr.msk.bf16.mxu1 %vm8502_vm11, %v13346_v9  ;;  %vm2901_vm11 = vcmp.eq.s32.totalorder %v10389_v58, %v13466_v1 }
 0x1af   : > { %vm8508_vm0 = vmpackc.low %vm2901_vm11, %vm2893_vm10  ;;  %vm603_vm10 = vcmp.eq.s32.totalorder %v11004_v36, %v13472_v39  ;;  %vm611_vm11 = vcmp.eq.s32.totalorder %v11004_v36, %v13473_v31  ;;  %v13477_v31 = vld [vmem:[#allocation50_spill] sm:$0xff] }
 0x1b0   : > { %8309 = vmatmul.mubr.msk.bf16.gmra.mrb[36].mxu0 %vm8308_vm12, %v13346_v9  ;;  %v11483_v0 = vpop.f32.mrb[28].mxu1 }
 0x1b1   : > { %8311 = vmatprep.mubr.msk.bf16.mxu0 %vm8310_vm13, %v13346_v9  ;;  %13462 = vst [vmem:[#allocation43_spill] sm:$0xff] %v11483_v0  ;;  %v11485_v62 = vpop.f32.mrb[29].mxu1  ;;  %v13469_v0 = vld [vmem:[#allocation14_spill] sm:$0xff] }
 0x1b2   : > { %13463 = vst [vmem:[#allocation11_spill] sm:$0xff] %v11485_v62  ;;  %v11491_v50 = vpop.f32.mrb[30].mxu1  ;;  %v13468_v62 = vld [vmem:[#allocation13_spill] sm:$0xff]  ;;  %vm596_vm6 = vcmp.eq.s32.totalorder %v10985_v19, %v13469_v0  ;;  %vm595_vm15 = vcmp.eq.s32.totalorder %v11004_v36, %v13469_v0  ;;  %v13474_v0 = vld [vmem:[#allocation48_spill] sm:$0xff] }
 0x1b3   : > { %13464 = vst [vmem:[#allocation81_spill] sm:$0xff] %v11491_v50  ;;  %v11497_v51 = vpop.f32.mrb[31].mxu1  ;;  %vm588_vm5 = vcmp.eq.s32.totalorder %v10985_v19, %v13468_v62  ;;  %v13471_v50 = vld [vmem:[#allocation47_spill] sm:$0xff]  ;;  %vm587_vm14 = vcmp.eq.s32.totalorder %v11004_v36, %v13468_v62  ;;  %v13475_v62 = vld [vmem:[#allocation49_spill] sm:$0xff] }
 0x1b4   : > { %13467 = vst [vmem:[#allocation45_spill] sm:$0xff] %v11497_v51  ;;  %vm8314_vm9 = vmpackc.low %vm596_vm6, %vm588_vm5  ;;  %v13470_v51 = vld [vmem:[#allocation46_spill] sm:$0xff]  ;;  %vm2918_vm13 = vcmp.eq.s32.totalorder %v10319_v14, %v13471_v50 }
 0x1b5   : > { %8505 = vmatmul.mubr.msk.bf16.gmra.mrb[72].mxu1 %vm8504_vm4, %v13346_v9  ;;  %vm2910_vm12 = vcmp.eq.s32.totalorder %v10319_v14, %v13470_v51  ;;  %vm8316_vm4 = vmpackc.low %vm595_vm15, %vm587_vm14  ;;  %vm2909_vm6 = vcmp.eq.s32.totalorder %v10389_v58, %v13470_v51  ;;  %v13476_v51 = vld [vmem:[#allocation18_spill] sm:$0xff] }
 0x1b6   : > { %8507 = vmatprep.mubr.msk.bf16.mxu1 %vm8506_vm7, %v13346_v9  ;;  %vm8510_vm3 = vmpackc.low %vm2918_vm13, %vm2910_vm12  ;;  %vm2917_vm7 = vcmp.eq.s32.totalorder %v10389_v58, %v13471_v50  ;;  %vm620_vm13 = vcmp.eq.s32.totalorder %v10985_v19, %v13381_v56  ;;  %vm628_vm14 = vcmp.eq.s32.totalorder %v10985_v19, %v13476_v51 }
 0x1b7   : > { %vm8318_vm5 = vmpackc.low %vm612_vm2, %vm604_vm1  ;;  %vm2925_vm2 = vcmp.eq.s32.totalorder %v10389_v58, %v13474_v0 }
 0x1b8   : > { %8313 = vmatmul.mubr.msk.bf16.gmra.mrb[40].mxu0 %vm8312_vm8, %v13346_v9  ;;  %vm2926_vm8 = vcmp.eq.s32.totalorder %v10319_v14, %v13474_v0  ;;  %vm8512_vm12 = vmpackc.low %vm2917_vm7, %vm2909_vm6  ;;  %vm619_vm6 = vcmp.eq.s32.totalorder %v11004_v36, %v13381_v56  ;;  %vm627_vm7 = vcmp.eq.s32.totalorder %v11004_v36, %v13476_v51  ;;  %v13478_v0 = vld [vmem:[#allocation20_spill] sm:$0xff]  ;;  %v13479_v51 = vld [vmem:[#allocation19_spill] sm:$0xff] }
 0x1b9   : > { %8315 = vmatprep.mubr.msk.bf16.mxu0 %vm8314_vm9, %v13346_v9  ;;  %vm2934_vm9 = vcmp.eq.s32.totalorder %v10319_v14, %v13475_v62  ;;  %vm8322_vm1 = vmpackc.low %vm628_vm14, %vm620_vm13  ;;  %vm2941_vm14 = vcmp.eq.s32.totalorder %v10389_v58, %v13477_v31  ;;  %v13480_v56 = vld [vmem:[#allocation51_spill] sm:$0xff] }
 0x1ba   : > { %vm8514_vm15 = vmpackc.low %vm2934_vm9, %vm2926_vm8  ;;  %vm636_vm9 = vcmp.eq.s32.totalorder %v10985_v19, %v13384_v10 }
 0x1bd   : > { %8509 = vmatmul.mubr.msk.bf16.gmra.mrb[76].mxu1 %vm8508_vm0, %v13346_v9  ;;  %vm8320_vm0 = vmpackc.low %vm611_vm11, %vm603_vm10  ;;  %vm644_vm10 = vcmp.eq.s32.totalorder %v10985_v19, %v13478_v0 }
 0x1be   : > { %8511 = vmatprep.mubr.msk.bf16.mxu1 %vm8510_vm3, %v13346_v9  ;;  %vm2933_vm3 = vcmp.eq.s32.totalorder %v10389_v58, %v13475_v62  ;;  %vm8326_vm13 = vmpackc.low %vm644_vm10, %vm636_vm9  ;;  %vm2957_vm10 = vcmp.eq.s32.totalorder %v10389_v58, %v13479_v51 }
 0x1bf   : > { %vm8516_vm8 = vmpackc.low %vm2933_vm3, %vm2925_vm2  ;;  %vm635_vm2 = vcmp.eq.s32.totalorder %v11004_v36, %v13384_v10  ;;  %vm643_vm3 = vcmp.eq.s32.totalorder %v11004_v36, %v13478_v0  ;;  %v13482_v0 = vld [vmem:[#allocation23_spill] sm:$0xff] }
 0x1c0   : > { %8317 = vmatmul.mubr.msk.bf16.gmra.mrb[44].mxu0 %vm8316_vm4, %v13346_v9  ;;  %vm2942_vm4 = vcmp.eq.s32.totalorder %v10319_v14, %v13477_v31  ;;  %v13481_v31 = vld [vmem:[#allocation22_spill] sm:$0xff] }
 0x1c1   : > { %8319 = vmatprep.mubr.msk.bf16.mxu0 %vm8318_vm5, %v13346_v9  ;;  %vm2950_vm5 = vcmp.eq.s32.totalorder %v10319_v14, %v10932_v37 }
 0x1c2   : > { %vm8518_vm11 = vmpackc.low %vm2950_vm5, %vm2942_vm4  ;;  %vm652_vm5 = vcmp.eq.s32.totalorder %v10985_v19, %v13388_v32 }
 0x1c5   : > { %8513 = vmatmul.mubr.msk.bf16.gmra.mrb[80].mxu1 %vm8512_vm12, %v13346_v9  ;;  %vm8324_vm12 = vmpackc.low %vm627_vm7, %vm619_vm6  ;;  %vm660_vm6 = vcmp.eq.s32.totalorder %v10985_v19, %v13481_v31 }
 0x1c6   : > { %8515 = vmatprep.mubr.msk.bf16.mxu1 %vm8514_vm15, %v13346_v9  ;;  %vm2949_vm15 = vcmp.eq.s32.totalorder %v10389_v58, %v10932_v37  ;;  %vm8330_vm9 = vmpackc.low %vm660_vm6, %vm652_vm5  ;;  %vm2719_vm6 = vcmp.eq.s32.totalorder %v11004_v36, %v10345_v54 }
 0x1c7   : > { %vm8520_vm4 = vmpackc.low %vm2949_vm15, %vm2941_vm14  ;;  %vm651_vm14 = vcmp.eq.s32.totalorder %v11004_v36, %v13388_v32  ;;  %vm659_vm15 = vcmp.eq.s32.totalorder %v11004_v36, %v13481_v31  ;;  %v11615_v31 = vadd.s32 768, %v9849_v13 }
 0x1c8   : > { %8321 = vmatmul.mubr.msk.bf16.gmra.mrb[48].mxu0 %vm8320_vm0, %v13346_v9  ;;  %vm2958_vm0 = vcmp.eq.s32.totalorder %v10319_v14, %v13479_v51  ;;  %v13483_v51 = vld [vmem:[#allocation7_spill] sm:$0xff] }
 0x1c9   : > { %8323 = vmatprep.mubr.msk.bf16.mxu0 %vm8322_vm1, %v13346_v9  ;;  %vm2966_vm1 = vcmp.eq.s32.totalorder %v10319_v14, %v13480_v56  ;;  %v11596_v14 = vadd.s32 896, %v9849_v13  ;;  %v9360_v13 = vld [vmem:[%s13170_s4] ss:$8 sps:$4 sm:$0xff]  }
 0x1ca   : > { %vm8522_vm7 = vmpackc.low %vm2966_vm1, %vm2958_vm0 }
 0x1cb   : > { %vm414_vm1 = vcmp.eq.s32.totalorder %v11596_v14, %v13483_v51 }
 0x1cd   : > { %8517 = vmatmul.mubr.msk.bf16.gmra.mrb[84].mxu1 %vm8516_vm8, %v13346_v9  ;;  %vm8328_vm8 = vmpackc.low %vm643_vm3, %vm635_vm2 }
 0x1ce   : > { %8519 = vmatprep.mubr.msk.bf16.mxu1 %vm8518_vm11, %v13346_v9  ;;  %vm2965_vm11 = vcmp.eq.s32.totalorder %v10389_v58, %v13480_v56  ;;  %v13484_v58 = vld [vmem:[#allocation8_spill] sm:$0xff] }
 0x1cf   : > { %vm8524_vm0 = vmpackc.low %vm2965_vm11, %vm2957_vm10  ;;  %vm422_vm2 = vcmp.eq.s32.totalorder %v11596_v14, %v13484_v58  ;;  %vm413_vm10 = vcmp.eq.s32.totalorder %v11615_v31, %v13483_v51  ;;  %vm421_vm11 = vcmp.eq.s32.totalorder %v11615_v31, %v13484_v58  ;;  %v9365_v51 = vld [vmem:[%s13170_s4 + $0x14] ss:$8 sps:$4 sm:$0xff]   ;;  %v13485_v58 = vld [vmem:[#allocation21_spill] sm:$0xff] }
 0x1d0   : > { %8325 = vmatmul.mubr.msk.bf16.gmra.mrb[52].mxu0 %vm8324_vm12, %v13346_v9  ;;  %vm2720_vm12 = vcmp.eq.s32.totalorder %v10985_v19, %v10345_v54  ;;  %vm8334_vm5 = vmpackc.low %vm422_vm2, %vm414_vm1  ;;  %vm2735_vm2 = vcmp.eq.s32.totalorder %v11004_v36, %v10377_v55 }
 0x1d1   : > { %8327 = vmatprep.mubr.msk.bf16.mxu0 %vm8326_vm13, %v13346_v9  ;;  %vm2728_vm13 = vcmp.eq.s32.totalorder %v10985_v19, %v13482_v0 }
 0x1d2   : > { %vm8526_vm3 = vmpackc.low %vm2728_vm13, %vm2720_vm12  ;;  %vm430_vm13 = vcmp.eq.s32.totalorder %v11596_v14, %v9916_v48 }
 0x1d5   : > { %8521 = vmatmul.mubr.msk.bf16.gmra.mrb[88].mxu1 %vm8520_vm4, %v13346_v9  ;;  %vm8332_vm4 = vmpackc.low %vm659_vm15, %vm651_vm14  ;;  %vm438_vm14 = vcmp.eq.s32.totalorder %v11596_v14, %v9918_v49 }
 0x1d6   : > { %8523 = vmatprep.mubr.msk.bf16.mxu1 %vm8522_vm7, %v13346_v9  ;;  %vm2727_vm7 = vcmp.eq.s32.totalorder %v11004_v36, %v13482_v0  ;;  %vm8338_vm1 = vmpackc.low %vm438_vm14, %vm430_vm13  ;;  %v9363_v0 = vld [vmem:[%s13170_s4 + $0x10] ss:$8 sps:$4 sm:$0xff]   ;;  %vm2751_vm14 = vcmp.eq.s32.totalorder %v11004_v36, %v10429_v28 }
 0x1d7   : > { %vm8528_vm12 = vmpackc.low %vm2727_vm7, %vm2719_vm6  ;;  %vm429_vm6 = vcmp.eq.s32.totalorder %v11615_v31, %v9916_v48  ;;  %vm437_vm7 = vcmp.eq.s32.totalorder %v11615_v31, %v9918_v49  ;;  %v9371_v48 = vld [vmem:[%s13170_s4 + $0x34] ss:$8 sps:$4 sm:$0xff]  }
 0x1d8   : > { %8329 = vmatmul.mubr.msk.bf16.gmra.mrb[56].mxu0 %vm8328_vm8, %v13346_v9  ;;  %vm2736_vm8 = vcmp.eq.s32.totalorder %v10985_v19, %v10377_v55  ;;  %v13487_v49 = vld [vmem:[#allocation24_spill] sm:$0xff] }
 0x1d9   : > { %8331 = vmatprep.mubr.msk.bf16.mxu0 %vm8330_vm9, %v13346_v9  ;;  %vm2744_vm9 = vcmp.eq.s32.totalorder %v10985_v19, %v10384_v46 }
 0x1da   : > { %vm8530_vm15 = vmpackc.low %vm2744_vm9, %vm2736_vm8  ;;  %vm446_vm9 = vcmp.eq.s32.totalorder %v11596_v14, %v9975_v60 }
 0x1dd   : > { %8525 = vmatmul.mubr.msk.bf16.gmra.mrb[92].mxu1 %vm8524_vm0, %v13346_v9  ;;  %vm8336_vm0 = vmpackc.low %vm421_vm11, %vm413_vm10  ;;  %vm454_vm10 = vcmp.eq.s32.totalorder %v11596_v14, %v9982_v6 }
 0x1de   : > { %8527 = vmatprep.mubr.msk.bf16.mxu1 %vm8526_vm3, %v13346_v9  ;;  %vm2743_vm3 = vcmp.eq.s32.totalorder %v11004_v36, %v10384_v46  ;;  %vm8342_vm13 = vmpackc.low %vm454_vm10, %vm446_vm9  ;;  %vm2767_vm10 = vcmp.eq.s32.totalorder %v11004_v36, %v10481_v3 }
 0x1df   : > { %vm8532_vm8 = vmpackc.low %vm2743_vm3, %vm2735_vm2  ;;  %vm445_vm2 = vcmp.eq.s32.totalorder %v11615_v31, %v9975_v60  ;;  %vm453_vm3 = vcmp.eq.s32.totalorder %v11615_v31, %v9982_v6  ;;  %v9377_v60 = vld [vmem:[%s13170_s4 + $0x54] ss:$8 sps:$4 sm:$0xff]   ;;  %v13491_v6 = vld [vmem:[#allocation26_spill] sm:$0xff] }
 0x1e0   : > { %8333 = vmatmul.mubr.msk.bf16.gmra.mrb[60].mxu0 %vm8332_vm4, %v13346_v9  ;;  %vm2752_vm4 = vcmp.eq.s32.totalorder %v10985_v19, %v10429_v28 }
 0x1e1   : > { %8335 = vmatprep.mubr.msk.bf16.mxu0 %vm8334_vm5, %v13346_v9  ;;  %vm2760_vm5 = vcmp.eq.s32.totalorder %v10985_v19, %v10432_v18 }
 0x1e2   : > { %vm8534_vm11 = vmpackc.low %vm2760_vm5, %vm2752_vm4  ;;  %vm462_vm5 = vcmp.eq.s32.totalorder %v11596_v14, %v10040_v24 }
 0x1e5   : > { %8529 = vmatmul.mubr.msk.bf16.vlgmr.msra.gmra.mrb[32].mxu1 %vm8528_vm12, %v13346_v9  ;;  %vm8340_vm12 = vmpackc.low %vm437_vm7, %vm429_vm6  ;;  %vm470_vm6 = vcmp.eq.s32.totalorder %v11596_v14, %v10047_v29 }
 0x1e6   : > { %3935 = vmatpush1.bf16.msra.mxu1 %v11025_v22  ;;  %8531 = vmatprep.mubr.msk.bf16.mxu1 %vm8530_vm15, %v13346_v9  ;;  %v9368_v22 = vld [vmem:[%s13170_s4 + $0x24] ss:$8 sps:$4 sm:$0xff]   ;;  %vm2759_vm15 = vcmp.eq.s32.totalorder %v11004_v36, %v10432_v18  ;;  %vm8346_vm9 = vmpackc.low %vm470_vm6, %vm462_vm5  ;;  %vm2783_vm6 = vcmp.eq.s32.totalorder %v11004_v36, %v10533_v11 }
 0x1e7   : > { %3936 = vmatprep.subr.bf16.mxu1 %v13485_v58  ;;  %v9374_v58 = vld [vmem:[%s13170_s4 + $0x44] ss:$8 sps:$4 sm:$0xff]   ;;  %vm8536_vm4 = vmpackc.low %vm2759_vm15, %vm2751_vm14  ;;  %vm461_vm14 = vcmp.eq.s32.totalorder %v11615_v31, %v10040_v24  ;;  %vm469_vm15 = vcmp.eq.s32.totalorder %v11615_v31, %v10047_v29  ;;  %v9383_v24 = vld [vmem:[%s13170_s4 + $0x74] ss:$8 sps:$4 sm:$0xff]  }
 0x1e8   : > { %8337 = vmatmul.mubr.msk.bf16.vlgmr.msra.gmra.mrb[0].mxu0 %vm8336_vm0, %v13346_v9  ;;  %vm2768_vm0 = vcmp.eq.s32.totalorder %v10985_v19, %v10481_v3  ;;  %v13493_v29 = vld [vmem:[#allocation29_spill] sm:$0xff] }
 0x1e9   : > { %8339 = vmatprep.mubr.msk.bf16.mxu0 %vm8338_vm1, %v13346_v9  ;;  %4432 = vmatpush1.bf16.msra.mxu0 %v9360_v13  ;;  %v13486_v13 = vld [vmem:[#allocation52_spill] sm:$0xff]  ;;  %vm2776_vm1 = vcmp.eq.s32.totalorder %v10985_v19, %v10483_v4 }
 0x1ea   : > { %4433 = vmatprep.subr.bf16.mxu0 %v9365_v51  ;;  %3937 = vmatpush1.bf16.msra.mxu1 %v11042_v59  ;;  %v9366_v59 = vld [vmem:[%s13170_s4 + $0x20] ss:$8 sps:$4 sm:$0xff]   ;;  %v9369_v51 = vld [vmem:[%s13170_s4 + $0x30] ss:$8 sps:$4 sm:$0xff]   ;;  %vm8538_vm7 = vmpackc.low %vm2776_vm1, %vm2768_vm0  ;;  %vm478_vm1 = vcmp.eq.s32.totalorder %v11596_v14, %v10106_v8 }
 0x1eb   : > { %3938 = vmatprep.subr.bf16.mxu1 %v13486_v13  ;;  %v13490_v13 = vld [vmem:[#allocation54_spill] sm:$0xff] }
 0x1ed   : > { %4434 = vmatpush1.bf16.msra.mxu0 %v9363_v0  ;;  %8533 = vmatmul.mubr.msk.bf16.gmra.mrb[36].mxu1 %vm8532_vm8, %v13346_v9  ;;  %v13488_v0 = vld [vmem:[#allocation25_spill] sm:$0xff]  ;;  %vm8344_vm8 = vmpackc.low %vm453_vm3, %vm445_vm2  ;;  %vm486_vm2 = vcmp.eq.s32.totalorder %v11596_v14, %v10113_v17 }
 0x1ee   : > { %4435 = vmatprep.subr.bf16.mxu0 %v9368_v22  ;;  %8535 = vmatprep.mubr.msk.bf16.mxu1 %vm8534_vm11, %v13346_v9  ;;  %v13489_v22 = vld [vmem:[#allocation53_spill] sm:$0xff]  ;;  %vm2775_vm11 = vcmp.eq.s32.totalorder %v11004_v36, %v10483_v4  ;;  %vm8350_vm5 = vmpackc.low %vm486_vm2, %vm478_vm1  ;;  %vm2799_vm2 = vcmp.eq.s32.totalorder %v11004_v36, %v10585_v21 }
 0x1ef   : > { %3939 = vmatpush1.bf16.msra.mxu1 %v13487_v49  ;;  %v13492_v49 = vld [vmem:[#allocation56_spill] sm:$0xff]  ;;  %vm8540_vm0 = vmpackc.low %vm2775_vm11, %vm2767_vm10  ;;  %vm477_vm10 = vcmp.eq.s32.totalorder %v11615_v31, %v10106_v8  ;;  %vm485_vm11 = vcmp.eq.s32.totalorder %v11615_v31, %v10113_v17  ;;  %v13495_v8 = vld [vmem:[#allocation31_spill] sm:$0xff] }
 0x1f0   : > { %8341 = vmatmul.mubr.msk.bf16.gmra.mrb[4].mxu0 %vm8340_vm12, %v13346_v9  ;;  %3940 = vmatprep.subr.bf16.mxu1 %v13488_v0  ;;  %vm2784_vm12 = vcmp.eq.s32.totalorder %v10985_v19, %v10533_v11  ;;  %v9381_v0 = vld [vmem:[%s13170_s4 + $0x70] ss:$8 sps:$4 sm:$0xff]   ;;  %v13496_v17 = vld [vmem:[#allocation64_spill] sm:$0xff] }
 0x1f1   : > { %8343 = vmatprep.mubr.msk.bf16.mxu0 %vm8342_vm13, %v13346_v9  ;;  %4436 = vmatpush1.bf16.msra.mxu0 %v9366_v59  ;;  %v9372_v59 = vld [vmem:[%s13170_s4 + $0x40] ss:$8 sps:$4 sm:$0xff]   ;;  %vm2792_vm13 = vcmp.eq.s32.totalorder %v10985_v19, %v10535_v33 }
 0x1f2   : > { %4437 = vmatprep.subr.bf16.mxu0 %v9371_v48  ;;  %v9375_v48 = vld [vmem:[%s13170_s4 + $0x50] ss:$8 sps:$4 sm:$0xff]   ;;  %vm8542_vm3 = vmpackc.low %vm2792_vm13, %vm2784_vm12  ;;  %vm494_vm13 = vcmp.eq.s32.totalorder %v11596_v14, %v10172_v40 }
 0x1f3   : > { %3941 = vmatpush1.bf16.msra.mxu1 %v13489_v22  ;;  %v13514_v22 = vld [vmem:[#allocation16_spill] sm:$0xff] }
 0x1f4   : > { %3942 = vmatprep.subr.bf16.mxu1 %v13490_v13  ;;  %v13515_v13 = vld [vmem:[#allocation48_spill] sm:$0xff] }
 0x1f5   : > { %4438 = vmatpush1.bf16.msra.mxu0 %v9369_v51  ;;  %8537 = vmatmul.mubr.msk.bf16.gmra.mrb[40].mxu1 %vm8536_vm4, %v13346_v9  ;;  %vm8348_vm4 = vmpackc.low %vm469_vm15, %vm461_vm14  ;;  %vm502_vm14 = vcmp.eq.s32.totalorder %v11596_v14, %v10179_v7  ;;  %v13511_v51 = vld [vmem:[#allocation13_spill] sm:$0xff] }
 0x1f6   : > { %4439 = vmatprep.subr.bf16.mxu0 %v9374_v58  ;;  %8539 = vmatprep.mubr.msk.bf16.mxu1 %vm8538_vm7, %v13346_v9  ;;  %vm2791_vm7 = vcmp.eq.s32.totalorder %v11004_v36, %v10535_v33  ;;  %vm8354_vm1 = vmpackc.low %vm502_vm14, %vm494_vm13  ;;  %vm2815_vm14 = vcmp.eq.s32.totalorder %v11004_v36, %v10637_v27  ;;  %v13512_v58 = vld [vmem:[#allocation14_spill] sm:$0xff] }
 0x1f7   : > { %3943 = vmatpush1.bf16.msra.mxu1 %v11120_v45  ;;  %v9380_v45 = vld [vmem:[%s13170_s4 + $0x64] ss:$8 sps:$4 sm:$0xff]   ;;  %vm8544_vm12 = vmpackc.low %vm2791_vm7, %vm2783_vm6  ;;  %vm493_vm6 = vcmp.eq.s32.totalorder %v11615_v31, %v10172_v40  ;;  %vm501_vm7 = vcmp.eq.s32.totalorder %v11615_v31, %v10179_v7  ;;  %v13498_v40 = vld [vmem:[#allocation68_spill] sm:$0xff] }
 0x1f8   : > { %8345 = vmatmul.mubr.msk.bf16.gmra.mrb[8].mxu0 %vm8344_vm8, %v13346_v9  ;;  %3944 = vmatprep.subr.bf16.mxu1 %v13491_v6  ;;  %vm2800_vm8 = vcmp.eq.s32.totalorder %v10985_v19, %v10585_v21  ;;  %v13497_v7 = vld [vmem:[#allocation33_spill] sm:$0xff]  ;;  %v13519_v6 = vld [vmem:[#allocation20_spill] sm:$0xff] }
 0x1f9   : > { %8347 = vmatprep.mubr.msk.bf16.mxu0 %vm8346_vm9, %v13346_v9  ;;  %4440 = vmatpush1.bf16.msra.mxu0 %v9372_v59  ;;  %vm2808_vm9 = vcmp.eq.s32.totalorder %v10985_v19, %v10587_v52  ;;  %v13516_v59 = vld [vmem:[#allocation17_spill] sm:$0xff] }
 0x1fa   : > { %4441 = vmatprep.subr.bf16.mxu0 %v9377_v60  ;;  %vm8546_vm15 = vmpackc.low %vm2808_vm9, %vm2800_vm8  ;;  %vm510_vm9 = vcmp.eq.s32.totalorder %v11596_v14, %v10238_v57  ;;  %v13517_v60 = vld [vmem:[#allocation18_spill] sm:$0xff] }
 0x1fb   : > { %3945 = vmatpush1.bf16.msra.mxu1 %v11140_v41  ;;  %v9378_v41 = vld [vmem:[%s13170_s4 + $0x60] ss:$8 sps:$4 sm:$0xff]  }
 0x1fc   : > { %3946 = vmatprep.subr.bf16.mxu1 %v13492_v49  ;;  %v13523_v49 = vmov 0  }
 0x1fd   : > { %4442 = vmatpush1.bf16.msra.mxu0 %v9375_v48  ;;  %8541 = vmatmul.mubr.msk.bf16.gmra.mrb[44].mxu1 %vm8540_vm0, %v13346_v9  ;;  %vm8352_vm0 = vmpackc.low %vm485_vm11, %vm477_vm10  ;;  %vm518_vm10 = vcmp.eq.s32.totalorder %v11596_v14, %v10245_v30  ;;  %v13520_v48 = vld [vmem:[#allocation19_spill] sm:$0xff] }
 0x1fe   : > { %4443 = vmatprep.subr.bf16.mxu0 %v9380_v45  ;;  %8543 = vmatprep.mubr.msk.bf16.mxu1 %vm8542_vm3, %v13346_v9  ;;  %vm2807_vm3 = vcmp.eq.s32.totalorder %v11004_v36, %v10587_v52  ;;  %vm8358_vm13 = vmpackc.low %vm518_vm10, %vm510_vm9  ;;  %vm2831_vm10 = vcmp.eq.s32.totalorder %v11004_v36, %v10689_v35  ;;  %v13521_v45 = vld [vmem:[#allocation22_spill] sm:$0xff] }
 0x1ff   : > { %3947 = vmatpush1.bf16.msra.mxu1 %v11176_v63  ;;  %v13494_v63 = vld [vmem:[#allocation60_spill] sm:$0xff]  ;;  %vm8548_vm8 = vmpackc.low %vm2807_vm3, %vm2799_vm2  ;;  %vm509_vm2 = vcmp.eq.s32.totalorder %v11615_v31, %v10238_v57  ;;  %vm517_vm3 = vcmp.eq.s32.totalorder %v11615_v31, %v10245_v30  ;;  %v13499_v30 = vld [vmem:[#allocation35_spill] sm:$0xff] }
 0x200   : > { %8349 = vmatmul.mubr.msk.bf16.gmra.mrb[12].mxu0 %vm8348_vm4, %v13346_v9  ;;  %3948 = vmatprep.subr.bf16.mxu1 %v13493_v29  ;;  %vm2816_vm4 = vcmp.eq.s32.totalorder %v10985_v19, %v10637_v27  ;;  %v13500_v57 = vld [vmem:[#allocation72_spill] sm:$0xff] }
 0x201   : > { %8351 = vmatprep.mubr.msk.bf16.mxu0 %vm8350_vm5, %v13346_v9  ;;  %4444 = vmatpush1.bf16.msra.mxu0 %v9378_v41  ;;  %vm2824_vm5 = vcmp.eq.s32.totalorder %v10985_v19, %v10639_v12 }
 0x202   : > { %4445 = vmatprep.subr.bf16.mxu0 %v9383_v24  ;;  %vm8550_vm11 = vmpackc.low %vm2824_vm5, %vm2816_vm4  ;;  %vm526_vm5 = vcmp.eq.s32.totalorder %v11596_v14, %v10304_v20 }
 0x203   : > { %3949 = vmatpush1.bf16.msra.mxu1 %v11196_v61  ;;  %v13501_v61 = vld [vmem:[#allocation6_spill] sm:$0xff] }
 0x204   : > { %3950 = vmatprep.subr.bf16.mxu1 %v13494_v63 }
 0x205   : > { %4446 = vmatpush1.bf16.msra.mxu0 %v9381_v0  ;;  %8545 = vmatmul.mubr.msk.bf16.gmra.mrb[48].mxu1 %vm8544_vm12, %v13346_v9  ;;  %vm8356_vm12 = vmpackc.low %vm501_vm7, %vm493_vm6  ;;  %vm534_vm6 = vcmp.eq.s32.totalorder %v11596_v14, %v10311_v38 }
 0x206   : > { %8547 = vmatprep.mubr.msk.bf16.mxu1 %vm8546_vm15, %v13346_v9  ;;  %vm2823_vm15 = vcmp.eq.s32.totalorder %v11004_v36, %v10639_v12  ;;  %vm8362_vm9 = vmpackc.low %vm534_vm6, %vm526_vm5  ;;  %vm2847_vm6 = vcmp.eq.s32.totalorder %v11004_v36, %v10741_v43 }
 0x207   : > { %3951 = vmatpush1.bf16.msra.mxu1 %v11232_v5  ;;  %vm8552_vm4 = vmpackc.low %vm2823_vm15, %vm2815_vm14  ;;  %vm525_vm14 = vcmp.eq.s32.totalorder %v11615_v31, %v10304_v20  ;;  %vm533_vm15 = vcmp.eq.s32.totalorder %v11615_v31, %v10311_v38  ;;  %v13503_v38 = vld [vmem:[#allocation74_spill] sm:$0xff]  ;;  %v13505_v5 = vld [vmem:[#allocation39_spill] sm:$0xff] }
 0x208   : > { %8353 = vmatmul.mubr.msk.bf16.gmra.mrb[16].mxu0 %vm8352_vm0, %v13346_v9  ;;  %3952 = vmatprep.subr.bf16.mxu1 %v13495_v8  ;;  %vm2832_vm0 = vcmp.eq.s32.totalorder %v10985_v19, %v10689_v35  ;;  %v13504_v20 = vld [vmem:[#allocation38_spill] sm:$0xff] }
 0x209   : > { %8355 = vmatprep.mubr.msk.bf16.mxu0 %vm8354_vm1, %v13346_v9  ;;  %vm2840_vm1 = vcmp.eq.s32.totalorder %v10985_v19, %v10691_v2 }
 0x20a   : > { %vm8554_vm7 = vmpackc.low %vm2840_vm1, %vm2832_vm0  ;;  %vm550_vm1 = vcmp.eq.s32.totalorder %v11596_v14, %v9864_v25 }
 0x20b   : > { %3953 = vmatpush1.bf16.msra.mxu1 %v11252_v16  ;;  %v13502_v16 = vld [vmem:[#allocation37_spill] sm:$0xff] }
 0x20c   : > { %3954 = vmatprep.subr.bf16.mxu1 %v13496_v17 }
 0x20d   : > { %8549 = vmatmul.mubr.msk.bf16.gmra.mrb[52].mxu1 %vm8548_vm8, %v13346_v9  ;;  %vm8360_vm8 = vmpackc.low %vm517_vm3, %vm509_vm2 }
 0x20e   : > { %8551 = vmatprep.mubr.msk.bf16.mxu1 %vm8550_vm11, %v13346_v9  ;;  %vm2839_vm11 = vcmp.eq.s32.totalorder %v11004_v36, %v10691_v2  ;;  %vm8364_vm3 = vmpackc.low %vm533_vm15, %vm525_vm14  ;;  %vm541_vm14 = vcmp.eq.s32.totalorder %v11615_v31, %v13501_v61 }
 0x20f   : > { %3955 = vmatpush1.bf16.msra.mxu1 %v11288_v15  ;;  %vm8556_vm0 = vmpackc.low %vm2839_vm11, %vm2831_vm10  ;;  %vm549_vm10 = vcmp.eq.s32.totalorder %v11615_v31, %v9864_v25  ;;  %v13507_v15 = vld [vmem:[#allocation9_spill] sm:$0xff]  ;;  %v13509_v25 = vld [vmem:[#allocation12_spill] sm:$0xff] }
 0x210   : > { %8357 = vmatmul.mubr.msk.bf16.gmra.mrb[20].mxu0 %vm8356_vm12, %v13346_v9  ;;  %3956 = vmatprep.subr.bf16.mxu1 %v13497_v7  ;;  %vm2848_vm12 = vcmp.eq.s32.totalorder %v10985_v19, %v10741_v43 }
 0x211   : > { %8359 = vmatprep.mubr.msk.bf16.mxu0 %vm8358_vm13, %v13346_v9  ;;  %vm2856_vm13 = vcmp.eq.s32.totalorder %v10985_v19, %v10743_v44 }
 0x212   : > { %vm8558_vm2 = vmpackc.low %vm2856_vm13, %vm2848_vm12  ;;  %vm558_vm12 = vcmp.eq.s32.totalorder %v11596_v14, %v13507_v15 }
 0x213   : > { %3957 = vmatpush1.bf16.msra.mxu1 %v11308_v26  ;;  %v13506_v26 = vld [vmem:[#allocation76_spill] sm:$0xff] }
 0x214   : > { %3958 = vmatprep.subr.bf16.mxu1 %v13498_v40 }
 0x215   : > { %8553 = vmatmul.mubr.msk.bf16.gmra.mrb[56].mxu1 %vm8552_vm4, %v13346_v9  ;;  %vm542_vm4 = vcmp.eq.s32.totalorder %v11596_v14, %v13501_v61 }
 0x216   : > { %8555 = vmatprep.mubr.msk.bf16.mxu1 %vm8554_vm7, %v13346_v9  ;;  %vm8366_vm5 = vmpackc.low %vm550_vm1, %vm542_vm4  ;;  %vm2855_vm7 = vcmp.eq.s32.totalorder %v11004_v36, %v10743_v44  ;;  %vm2880_vm4 = vcmp.eq.s32.totalorder %v10985_v19, %v13457_v47 }
 0x217   : > { %3959 = vmatpush1.bf16.msra.mxu1 %v11344_v23  ;;  %vm8560_vm11 = vmpackc.low %vm2855_vm7, %vm2847_vm6  ;;  %vm557_vm6 = vcmp.eq.s32.totalorder %v11615_v31, %v13507_v15  ;;  %v13510_v23 = vld [vmem:[#allocation44_spill] sm:$0xff] }
 0x218   : > { %8361 = vmatmul.mubr.msk.bf16.gmra.mrb[24].mxu0 %vm8360_vm8, %v13346_v9  ;;  %3960 = vmatprep.subr.bf16.mxu1 %v13499_v30  ;;  %vm2864_vm8 = vcmp.eq.s32.totalorder %v10985_v19, %v13504_v20 }
 0x219   : > { %8363 = vmatprep.mubr.msk.bf16.mxu0 %vm8362_vm9, %v13346_v9  ;;  %vm2872_vm9 = vcmp.eq.s32.totalorder %v10985_v19, %v13505_v5 }
 0x21a   : > { %vm8562_vm15 = vmpackc.low %vm2872_vm9, %vm2864_vm8  ;;  %vm574_vm9 = vcmp.eq.s32.totalorder %v11596_v14, %v13460_v53 }
 0x21b   : > { %3961 = vmatpush1.bf16.msra.mxu1 %v11364_v34  ;;  %v13508_v34 = vld [vmem:[#allocation10_spill] sm:$0xff] }
 0x21c   : > { %3962 = vmatprep.subr.bf16.mxu1 %v13500_v57  ;;  %vm566_vm13 = vcmp.eq.s32.totalorder %v11596_v14, %v13508_v34  ;;  %vm565_vm7 = vcmp.eq.s32.totalorder %v11615_v31, %v13508_v34 }
 0x21d   : > { %8557 = vmatmul.mubr.msk.bf16.gmra.mrb[60].mxu1 %vm8556_vm0, %v13346_v9  ;;  %vm8368_vm0 = vmpackc.low %vm549_vm10, %vm541_vm14  ;;  %vm582_vm10 = vcmp.eq.s32.totalorder %v11596_v14, %v13509_v25  ;;  %vm2879_vm14 = vcmp.eq.s32.totalorder %v11004_v36, %v13457_v47 }
 0x21e   : > { %8559 = vmatprep.mubr.msk.bf16.mxu1 %vm8558_vm2, %v13346_v9  ;;  %vm8370_vm1 = vmpackc.low %vm566_vm13, %vm558_vm12  ;;  %vm2863_vm2 = vcmp.eq.s32.totalorder %v11004_v36, %v13504_v20 }
 0x21f   : > { %3963 = vmatpush1.bf16.msra.mxu1 %v13502_v16  ;;  %vm8372_vm12 = vmpackc.low %vm565_vm7, %vm557_vm6  ;;  %vm598_vm6 = vcmp.eq.s32.totalorder %v11596_v14, %v13512_v58 }
 0x220   : > { %8365 = vmatmul.mubr.msk.bf16.gmra.mrb[28].mxu0 %vm8364_vm3, %v13346_v9  ;;  %3964 = vmatprep.subr.bf16.mxu1 %v13503_v38  ;;  %vm2871_vm3 = vcmp.eq.s32.totalorder %v11004_v36, %v13505_v5  ;;  %vm8374_vm13 = vmpackc.low %vm582_vm10, %vm574_vm9  ;;  %vm2895_vm10 = vcmp.eq.s32.totalorder %v11004_v36, %v13510_v23 }
 0x221   : > { %8367 = vmatprep.mubr.msk.bf16.mxu0 %vm8366_vm5, %v13346_v9  ;;  %vm2888_vm5 = vcmp.eq.s32.totalorder %v10985_v19, %v13458_v42  ;;  %vm8564_vm8 = vmpackc.low %vm2871_vm3, %vm2863_vm2  ;;  %vm573_vm2 = vcmp.eq.s32.totalorder %v11615_v31, %v13460_v53  ;;  %vm581_vm3 = vcmp.eq.s32.totalorder %v11615_v31, %v13509_v25  ;;  %v13513_v53 = vld [vmem:[#allocation46_spill] sm:$0xff] }
 0x223   : > { %3965 = vmatpush1.bf16.msra.mxu1 %v13506_v26 }
 0x225   : > { %8561 = vmatmul.mubr.msk.bf16.gmra.mrb[64].mxu1 %vm8560_vm11, %v13346_v9  ;;  %vm8566_vm11 = vmpackc.low %vm2888_vm5, %vm2880_vm4  ;;  %vm590_vm5 = vcmp.eq.s32.totalorder %v11596_v14, %v13511_v51 }
 0x226   : > { %8563 = vmatprep.mubr.msk.bf16.mxu1 %vm8562_vm15, %v13346_v9  ;;  %vm2887_vm15 = vcmp.eq.s32.totalorder %v11004_v36, %v13458_v42  ;;  %vm8378_vm9 = vmpackc.low %vm598_vm6, %vm590_vm5  ;;  %vm2911_vm6 = vcmp.eq.s32.totalorder %v11004_v36, %v13513_v53 }
 0x227   : > { %vm8568_vm4 = vmpackc.low %vm2887_vm15, %vm2879_vm14  ;;  %vm589_vm14 = vcmp.eq.s32.totalorder %v11615_v31, %v13511_v51  ;;  %vm597_vm15 = vcmp.eq.s32.totalorder %v11615_v31, %v13512_v58 }
 0x228   : > { %8369 = vmatmul.mubr.msk.bf16.gmra.mrb[32].mxu0 %vm8368_vm0, %v13346_v9  ;;  %vm2896_vm0 = vcmp.eq.s32.totalorder %v10985_v19, %v13510_v23 }
 0x229   : > { %8371 = vmatprep.mubr.msk.bf16.mxu0 %vm8370_vm1, %v13346_v9  ;;  %vm2904_vm1 = vcmp.eq.s32.totalorder %v10985_v19, %v13466_v1 }
 0x22a   : > { %vm8570_vm7 = vmpackc.low %vm2904_vm1, %vm2896_vm0  ;;  %vm606_vm1 = vcmp.eq.s32.totalorder %v11596_v14, %v13472_v39 }
 0x22d   : > { %8565 = vmatmul.mubr.msk.bf16.gmra.mrb[68].mxu1 %vm8564_vm8, %v13346_v9  ;;  %vm8376_vm8 = vmpackc.low %vm581_vm3, %vm573_vm2  ;;  %vm614_vm2 = vcmp.eq.s32.totalorder %v11596_v14, %v13514_v22 }
 0x22e   : > { %8567 = vmatprep.mubr.msk.bf16.mxu1 %vm8566_vm11, %v13346_v9  ;;  %vm2903_vm11 = vcmp.eq.s32.totalorder %v11004_v36, %v13466_v1  ;;  %vm8382_vm5 = vmpackc.low %vm614_vm2, %vm606_vm1  ;;  %vm2927_vm2 = vcmp.eq.s32.totalorder %v11004_v36, %v13515_v13 }
 0x22f   : > { %vm8572_vm0 = vmpackc.low %vm2903_vm11, %vm2895_vm10  ;;  %vm605_vm10 = vcmp.eq.s32.totalorder %v11615_v31, %v13472_v39  ;;  %vm613_vm11 = vcmp.eq.s32.totalorder %v11615_v31, %v13514_v22  ;;  %v13518_v39 = vld [vmem:[#allocation50_spill] sm:$0xff] }
 0x230   : > { %8373 = vmatmul.mubr.msk.bf16.gmra.mrb[36].mxu0 %vm8372_vm12, %v13346_v9  ;;  %vm2912_vm12 = vcmp.eq.s32.totalorder %v10985_v19, %v13513_v53 }
 0x231   : > { %8375 = vmatprep.mubr.msk.bf16.mxu0 %vm8374_vm13, %v13346_v9  ;;  %vm2920_vm13 = vcmp.eq.s32.totalorder %v10985_v19, %v13471_v50 }
 0x232   : > { %vm8574_vm3 = vmpackc.low %vm2920_vm13, %vm2912_vm12  ;;  %vm622_vm13 = vcmp.eq.s32.totalorder %v11596_v14, %v13516_v59 }
 0x235   : > { %8569 = vmatmul.mubr.msk.bf16.gmra.mrb[72].mxu1 %vm8568_vm4, %v13346_v9  ;;  %vm8380_vm4 = vmpackc.low %vm597_vm15, %vm589_vm14  ;;  %vm630_vm14 = vcmp.eq.s32.totalorder %v11596_v14, %v13517_v60 }
 0x236   : > { %8571 = vmatprep.mubr.msk.bf16.mxu1 %vm8570_vm7, %v13346_v9  ;;  %vm2919_vm7 = vcmp.eq.s32.totalorder %v11004_v36, %v13471_v50  ;;  %vm8386_vm1 = vmpackc.low %vm630_vm14, %vm622_vm13  ;;  %vm2943_vm14 = vcmp.eq.s32.totalorder %v11004_v36, %v13518_v39 }
 0x237   : > { %vm8576_vm12 = vmpackc.low %vm2919_vm7, %vm2911_vm6  ;;  %vm621_vm6 = vcmp.eq.s32.totalorder %v11615_v31, %v13516_v59  ;;  %vm629_vm7 = vcmp.eq.s32.totalorder %v11615_v31, %v13517_v60 }
 0x238   : > { %8377 = vmatmul.mubr.msk.bf16.gmra.mrb[40].mxu0 %vm8376_vm8, %v13346_v9  ;;  %vm2928_vm8 = vcmp.eq.s32.totalorder %v10985_v19, %v13515_v13 }
 0x239   : > { %8379 = vmatprep.mubr.msk.bf16.mxu0 %vm8378_vm9, %v13346_v9  ;;  %vm2936_vm9 = vcmp.eq.s32.totalorder %v10985_v19, %v13475_v62 }
 0x23a   : > { %vm8578_vm15 = vmpackc.low %vm2936_vm9, %vm2928_vm8  ;;  %vm638_vm9 = vcmp.eq.s32.totalorder %v11596_v14, %v13384_v10 }
 0x23d   : > { %8573 = vmatmul.mubr.msk.bf16.gmra.mrb[76].mxu1 %vm8572_vm0, %v13346_v9  ;;  %vm8384_vm0 = vmpackc.low %vm613_vm11, %vm605_vm10  ;;  %vm646_vm10 = vcmp.eq.s32.totalorder %v11596_v14, %v13519_v6 }
 0x23e   : > { %8575 = vmatprep.mubr.msk.bf16.mxu1 %vm8574_vm3, %v13346_v9  ;;  %vm2935_vm3 = vcmp.eq.s32.totalorder %v11004_v36, %v13475_v62  ;;  %vm8390_vm13 = vmpackc.low %vm646_vm10, %vm638_vm9  ;;  %vm2959_vm10 = vcmp.eq.s32.totalorder %v11004_v36, %v13520_v48 }
 0x23f   : > { %vm8580_vm8 = vmpackc.low %vm2935_vm3, %vm2927_vm2  ;;  %vm637_vm2 = vcmp.eq.s32.totalorder %v11615_v31, %v13384_v10  ;;  %vm645_vm3 = vcmp.eq.s32.totalorder %v11615_v31, %v13519_v6  ;;  %v13522_v10 = vld [vmem:[#allocation23_spill] sm:$0xff] }
 0x240   : > { %8381 = vmatmul.mubr.msk.bf16.gmra.mrb[44].mxu0 %vm8380_vm4, %v13346_v9  ;;  %vm2944_vm4 = vcmp.eq.s32.totalorder %v10985_v19, %v13518_v39 }
 0x241   : > { %8383 = vmatprep.mubr.msk.bf16.mxu0 %vm8382_vm5, %v13346_v9  ;;  %vm2952_vm5 = vcmp.eq.s32.totalorder %v10985_v19, %v10932_v37 }
 0x242   : > { %vm8582_vm11 = vmpackc.low %vm2952_vm5, %vm2944_vm4  ;;  %vm654_vm5 = vcmp.eq.s32.totalorder %v11596_v14, %v13388_v32 }
 0x245   : > { %8577 = vmatmul.mubr.msk.bf16.gmra.mrb[80].mxu1 %vm8576_vm12, %v13346_v9  ;;  %vm8388_vm12 = vmpackc.low %vm629_vm7, %vm621_vm6  ;;  %vm662_vm6 = vcmp.eq.s32.totalorder %v11596_v14, %v13521_v45 }
 0x246   : > { %8579 = vmatprep.mubr.msk.bf16.mxu1 %vm8578_vm15, %v13346_v9  ;;  %vm2951_vm15 = vcmp.eq.s32.totalorder %v11004_v36, %v10932_v37  ;;  %vm8394_vm9 = vmpackc.low %vm662_vm6, %vm654_vm5  ;;  %vm2738_vm5 = vcmp.eq.s32.totalorder %v11596_v14, %v10377_v55  ;;  %vm2746_vm6 = vcmp.eq.s32.totalorder %v11596_v14, %v10384_v46 }
 0x247   : > { %vm8584_vm4 = vmpackc.low %vm2951_vm15, %vm2943_vm14  ;;  %vm653_vm14 = vcmp.eq.s32.totalorder %v11615_v31, %v13388_v32  ;;  %vm661_vm15 = vcmp.eq.s32.totalorder %v11615_v31, %v13521_v45  ;;  %v13524_v32 = vld [vmem:[#allocation5_spill] sm:$0xff] }
 0x248   : > { %8385 = vmatmul.mubr.msk.bf16.gmra.mrb[48].mxu0 %vm8384_vm0, %v13346_v9  ;;  %vm2960_vm0 = vcmp.eq.s32.totalorder %v10985_v19, %v13520_v48 }
 0x249   : > { %8387 = vmatprep.mubr.msk.bf16.mxu0 %vm8386_vm1, %v13346_v9  ;;  %vm2968_vm1 = vcmp.eq.s32.totalorder %v10985_v19, %v13480_v56  ;;  %v4164_v19 = vpop.permute.xlu1 %4163 }
 0x24a   : > { %vm8586_vm7 = vmpackc.low %vm2968_vm1, %vm2960_vm0 }
 0x24d   : > { %8581 = vmatmul.mubr.msk.bf16.gmra.mrb[84].mxu1 %vm8580_vm8, %v13346_v9  ;;  %vm8392_vm8 = vmpackc.low %vm645_vm3, %vm637_vm2  ;;  %vm2721_vm3 = vcmp.eq.s32.totalorder %v11615_v31, %v10345_v54  ;;  %v4170_v41 = vpop.permute.xlu1 %4169 }
 0x24e   : > { %8583 = vmatprep.mubr.msk.bf16.mxu1 %vm8582_vm11, %v13346_v9  ;;  %vm2967_vm11 = vcmp.eq.s32.totalorder %v11004_v36, %v13480_v56  ;;  %vm8396_vm2 = vmpackc.low %vm661_vm15, %vm653_vm14  ;;  %v4161_v36 = vpop.permute.xlu0 %4160  ;;  %vm2754_vm14 = vcmp.eq.s32.totalorder %v11596_v14, %v10429_v28  ;;  %vm2762_vm15 = vcmp.eq.s32.totalorder %v11596_v14, %v10432_v18 }
 0x24f   : > { %vm8588_vm0 = vmpackc.low %vm2967_vm11, %vm2959_vm10 }
 0x250   : > { %8389 = vmatmul.mubr.msk.bf16.gmra.mrb[52].mxu0 %vm8388_vm12, %v13346_v9  ;;  %vm2722_vm12 = vcmp.eq.s32.totalorder %v11596_v14, %v10345_v54  ;;  %vm8594_vm10 = vmpackc.low %vm2746_vm6, %vm2738_vm5  ;;  %vm2753_vm5 = vcmp.eq.s32.totalorder %v11615_v31, %v10429_v28  ;;  %vm2761_vm6 = vcmp.eq.s32.totalorder %v11615_v31, %v10432_v18 }
 0x251   : > { %8391 = vmatprep.mubr.msk.bf16.mxu0 %vm8390_vm13, %v13346_v9  ;;  %vm2730_vm13 = vcmp.eq.s32.totalorder %v11596_v14, %v13522_v10 }
 0x252   : > { %vm8590_vm1 = vmpackc.low %vm2730_vm13, %vm2722_vm12  ;;  %v4167_v54 = vpop.permute.xlu0 %4166  ;;  %vm2737_vm12 = vcmp.eq.s32.totalorder %v11615_v31, %v10377_v55  ;;  %vm2745_vm13 = vcmp.eq.s32.totalorder %v11615_v31, %v10384_v46  ;;  %v4176_v55 = vpop.permute.xlu1 %4175 }
 0x255   : > { %8585 = vmatmul.mubr.msk.bf16.gmra.mrb[88].mxu1 %vm8584_vm4, %v13346_v9  ;;  %vm2729_vm4 = vcmp.eq.s32.totalorder %v11615_v31, %v13522_v10 }
 0x256   : > { %8587 = vmatprep.mubr.msk.bf16.mxu1 %vm8586_vm7, %v13346_v9  ;;  %vm4255_vm7 = vcmp.eq.s32.totalorder %v13524_v32, %v4161_v36  ;;  %v4173_v46 = vpop.permute.xlu0 %4172  ;;  %v4182_v28 = vpop.permute.xlu1 %4181 }
 0x258   : > { %8393 = vmatmul.mubr.msk.bf16.gmra.mrb[56].mxu0 %vm8392_vm8, %v13346_v9  ;;  %vm4256_vm8 = vcmp.eq.s32.totalorder %v13524_v32, %v4164_v19 }
 0x259   : > { %8395 = vmatprep.mubr.msk.bf16.mxu0 %vm8394_vm9, %v13346_v9  ;;  %vm8592_vm9 = vmpackc.low %vm2729_vm4, %vm2721_vm3 }
 0x25a   : > { %vm8670_vm11 = vmpackc.low %vm4256_vm8, %vm4255_vm7  ;;  %vm2770_vm7 = vcmp.eq.s32.totalorder %v11596_v14, %v10481_v3  ;;  %vm2778_vm8 = vcmp.eq.s32.totalorder %v11596_v14, %v10483_v4  ;;  %v4179_v18 = vpop.permute.xlu0 %4178 }
 0x25b   : > { %vm8598_vm3 = vmpackc.low %vm2762_vm15, %vm2754_vm14  ;;  %vm2769_vm14 = vcmp.eq.s32.totalorder %v11615_v31, %v10481_v3  ;;  %vm2777_vm15 = vcmp.eq.s32.totalorder %v11615_v31, %v10483_v4  ;;  %v4188_v3 = vpop.permute.xlu1 %4187 }
 0x25d   : > { %8589 = vmatmul.mubr.msk.bf16.gmra.mrb[92].mxu1 %vm8588_vm0, %v13346_v9  ;;  %vm4257_vm0 = vcmp.eq.s32.totalorder %v13524_v32, %v4167_v54  ;;  %v13525_v54 = vld [vmem:[#allocation27_spill] sm:$0xff] }
 0x25e   : > { %8591 = vmatprep.mubr.msk.bf16.mxu1 %vm8590_vm1, %v13346_v9  ;;  %vm4258_vm1 = vcmp.eq.s32.totalorder %v13524_v32, %v4170_v41  ;;  %v4185_v4 = vpop.permute.xlu0 %4184 }
 0x25f   : > { %vm8672_vm4 = vmpackc.low %vm4258_vm1, %vm4257_vm0  ;;  %vm2786_vm0 = vcmp.eq.s32.totalorder %v11596_v14, %v10533_v11  ;;  %vm2794_vm1 = vcmp.eq.s32.totalorder %v11596_v14, %v10535_v33 }
 0x260   : > { %8397 = vmatmul.mubr.msk.bf16.gmra.mrb[60].mxu0 %vm8396_vm2, %v13346_v9  ;;  %vm8596_vm2 = vmpackc.low %vm2745_vm13, %vm2737_vm12 }
 0x261   : > { %4463 = vmatprep.mubr.bf16.mxu0 %v13523_v49  ;;  %vm8602_vm12 = vmpackc.low %vm2778_vm8, %vm2770_vm7  ;;  %vm2785_vm7 = vcmp.eq.s32.totalorder %v11615_v31, %v10533_v11  ;;  %vm2793_vm8 = vcmp.eq.s32.totalorder %v11615_v31, %v10535_v33  ;;  %v4194_v11 = vpop.permute.xlu1 %4193 }
 0x262   : > { %v4191_v33 = vpop.permute.xlu0 %4190 }
 0x265   : > { %8593 = vmatmul.mubr.msk.bf16.vlgmr.msra.gmra.mrb[32].mxu1 %vm8592_vm9, %v13346_v9  ;;  %vm4259_vm9 = vcmp.eq.s32.totalorder %v13524_v32, %v4173_v46 }
 0x266   : > { %8595 = vmatprep.mubr.msk.bf16.mxu1 %vm8594_vm10, %v13346_v9  ;;  %vm4260_vm10 = vcmp.eq.s32.totalorder %v13524_v32, %v4176_v55  ;;  %v13526_v55 = vld [vmem:[#allocation55_spill] sm:$0xff] }
 0x267   : > { %vm8674_vm13 = vmpackc.low %vm4260_vm10, %vm4259_vm9  ;;  %vm2802_vm9 = vcmp.eq.s32.totalorder %v11596_v14, %v10585_v21  ;;  %vm2810_vm10 = vcmp.eq.s32.totalorder %v11596_v14, %v10587_v52 }
 0x268   : > { %8671 = vmatmul.mubr.msk.bf16.vlgmr.msra.gmra.mrb[64].mxu0 %vm8670_vm11, %v13346_v9  ;;  %vm8600_vm11 = vmpackc.low %vm2761_vm6, %vm2753_vm5 }
 0x269   : > { %4473 = vmatprep.mubr.bf16.mxu0 %v13523_v49  ;;  %vm8606_vm5 = vmpackc.low %vm2794_vm1, %vm2786_vm0  ;;  %vm2801_vm0 = vcmp.eq.s32.totalorder %v11615_v31, %v10585_v21  ;;  %vm2809_vm1 = vcmp.eq.s32.totalorder %v11615_v31, %v10587_v52  ;;  %v4197_v52 = vpop.permute.xlu0 %4196  ;;  %v4200_v21 = vpop.permute.xlu1 %4199 }
 0x26d   : > { %8597 = vmatmul.mubr.msk.bf16.gmra.mrb[36].mxu1 %vm8596_vm2, %v13346_v9  ;;  %vm4261_vm2 = vcmp.eq.s32.totalorder %v13524_v32, %v4179_v18 }
 0x26e   : > { %8599 = vmatprep.mubr.msk.bf16.mxu1 %vm8598_vm3, %v13346_v9  ;;  %vm4262_vm3 = vcmp.eq.s32.totalorder %v13524_v32, %v4182_v28 }
 0x26f   : > { %vm8676_vm6 = vmpackc.low %vm4262_vm3, %vm4261_vm2  ;;  %vm2818_vm2 = vcmp.eq.s32.totalorder %v11596_v14, %v10637_v27  ;;  %vm2826_vm3 = vcmp.eq.s32.totalorder %v11596_v14, %v10639_v12 }
 0x270   : > { %8673 = vmatmul.mubr.msk.bf16.gmra.mrb[68].mxu0 %vm8672_vm4, %v13346_v9  ;;  %vm8604_vm4 = vmpackc.low %vm2777_vm15, %vm2769_vm14 }
 0x271   : > { %4483 = vmatprep.mubr.bf16.mxu0 %v13523_v49  ;;  %vm8610_vm14 = vmpackc.low %vm2810_vm10, %vm2802_vm9  ;;  %vm2817_vm9 = vcmp.eq.s32.totalorder %v11615_v31, %v10637_v27  ;;  %vm2825_vm10 = vcmp.eq.s32.totalorder %v11615_v31, %v10639_v12  ;;  %v4203_v12 = vpop.permute.xlu0 %4202  ;;  %v4206_v27 = vpop.permute.xlu1 %4205 }
 0x275   : > { %8601 = vmatmul.mubr.msk.bf16.gmra.mrb[40].mxu1 %vm8600_vm11, %v13346_v9  ;;  %vm4263_vm11 = vcmp.eq.s32.totalorder %v13524_v32, %v4185_v4  ;;  %v13527_v4 = vld [vmem:[#allocation57_spill] sm:$0xff] }
 0x276   : > { %8603 = vmatprep.mubr.msk.bf16.mxu1 %vm8602_vm12, %v13346_v9  ;;  %vm4264_vm12 = vcmp.eq.s32.totalorder %v13524_v32, %v4188_v3 }
 0x277   : > { %vm8678_vm15 = vmpackc.low %vm4264_vm12, %vm4263_vm11  ;;  %vm2834_vm11 = vcmp.eq.s32.totalorder %v11596_v14, %v10689_v35  ;;  %vm2842_vm12 = vcmp.eq.s32.totalorder %v11596_v14, %v10691_v2 }
 0x278   : > { %8675 = vmatmul.mubr.msk.bf16.gmra.mrb[72].mxu0 %vm8674_vm13, %v13346_v9  ;;  %vm8608_vm13 = vmpackc.low %vm2793_vm8, %vm2785_vm7 }
 0x279   : > { %4493 = vmatprep.mubr.bf16.mxu0 %v13523_v49  ;;  %vm8614_vm7 = vmpackc.low %vm2826_vm3, %vm2818_vm2  ;;  %vm2833_vm2 = vcmp.eq.s32.totalorder %v11615_v31, %v10689_v35  ;;  %vm2841_vm3 = vcmp.eq.s32.totalorder %v11615_v31, %v10691_v2  ;;  %v4209_v2 = vpop.permute.xlu0 %4208  ;;  %v4212_v35 = vpop.permute.xlu1 %4211 }
 0x27d   : > { %8605 = vmatmul.mubr.msk.bf16.gmra.mrb[44].mxu1 %vm8604_vm4, %v13346_v9  ;;  %vm4265_vm4 = vcmp.eq.s32.totalorder %v13524_v32, %v4191_v33 }
 0x27e   : > { %8607 = vmatprep.mubr.msk.bf16.mxu1 %vm8606_vm5, %v13346_v9  ;;  %vm4266_vm5 = vcmp.eq.s32.totalorder %v13524_v32, %v4194_v11  ;;  %v13528_v11 = vld [vmem:[#allocation28_spill] sm:$0xff] }
 0x27f   : > { %vm8680_vm8 = vmpackc.low %vm4266_vm5, %vm4265_vm4  ;;  %vm2850_vm4 = vcmp.eq.s32.totalorder %v11596_v14, %v10741_v43  ;;  %vm2858_vm5 = vcmp.eq.s32.totalorder %v11596_v14, %v10743_v44 }
 0x280   : > { %8677 = vmatmul.mubr.msk.bf16.gmra.mrb[76].mxu0 %vm8676_vm6, %v13346_v9  ;;  %vm8612_vm6 = vmpackc.low %vm2809_vm1, %vm2801_vm0 }
 0x281   : > { %4503 = vmatprep.mubr.bf16.mxu0 %v13523_v49  ;;  %vm8618_vm0 = vmpackc.low %vm2842_vm12, %vm2834_vm11  ;;  %vm2849_vm11 = vcmp.eq.s32.totalorder %v11615_v31, %v10741_v43  ;;  %vm2857_vm12 = vcmp.eq.s32.totalorder %v11615_v31, %v10743_v44  ;;  %v4215_v44 = vpop.permute.xlu0 %4214  ;;  %v4218_v43 = vpop.permute.xlu1 %4217 }
 0x285   : > { %8609 = vmatmul.mubr.msk.bf16.gmra.mrb[48].mxu1 %vm8608_vm13, %v13346_v9  ;;  %vm4267_vm13 = vcmp.eq.s32.totalorder %v13524_v32, %v4197_v52  ;;  %v4221_v24 = vpop.permute.xlu0 %4220  ;;  %v4224_v29 = vpop.permute.xlu1 %4223 }
 0x286   : > { %8611 = vmatprep.mubr.msk.bf16.mxu1 %vm8610_vm14, %v13346_v9  ;;  %vm4268_vm14 = vcmp.eq.s32.totalorder %v13524_v32, %v4200_v21 }
 0x287   : > { %vm8682_vm1 = vmpackc.low %vm4268_vm14, %vm4267_vm13  ;;  %vm2866_vm13 = vcmp.eq.s32.totalorder %v11596_v14, %v13504_v20  ;;  %vm2874_vm14 = vcmp.eq.s32.totalorder %v11596_v14, %v13505_v5 }
 0x288   : > { %8679 = vmatmul.mubr.msk.bf16.gmra.mrb[80].mxu0 %vm8678_vm15, %v13346_v9  ;;  %vm8616_vm15 = vmpackc.low %vm2825_vm10, %vm2817_vm9 }
 0x289   : > { %4513 = vmatprep.mubr.bf16.mxu0 %v13523_v49  ;;  %vm8622_vm9 = vmpackc.low %vm2858_vm5, %vm2850_vm4  ;;  %vm2865_vm4 = vcmp.eq.s32.totalorder %v11615_v31, %v13504_v20  ;;  %vm2873_vm5 = vcmp.eq.s32.totalorder %v11615_v31, %v13505_v5 }
 0x28d   : > { %8613 = vmatmul.mubr.msk.bf16.gmra.mrb[52].mxu1 %vm8612_vm6, %v13346_v9  ;;  %vm4269_vm6 = vcmp.eq.s32.totalorder %v13524_v32, %v4203_v12  ;;  %v13529_v12 = vld [vmem:[#allocation58_spill] sm:$0xff] }
 0x28e   : > { %8615 = vmatprep.mubr.msk.bf16.mxu1 %vm8614_vm7, %v13346_v9  ;;  %vm4270_vm7 = vcmp.eq.s32.totalorder %v13524_v32, %v4206_v27 }
 0x28f   : > { %vm8684_vm10 = vmpackc.low %vm4270_vm7, %vm4269_vm6  ;;  %vm2882_vm6 = vcmp.eq.s32.totalorder %v11596_v14, %v13457_v47  ;;  %vm2890_vm7 = vcmp.eq.s32.totalorder %v11596_v14, %v13458_v42 }
 0x290   : > { %8681 = vmatmul.mubr.msk.bf16.gmra.mrb[84].mxu0 %vm8680_vm8, %v13346_v9  ;;  %vm8620_vm8 = vmpackc.low %vm2841_vm3, %vm2833_vm2 }
 0x291   : > { %4523 = vmatprep.mubr.bf16.mxu0 %v13523_v49  ;;  %vm8626_vm2 = vmpackc.low %vm2874_vm14, %vm2866_vm13  ;;  %vm2881_vm13 = vcmp.eq.s32.totalorder %v11615_v31, %v13457_v47  ;;  %vm2889_vm14 = vcmp.eq.s32.totalorder %v11615_v31, %v13458_v42  ;;  %v4227_v42 = vpop.permute.xlu0 %4226  ;;  %v4230_v47 = vpop.permute.xlu1 %4229 }
 0x295   : > { %8617 = vmatmul.mubr.msk.bf16.gmra.mrb[56].mxu1 %vm8616_vm15, %v13346_v9  ;;  %vm4271_vm15 = vcmp.eq.s32.totalorder %v13524_v32, %v4209_v2  ;;  %v4236_v7 = vpop.permute.xlu1 %4235 }
 0x296   : > { %8619 = vmatprep.mubr.msk.bf16.mxu1 %vm8618_vm0, %v13346_v9  ;;  %vm4272_vm0 = vcmp.eq.s32.totalorder %v13524_v32, %v4212_v35  ;;  %v13530_v35 = vld [vmem:[#allocation59_spill] sm:$0xff] }
 0x297   : > { %vm8686_vm3 = vmpackc.low %vm4272_vm0, %vm4271_vm15  ;;  %vm2898_vm15 = vcmp.eq.s32.totalorder %v11596_v14, %v13510_v23  ;;  %vm2906_vm0 = vcmp.eq.s32.totalorder %v11596_v14, %v13466_v1 }
 0x298   : > { %8683 = vmatmul.mubr.msk.bf16.gmra.mrb[88].mxu0 %vm8682_vm1, %v13346_v9  ;;  %vm8624_vm1 = vmpackc.low %vm2857_vm12, %vm2849_vm11 }
 0x299   : > { %4533 = vmatprep.mubr.bf16.mxu0 %v13523_v49  ;;  %vm8630_vm11 = vmpackc.low %vm2890_vm7, %vm2882_vm6  ;;  %vm2897_vm6 = vcmp.eq.s32.totalorder %v11615_v31, %v13510_v23  ;;  %vm2905_vm7 = vcmp.eq.s32.totalorder %v11615_v31, %v13466_v1  ;;  %v4233_v1 = vpop.permute.xlu0 %4232  ;;  %v4242_v16 = vpop.permute.xlu1 %4241 }
 0x29d   : > { %8621 = vmatmul.mubr.msk.bf16.gmra.mrb[60].mxu1 %vm8620_vm8, %v13346_v9  ;;  %vm4273_vm8 = vcmp.eq.s32.totalorder %v13524_v32, %v4215_v44  ;;  %v4248_v15 = vpop.permute.xlu1 %4247 }
 0x29e   : > { %8623 = vmatprep.mubr.msk.bf16.mxu1 %vm8622_vm9, %v13346_v9  ;;  %vm4274_vm9 = vcmp.eq.s32.totalorder %v13524_v32, %v4218_v43 }
 0x29f   : > { %vm8688_vm12 = vmpackc.low %vm4274_vm9, %vm4273_vm8  ;;  %vm2914_vm8 = vcmp.eq.s32.totalorder %v11596_v14, %v13513_v53  ;;  %vm2922_vm9 = vcmp.eq.s32.totalorder %v11596_v14, %v13471_v50 }
 0x2a0   : > { %8685 = vmatmul.mubr.msk.bf16.gmra.mrb[92].mxu0 %vm8684_vm10, %v13346_v9  ;;  %vm8628_vm10 = vmpackc.low %vm2873_vm5, %vm2865_vm4 }
 0x2a1   : > { %4543 = vmatprep.mubr.bf16.mxu0 %v13523_v49  ;;  %vm8634_vm4 = vmpackc.low %vm2906_vm0, %vm2898_vm15  ;;  %vm2913_vm15 = vcmp.eq.s32.totalorder %v11615_v31, %v13513_v53  ;;  %vm2921_vm0 = vcmp.eq.s32.totalorder %v11615_v31, %v13471_v50  ;;  %v4239_v50 = vpop.permute.xlu0 %4238 }
 0x2a5   : > { %8625 = vmatmul.mubr.msk.bf16.gmra.mrb[64].mxu1 %vm8624_vm1, %v13346_v9  ;;  %vm4275_vm1 = vcmp.eq.s32.totalorder %v13524_v32, %v4221_v24  ;;  %v13531_v24 = vld [vmem:[#allocation61_spill] sm:$0xff] }
 0x2a6   : > { %8627 = vmatprep.mubr.msk.bf16.mxu1 %vm8626_vm2, %v13346_v9  ;;  %vm4276_vm2 = vcmp.eq.s32.totalorder %v13524_v32, %v4224_v29 }
 0x2a7   : > { %vm8690_vm5 = vmpackc.low %vm4276_vm2, %vm4275_vm1  ;;  %vm2930_vm1 = vcmp.eq.s32.totalorder %v11596_v14, %v13515_v13  ;;  %vm2938_vm2 = vcmp.eq.s32.totalorder %v11596_v14, %v13475_v62 }
 0x2a8   : > { %8687 = vmatmul.mubr.msk.bf16.gmra.mrb[96].mxu0 %vm8686_vm3, %v13346_v9  ;;  %vm8632_vm3 = vmpackc.low %vm2889_vm14, %vm2881_vm13 }
 0x2a9   : > { %4553 = vmatprep.mubr.bf16.mxu0 %v13523_v49  ;;  %vm8638_vm13 = vmpackc.low %vm2922_vm9, %vm2914_vm8  ;;  %vm2929_vm8 = vcmp.eq.s32.totalorder %v11615_v31, %v13515_v13  ;;  %vm2937_vm9 = vcmp.eq.s32.totalorder %v11615_v31, %v13475_v62  ;;  %v4245_v62 = vpop.permute.xlu0 %4244 }
 0x2ad   : > { %8629 = vmatmul.mubr.msk.bf16.gmra.mrb[68].mxu1 %vm8628_vm10, %v13346_v9  ;;  %vm4277_vm10 = vcmp.eq.s32.totalorder %v13524_v32, %v4227_v42 }
 0x2ae   : > { %8631 = vmatprep.mubr.msk.bf16.mxu1 %vm8630_vm11, %v13346_v9  ;;  %vm4278_vm11 = vcmp.eq.s32.totalorder %v13524_v32, %v4230_v47  ;;  %v13532_v47 = vld [vmem:[#allocation30_spill] sm:$0xff] }
 0x2af   : > { %vm8692_vm14 = vmpackc.low %vm4278_vm11, %vm4277_vm10  ;;  %vm2946_vm10 = vcmp.eq.s32.totalorder %v11596_v14, %v13518_v39  ;;  %vm2954_vm11 = vcmp.eq.s32.totalorder %v11596_v14, %v10932_v37 }
 0x2b0   : > { %8689 = vmatmul.mubr.msk.bf16.gmra.mrb[100].mxu0 %vm8688_vm12, %v13346_v9  ;;  %vm8636_vm12 = vmpackc.low %vm2905_vm7, %vm2897_vm6 }
 0x2b1   : > { %4563 = vmatprep.mubr.bf16.mxu0 %v13523_v49  ;;  %vm8642_vm6 = vmpackc.low %vm2938_vm2, %vm2930_vm1  ;;  %vm2945_vm1 = vcmp.eq.s32.totalorder %v11615_v31, %v13518_v39  ;;  %vm2953_vm2 = vcmp.eq.s32.totalorder %v11615_v31, %v10932_v37  ;;  %v4251_v37 = vpop.permute.xlu0 %4250 }
 0x2b5   : > { %8633 = vmatmul.mubr.msk.bf16.gmra.mrb[72].mxu1 %vm8632_vm3, %v13346_v9  ;;  %vm4279_vm3 = vcmp.eq.s32.totalorder %v13524_v32, %v4233_v1 }
 0x2b6   : > { %8635 = vmatprep.mubr.msk.bf16.mxu1 %vm8634_vm4, %v13346_v9  ;;  %vm4280_vm4 = vcmp.eq.s32.totalorder %v13524_v32, %v4236_v7 }
 0x2b7   : > { %vm8694_vm7 = vmpackc.low %vm4280_vm4, %vm4279_vm3  ;;  %vm2962_vm3 = vcmp.eq.s32.totalorder %v11596_v14, %v13520_v48  ;;  %vm2970_vm4 = vcmp.eq.s32.totalorder %v11596_v14, %v13480_v56  ;;  %v4254_v14 = vpop.permute.xlu1 %4253 }
 0x2b8   : > { %8691 = vmatmul.mubr.msk.bf16.gmra.mrb[104].mxu0 %vm8690_vm5, %v13346_v9  ;;  %vm8640_vm5 = vmpackc.low %vm2921_vm0, %vm2913_vm15 }
 0x2b9   : > { %4573 = vmatprep.mubr.bf16.mxu0 %v13523_v49  ;;  %vm8646_vm15 = vmpackc.low %vm2954_vm11, %vm2946_vm10  ;;  %vm2961_vm10 = vcmp.eq.s32.totalorder %v11615_v31, %v13520_v48  ;;  %vm2969_vm11 = vcmp.eq.s32.totalorder %v11615_v31, %v13480_v56 }
 0x2bb   : > { %v12167_v0 = vpop.f32.mrb[0].mxu0 }
 0x2bc   : > { %v12175_v63 = vpop.f32.mrb[1].mxu0 }
 0x2bd   : > { %v12177_v8 = vpop.f32.mrb[2].mxu0  ;;  %8637 = vmatmul.mubr.msk.bf16.gmra.mrb[76].mxu1 %vm8636_vm12, %v13346_v9  ;;  %vm4281_vm12 = vcmp.eq.s32.totalorder %v13524_v32, %v4239_v50  ;;  %v13533_v50 = vld [vmem:[#allocation62_spill] sm:$0xff] }
 0x2be   : > { %v12179_v17 = vpop.f32.mrb[3].mxu0  ;;  %8639 = vmatprep.mubr.msk.bf16.mxu1 %vm8638_vm13, %v13346_v9  ;;  %vm4282_vm13 = vcmp.eq.s32.totalorder %v13524_v32, %v4242_v16 }
 0x2bf   : > { %vm8696_vm0 = vmpackc.low %vm4282_vm13, %vm4281_vm12  ;;  %vm4285_vm12 = vcmp.eq.s32.totalorder %v13524_v32, %v4251_v37  ;;  %vm4286_vm13 = vcmp.eq.s32.totalorder %v13524_v32, %v4254_v14 }
 0x2c0   : > { %8693 = vmatmul.mubr.msk.bf16.gmra.mrb[108].mxu0 %vm8692_vm14, %v13346_v9  ;;  %vm8644_vm14 = vmpackc.low %vm2937_vm9, %vm2929_vm8 }
 0x2c1   : > { %4583 = vmatprep.mubr.bf16.mxu0 %v13523_v49  ;;  %vm8650_vm8 = vmpackc.low %vm2970_vm4, %vm2962_vm3  ;;  %vm7726_vm3 = vcmask 326912   ;;  %vm7733_vm4 = vcmask 392512  }
 0x2c3   : > { %v12189_v40 = vpop.f32.mrb[4].mxu0 }
 0x2c4   : > { %v12197_v30 = vpop.f32.mrb[5].mxu0 }
 0x2c5   : > { %v12199_v57 = vpop.f32.mrb[6].mxu0  ;;  %8641 = vmatmul.mubr.msk.bf16.gmra.mrb[80].mxu1 %vm8640_vm5, %v13346_v9  ;;  %vm4283_vm5 = vcmp.eq.s32.totalorder %v13524_v32, %v4245_v62 }
 0x2c6   : > { %v12201_v61 = vpop.f32.mrb[7].mxu0  ;;  %8643 = vmatprep.mubr.msk.bf16.mxu1 %vm8642_vm6, %v13346_v9  ;;  %vm4284_vm6 = vcmp.eq.s32.totalorder %v13524_v32, %v4248_v15  ;;  %v13534_v15 = vld [vmem:[#allocation63_spill] sm:$0xff] }
 0x2c7   : > { %vm8698_vm9 = vmpackc.low %vm4284_vm6, %vm4283_vm5  ;;  %v13556_v32 = vld [vmem:[#allocation75_spill] sm:$0xff]  ;;  %vm7740_vm5 = vcmask 458112   ;;  %vm7747_vm6 = vcmask 523712  }
 0x2c8   : > { %8695 = vmatmul.mubr.msk.bf16.gmra.mrb[112].mxu0 %vm8694_vm7, %v13346_v9  ;;  %vm8648_vm7 = vmpackc.low %vm2953_vm2, %vm2945_vm1  ;;  %vm7712_vm1 = vcmask 195712   ;;  %vm7719_vm2 = vcmask 261312  }
 0x2c9   : > { %4593 = vmatprep.mubr.bf16.mxu0 %v13523_v49 }
 0x2cb   : > { %v12211_v38 = vpop.f32.mrb[8].mxu0 }
 0x2cc   : > { %v12219_v20 = vpop.f32.mrb[9].mxu0 }
 0x2cd   : > { %v12221_v5 = vpop.f32.mrb[10].mxu0  ;;  %8645 = vmatmul.mubr.msk.bf16.gmra.mrb[84].mxu1 %vm8644_vm14, %v13346_v9  ;;  %vm8652_vm14 = vmpackc.low %vm2969_vm11, %vm2961_vm10  ;;  %vm7775_vm10 = vcmask 786112   ;;  %vm7782_vm11 = vcmask 851712  }
 0x2ce   : > { %v12223_v26 = vpop.f32.mrb[11].mxu0  ;;  %8647 = vmatprep.mubr.msk.bf16.mxu1 %vm8646_vm15, %v13346_v9  ;;  %vm8700_vm15 = vmpackc.low %vm4286_vm13, %vm4285_vm12  ;;  %vm7789_vm12 = vcmask 917312   ;;  %vm7796_vm13 = vcmask 982912  }
 0x2d0   : > { %8697 = vmatmul.mubr.msk.bf16.gmra.mrb[116].mxu0 %vm8696_vm0, %v13346_v9  ;;  %vm7705_vm0 = vcmask 130112  }
 0x2d1   : > { %4603 = vmatprep.mubr.bf16.mxu0 %v13523_v49 }
 0x2d3   : > { %v12233_v34 = vpop.f32.mrb[12].mxu0 }
 0x2d4   : > { %v12241_v25 = vpop.f32.mrb[13].mxu0 }
 0x2d5   : > { %v12243_v23 = vpop.f32.mrb[14].mxu0  ;;  %8649 = vmatmul.mubr.msk.bf16.gmra.mrb[88].mxu1 %vm8648_vm7, %v13346_v9  ;;  %vm7754_vm7 = vcmask 589312  }
 0x2d6   : > { %v12245_v51 = vpop.f32.mrb[15].mxu0  ;;  %8651 = vmatprep.mubr.msk.bf16.mxu1 %vm8650_vm8, %v13346_v9  ;;  %vm7761_vm8 = vcmask 654912  }
 0x2d8   : > { %8699 = vmatmul.mubr.msk.bf16.gmra.mrb[120].mxu0 %vm8698_vm9, %v13346_v9  ;;  %vm7768_vm9 = vcmask 720512  }
 0x2d9   : > { %4613 = vmatprep.mubr.bf16.mxu0 %v13523_v49 }
 0x2db   : > { %v12255_v58 = vpop.f32.mrb[16].mxu0 }
 0x2dc   : > { %v12259_v53 = vpop.f32.mrb[17].mxu0 }
 0x2dd   : > { %v12261_v22 = vpop.f32.mrb[18].mxu0  ;;  %8653 = vmatmul.mubr.msk.bf16.gmra.mrb[92].mxu1 %vm8652_vm14, %v13346_v9  ;;  %vm7803_vm14 = vcmask 1048512  }
 0x2de   : > { %v12263_v13 = vpop.f32.mrb[19].mxu0 }
 0x2e0   : > { %8701 = vmatmul.mubr.msk.bf16.gmra.mrb[124].mxu0 %vm8700_vm15, %v13346_v9 }
 0x2e3   : > { %v12267_v59 = vpop.f32.mrb[20].mxu0 }
 0x2e4   : > { %v12269_v56 = vpop.f32.mrb[21].mxu0 }
 0x2e5   : > { %v12271_v31 = vpop.f32.mrb[22].mxu0 }
 0x2e6   : > { %v12273_v60 = vpop.f32.mrb[23].mxu0 }
 0x2eb   : > { %v12275_v39 = vpop.f32.mrb[24].mxu0 }
 0x2ec   : > { %v12277_v6 = vpop.f32.mrb[25].mxu0 }
 0x2ed   : > { %v12279_v48 = vpop.f32.mrb[26].mxu0 }
 0x2ee   : > { %v12281_v45 = vpop.f32.mrb[27].mxu0 }
 0x2f3   : > { %v12283_v10 = vpop.f32.mrb[28].mxu0 }
 0x2f4   : > { %v12285_v36 = vpop.f32.mrb[29].mxu0 }
 0x2f5   : > { %v12287_v9 = vpop.f32.mrb[30].mxu0 }
 0x2f6   : > { %v12289_v19 = vpop.f32.mrb[31].mxu0 }
 0x2fb   : > { %v2508_v49 = vpop.f32.mrb[32].mxu0 }
 0x2fc   : > { %v12292_v41 = vadd.f32 %v2508_v49, %v13525_v54  ;;  %v2510_v46 = vpop.f32.mrb[33].mxu0  ;;  %v13536_v49 = vld [vmem:[#allocation65_spill] sm:$0xff] }
 0x2fd   : > { %v12295_v18 = vadd.f32 %v2510_v46, %v13526_v55  ;;  %v2512_v28 = vpop.f32.mrb[34].mxu0  ;;  %v13538_v55 = vld [vmem:[#allocation32_spill] sm:$0xff] }
 0x2fe   : > { %v12298_v3 = vadd.f32 %v2512_v28, %v13527_v4  ;;  %v2514_v33 = vpop.f32.mrb[35].mxu0 }
 0x2ff   : > { %v12301_v52 = vadd.f32 %v2514_v33, %v13528_v11  ;;  %v13540_v33 = vld [vmem:[#allocation66_spill] sm:$0xff] }
 0x303   : > { %v2518_v21 = vpop.f32.mrb[36].mxu0 }
 0x304   : > { %v12304_v27 = vadd.f32 %v2518_v21, %v13529_v12  ;;  %v2520_v2 = vpop.f32.mrb[37].mxu0  ;;  %v13542_v12 = vld [vmem:[#allocation67_spill] sm:$0xff] }
 0x305   : > { %v12307_v44 = vadd.f32 %v2520_v2, %v13530_v35  ;;  %v2522_v43 = vpop.f32.mrb[38].mxu0 }
 0x306   : > { %v12310_v29 = vadd.f32 %v2522_v43, %v13531_v24  ;;  %v2524_v42 = vpop.f32.mrb[39].mxu0  ;;  %v13544_v43 = vld [vmem:[#allocation69_spill] sm:$0xff] }
 0x307   : > { %v12313_v1 = vadd.f32 %v2524_v42, %v13532_v47  ;;  %v13546_v47 = vld [vmem:[#allocation34_spill] sm:$0xff] }
 0x30b   : > { %v2528_v7 = vpop.f32.mrb[40].mxu0 }
 0x30c   : > { %v12316_v16 = vadd.f32 %v2528_v7, %v13533_v50  ;;  %v2530_v62 = vpop.f32.mrb[41].mxu0 }
 0x30d   : > { %v12319_v37 = vadd.f32 %v2530_v62, %v13534_v15  ;;  %v2532_v14 = vpop.f32.mrb[42].mxu0  ;;  %v13548_v62 = vld [vmem:[#allocation70_spill] sm:$0xff] }
 0x30e   : > { %v12322_v54 = vadd.f32 %v2532_v14, %v13536_v49  ;;  %v2534_v46 = vpop.f32.mrb[43].mxu0  ;;  %v13550_v49 = vld [vmem:[#allocation71_spill] sm:$0xff] }
 0x30f   : > { %13535 = vst [vmem:[#allocation47_spill] sm:$0xff] %v12319_v37  ;;  %v12325_v28 = vadd.f32 %v2534_v46, %v13538_v55 }
 0x310   : > { %13537 = vst [vmem:[#allocation15_spill] sm:$0xff] %v12322_v54 }
 0x311   : > { %13539 = vst [vmem:[#allocation49_spill] sm:$0xff] %v12325_v28 }
 0x313   : > { %v2538_v4 = vpop.f32.mrb[44].mxu0 }
 0x314   : > { %v12328_v11 = vadd.f32 %v2538_v4, %v13540_v33  ;;  %v2540_v21 = vpop.f32.mrb[45].mxu0  ;;  %v13552_v4 = vld [vmem:[#allocation73_spill] sm:$0xff] }
 0x315   : > { %v12331_v2 = vadd.f32 %v2540_v21, %v13542_v12  ;;  %v2542_v35 = vpop.f32.mrb[46].mxu0  ;;  %v13554_v12 = vld [vmem:[#allocation36_spill] sm:$0xff] }
 0x316   : > { %13541 = vst [vmem:[#allocation51_spill] sm:$0xff] %v12328_v11  ;;  %v12334_v24 = vadd.f32 %v2542_v35, %v13544_v43  ;;  %v2544_v42 = vpop.f32.mrb[47].mxu0 }
 0x317   : > { %13543 = vst [vmem:[#allocation7_spill] sm:$0xff] %v12331_v2  ;;  %v12337_v7 = vadd.f32 %v2544_v42, %v13546_v47 }
 0x318   : > { %13545 = vst [vmem:[#allocation8_spill] sm:$0xff] %v12334_v24 }
 0x319   : > { %13547 = vst [vmem:[#allocation21_spill] sm:$0xff] %v12337_v7  ;;  %v13558_v7 = vld [vmem:[#allocation77_spill] sm:$0xff] }
 0x31b   : > { %v2548_v50 = vpop.f32.mrb[48].mxu0 }
 0x31c   : > { %v12340_v15 = vadd.f32 %v2548_v50, %v13548_v62  ;;  %v2550_v14 = vpop.f32.mrb[49].mxu0 }
 0x31d   : > { %v12343_v46 = vadd.f32 %v2550_v14, %v13550_v49  ;;  %v2552_v55 = vpop.f32.mrb[50].mxu0 }
 0x31e   : > { %13549 = vst [vmem:[#allocation52_spill] sm:$0xff] %v12340_v15  ;;  %v12346_v33 = vadd.f32 %v2552_v55, %v13552_v4  ;;  %v2554_v21 = vpop.f32.mrb[51].mxu0  ;;  %v13560_v15 = vld [vmem:[#allocation78_spill] sm:$0xff] }
 0x31f   : > { %13551 = vst [vmem:[#allocation24_spill] sm:$0xff] %v12343_v46  ;;  %v12349_v35 = vadd.f32 %v2554_v21, %v13554_v12  ;;  %v13562_v46 = vld [vmem:[#allocation40_spill] sm:$0xff] }
 0x320   : > { %13553 = vst [vmem:[#allocation25_spill] sm:$0xff] %v12346_v33  ;;  %v13564_v33 = vld [vmem:[#allocation41_spill] sm:$0xff] }
 0x321   : > { %13555 = vst [vmem:[#allocation53_spill] sm:$0xff] %v12349_v35  ;;  %v13566_v35 = vld [vmem:[#allocation79_spill] sm:$0xff] }
 0x323   : > { %v2558_v43 = vpop.f32.mrb[52].mxu0 }
 0x324   : > { %v12352_v42 = vadd.f32 %v2558_v43, %v13556_v32  ;;  %v2560_v47 = vpop.f32.mrb[53].mxu0 }
 0x325   : > { %v12355_v50 = vadd.f32 %v2560_v47, %v13558_v7  ;;  %v2562_v62 = vpop.f32.mrb[54].mxu0 }
 0x326   : > { %13557 = vst [vmem:[#allocation54_spill] sm:$0xff] %v12352_v42  ;;  %v12358_v14 = vadd.f32 %v2562_v62, %v13560_v15  ;;  %v2564_v49 = vpop.f32.mrb[55].mxu0  ;;  %v13568_v42 = vld [vmem:[#allocation80_spill] sm:$0xff] }
 0x327   : > { %13559 = vst [vmem:[#allocation26_spill] sm:$0xff] %v12355_v50  ;;  %v12361_v55 = vadd.f32 %v2564_v49, %v13562_v46  ;;  %v13570_v50 = vld [vmem:[#allocation42_spill] sm:$0xff] }
 0x328   : > { %13561 = vst [vmem:[#allocation56_spill] sm:$0xff] %v12358_v14  ;;  %v13572_v14 = vld [vmem:[#allocation43_spill] sm:$0xff] }
 0x329   : > { %13563 = vst [vmem:[#allocation29_spill] sm:$0xff] %v12361_v55  ;;  %v13574_v55 = vld [vmem:[#allocation11_spill] sm:$0xff] }
 0x32b   : > { %v2568_v4 = vpop.f32.mrb[56].mxu0 }
 0x32c   : > { %v12364_v21 = vadd.f32 %v2568_v4, %v13564_v33  ;;  %v2570_v12 = vpop.f32.mrb[57].mxu0 }
 0x32d   : > { %v12367_v32 = vadd.f32 %v2570_v12, %v13566_v35  ;;  %v2572_v43 = vpop.f32.mrb[58].mxu0 }
 0x32e   : > { %13565 = vst [vmem:[#allocation60_spill] sm:$0xff] %v12364_v21  ;;  %v12370_v7 = vadd.f32 %v2572_v43, %v13568_v42  ;;  %v2574_v47 = vpop.f32.mrb[59].mxu0  ;;  %v13576_v21 = vld [vmem:[#allocation81_spill] sm:$0xff] }
 0x32f   : > { %13567 = vst [vmem:[#allocation31_spill] sm:$0xff] %v12367_v32  ;;  %v12373_v15 = vadd.f32 %v2574_v47, %v13570_v50  ;;  %v13578_v32 = vld [vmem:[#allocation45_spill] sm:$0xff] }
 0x330   : > { %13569 = vst [vmem:[#allocation64_spill] sm:$0xff] %v12370_v7 }
 0x331   : > { %13571 = vst [vmem:[#allocation33_spill] sm:$0xff] %v12373_v15 }
 0x333   : > { %v2578_v62 = vpop.f32.mrb[60].mxu0 }
 0x334   : > { %v12376_v46 = vadd.f32 %v2578_v62, %v13572_v14  ;;  %v2580_v49 = vpop.f32.mrb[61].mxu0 }
 0x335   : > { %v12379_v33 = vadd.f32 %v2580_v49, %v13574_v55  ;;  %v2582_v4 = vpop.f32.mrb[62].mxu0 }
 0x336   : > { %13573 = vst [vmem:[#allocation68_spill] sm:$0xff] %v12376_v46  ;;  %v12382_v35 = vadd.f32 %v2582_v4, %v13576_v21  ;;  %v2584_v12 = vpop.f32.mrb[63].mxu0 }
 0x337   : > { %13575 = vst [vmem:[#allocation35_spill] sm:$0xff] %v12379_v33  ;;  %v12385_v42 = vadd.f32 %v2584_v12, %v13578_v32 }
 0x338   : > { %13577 = vst [vmem:[#allocation72_spill] sm:$0xff] %v12382_v35  ;;  %v3968_v43 = vpop.f32.mrb[32].mxu1 }
 0x339   : > { %13579 = vst [vmem:[#allocation6_spill] sm:$0xff] %v12385_v42  ;;  %v4624_v50 = vmul.f32 %v3968_v43, %v12167_v0  ;;  %v4784_v47 = vmul.f32 %v3968_v43, %v12175_v63  ;;  %v3970_v15 = vpop.f32.mrb[33].mxu1 }
 0x33a   : > { %v4656_v62 = vmul.f32 %v3970_v15, %v12175_v63  ;;  %v4752_v55 = vmul.f32 %v3970_v15, %v12167_v0  ;;  %v3972_v49 = vpop.f32.mrb[34].mxu1 }
 0x33b   : > { %v4465_v14 = vpop.f32.mrb[64].mxu0  ;;  %v4625_v21 = vmul.f32 %v3972_v49, %v12177_v8  ;;  %v4785_v4 = vmul.f32 %v3972_v49, %v12179_v17  ;;  %v3974_v35 = vpop.f32.mrb[35].mxu1 }
 0x33c   : > { %v4467_v33 = vpop.f32.mrb[65].mxu0  ;;  %v4688_v32 = vadd.f32 %v4656_v62, %v4624_v50  ;;  %v4816_v12 = vsub.f32 %v4752_v55, %v4784_v47  ;;  %v4657_v46 = vmul.f32 %v3974_v35, %v12179_v17  ;;  %v4753_v43 = vmul.f32 %v3974_v35, %v12177_v8 }
 0x33d   : > { %v4469_v42 = vpop.f32.mrb[66].mxu0 }
 0x33e   : > { %v4471_v7 = vpop.f32.mrb[67].mxu0  ;;  %v4848_v24 = vmul.f32 %v4816_v12, %v4467_v33  ;;  %v4689_v2 = vadd.f32 %v4657_v46, %v4625_v21  ;;  %v4817_v63 = vsub.f32 %v4753_v43, %v4785_v4  ;;  %v4720_v11 = vmul.f32 %v4688_v32, %v4465_v14 }
 0x340   : > { %v4849_v0 = vmul.f32 %v4817_v63, %v4471_v7  ;;  %v3978_v15 = vpop.f32.mrb[36].mxu1  ;;  %v4880_v28 = vadd.f32 %v4848_v24, %v4720_v11  ;;  %v4721_v54 = vmul.f32 %v4689_v2, %v4469_v42 }
 0x341   : > { %v4626_v37 = vmul.f32 %v3978_v15, %v12189_v40  ;;  %v4786_v49 = vmul.f32 %v3978_v15, %v12197_v30  ;;  %v3980_v50 = vpop.f32.mrb[37].mxu1 }
 0x342   : > { %v4658_v62 = vmul.f32 %v3980_v50, %v12197_v30  ;;  %v4754_v17 = vmul.f32 %v3980_v50, %v12189_v40  ;;  %v3982_v8 = vpop.f32.mrb[38].mxu1  ;;  %4912 = vadd.xlane.f32.xlu0 %v4880_v28  ;;  %v4881_v33 = vadd.f32 %v4849_v0, %v4721_v54 }
 0x343   : > { %v4475_v47 = vpop.f32.mrb[68].mxu0  ;;  %v4627_v35 = vmul.f32 %v3982_v8, %v12199_v57  ;;  %v4787_v7 = vmul.f32 %v3982_v8, %v12201_v61  ;;  %v3984_v11 = vpop.f32.mrb[39].mxu1 }
 0x344   : > { %v4477_v46 = vpop.f32.mrb[69].mxu0  ;;  %v4690_v2 = vadd.f32 %v4658_v62, %v4626_v37  ;;  %v4818_v24 = vsub.f32 %v4754_v17, %v4786_v49  ;;  %v4659_v14 = vmul.f32 %v3984_v11, %v12201_v61  ;;  %v4755_v55 = vmul.f32 %v3984_v11, %v12199_v57  ;;  %4914 = vadd.xlane.f32.xlu1 %v4881_v33 }
 0x345   : > { %v4479_v42 = vpop.f32.mrb[70].mxu0 }
 0x346   : > { %v4481_v30 = vpop.f32.mrb[71].mxu0  ;;  %v4722_v21 = vmul.f32 %v4690_v2, %v4475_v47  ;;  %v4850_v40 = vmul.f32 %v4818_v24, %v4477_v46  ;;  %v4691_v4 = vadd.f32 %v4659_v14, %v4627_v35  ;;  %v4819_v28 = vsub.f32 %v4755_v55, %v4787_v7 }
 0x348   : > { %v4882_v54 = vadd.f32 %v4850_v40, %v4722_v21  ;;  %v4723_v32 = vmul.f32 %v4691_v4, %v4479_v42  ;;  %v4851_v12 = vmul.f32 %v4819_v28, %v4481_v30  ;;  %v3988_v43 = vpop.f32.mrb[40].mxu1 }
 0x349   : > { %v4628_v63 = vmul.f32 %v3988_v43, %v12211_v38  ;;  %v4788_v37 = vmul.f32 %v3988_v43, %v12219_v20  ;;  %v3990_v0 = vpop.f32.mrb[41].mxu1 }
 0x34a   : > { %v4883_v15 = vadd.f32 %v4851_v12, %v4723_v32  ;;  %v4660_v61 = vmul.f32 %v3990_v0, %v12219_v20  ;;  %v4756_v57 = vmul.f32 %v3990_v0, %v12211_v38  ;;  %v3992_v50 = vpop.f32.mrb[42].mxu1  ;;  %4916 = vadd.xlane.f32.xlu0 %v4882_v54 }
 0x34b   : > { %v4485_v49 = vpop.f32.mrb[72].mxu0  ;;  %v4629_v62 = vmul.f32 %v3992_v50, %v12221_v5  ;;  %v4789_v17 = vmul.f32 %v3992_v50, %v12223_v26  ;;  %v3994_v8 = vpop.f32.mrb[43].mxu1 }
 0x34c   : > { %v4487_v47 = vpop.f32.mrb[73].mxu0  ;;  %v4692_v33 = vadd.f32 %v4660_v61, %v4628_v63  ;;  %v4820_v46 = vsub.f32 %v4756_v57, %v4788_v37  ;;  %v4661_v7 = vmul.f32 %v3994_v8, %v12223_v26  ;;  %v4757_v11 = vmul.f32 %v3994_v8, %v12221_v5 }
 0x34d   : > { %v4489_v35 = vpop.f32.mrb[74].mxu0 }
 0x34e   : > { %v4491_v2 = vpop.f32.mrb[75].mxu0  ;;  %v4724_v24 = vmul.f32 %v4692_v33, %v4485_v49  ;;  %v4852_v20 = vmul.f32 %v4820_v46, %v4487_v47  ;;  %v4693_v42 = vadd.f32 %v4661_v7, %v4629_v62  ;;  %v4821_v38 = vsub.f32 %v4757_v11, %v4789_v17  ;;  %4918 = vadd.xlane.f32.xlu0 %v4883_v15 }
 0x350   : > { %v4884_v14 = vadd.f32 %v4852_v20, %v4724_v24  ;;  %v4725_v55 = vmul.f32 %v4693_v42, %v4489_v35  ;;  %v4853_v30 = vmul.f32 %v4821_v38, %v4491_v2  ;;  %v3998_v21 = vpop.f32.mrb[44].mxu1 }
 0x351   : > { %v4630_v40 = vmul.f32 %v3998_v21, %v12233_v34  ;;  %v4790_v4 = vmul.f32 %v3998_v21, %v12241_v25  ;;  %v4000_v28 = vpop.f32.mrb[45].mxu1 }
 0x352   : > { %v4885_v54 = vadd.f32 %v4853_v30, %v4725_v55  ;;  %v4662_v26 = vmul.f32 %v4000_v28, %v12241_v25  ;;  %v4758_v5 = vmul.f32 %v4000_v28, %v12233_v34  ;;  %v4002_v12 = vpop.f32.mrb[46].mxu1  ;;  %4920 = vadd.xlane.f32.xlu1 %v4884_v14 }
 0x353   : > { %v4495_v32 = vpop.f32.mrb[76].mxu0  ;;  %v4631_v63 = vmul.f32 %v4002_v12, %v12243_v23  ;;  %v4791_v37 = vmul.f32 %v4002_v12, %v12245_v51  ;;  %v4004_v0 = vpop.f32.mrb[47].mxu1 }
 0x354   : > { %v4497_v43 = vpop.f32.mrb[77].mxu0  ;;  %v4694_v15 = vadd.f32 %v4662_v26, %v4630_v40  ;;  %v4822_v49 = vsub.f32 %v4758_v5, %v4790_v4  ;;  %v4663_v57 = vmul.f32 %v4004_v0, %v12245_v51  ;;  %v4759_v50 = vmul.f32 %v4004_v0, %v12243_v23  ;;  %4922 = vadd.xlane.f32.xlu0 %v4885_v54 }
 0x355   : > { %v4499_v61 = vpop.f32.mrb[78].mxu0 }
 0x356   : > { %v4501_v47 = vpop.f32.mrb[79].mxu0  ;;  %v4726_v25 = vmul.f32 %v4694_v15, %v4495_v32  ;;  %v4854_v62 = vmul.f32 %v4822_v49, %v4497_v43  ;;  %v4695_v34 = vadd.f32 %v4663_v57, %v4631_v63  ;;  %v4823_v17 = vsub.f32 %v4759_v50, %v4791_v37 }
 0x358   : > { %v4886_v8 = vadd.f32 %v4854_v62, %v4726_v25  ;;  %v4727_v33 = vmul.f32 %v4695_v34, %v4499_v61  ;;  %v4855_v46 = vmul.f32 %v4823_v17, %v4501_v47  ;;  %v4008_v35 = vpop.f32.mrb[48].mxu1 }
 0x359   : > { %v4632_v7 = vmul.f32 %v4008_v35, %v12255_v58  ;;  %v4792_v11 = vmul.f32 %v4008_v35, %v12259_v53  ;;  %v4010_v2 = vpop.f32.mrb[49].mxu1 }
 0x35a   : > { %v4887_v24 = vadd.f32 %v4855_v46, %v4727_v33  ;;  %v4664_v51 = vmul.f32 %v4010_v2, %v12259_v53  ;;  %v4760_v23 = vmul.f32 %v4010_v2, %v12255_v58  ;;  %v4012_v42 = vpop.f32.mrb[50].mxu1  ;;  %4924 = vadd.xlane.f32.xlu1 %v4886_v8 }
 0x35b   : > { %v4505_v20 = vpop.f32.mrb[80].mxu0  ;;  %v4633_v14 = vmul.f32 %v4012_v42, %v12261_v22  ;;  %v4793_v55 = vmul.f32 %v4012_v42, %v12263_v13  ;;  %v4014_v30 = vpop.f32.mrb[51].mxu1 }
 0x35c   : > { %v4507_v38 = vpop.f32.mrb[81].mxu0  ;;  %v4696_v21 = vadd.f32 %v4664_v51, %v4632_v7  ;;  %v4824_v40 = vsub.f32 %v4760_v23, %v4792_v11  ;;  %v4665_v28 = vmul.f32 %v4014_v30, %v12263_v13  ;;  %v4761_v54 = vmul.f32 %v4014_v30, %v12261_v22  ;;  %4926 = vadd.xlane.f32.xlu0 %v4887_v24 }
 0x35d   : > { %v4509_v4 = vpop.f32.mrb[82].mxu0 }
 0x35e   : > { %v4511_v32 = vpop.f32.mrb[83].mxu0  ;;  %v4728_v53 = vmul.f32 %v4696_v21, %v4505_v20  ;;  %v4856_v26 = vmul.f32 %v4824_v40, %v4507_v38  ;;  %v4697_v58 = vadd.f32 %v4665_v28, %v4633_v14  ;;  %v4825_v5 = vsub.f32 %v4761_v54, %v4793_v55 }
 0x360   : > { %v4888_v12 = vadd.f32 %v4856_v26, %v4728_v53  ;;  %v4729_v43 = vmul.f32 %v4697_v58, %v4509_v4  ;;  %v4857_v63 = vmul.f32 %v4825_v5, %v4511_v32  ;;  %v4018_v37 = vpop.f32.mrb[52].mxu1 }
 0x361   : > { %v4634_v0 = vmul.f32 %v4018_v37, %v12267_v59  ;;  %v4794_v15 = vmul.f32 %v4018_v37, %v12269_v56  ;;  %v4020_v49 = vpop.f32.mrb[53].mxu1 }
 0x362   : > { %v4889_v61 = vadd.f32 %v4857_v63, %v4729_v43  ;;  %v4666_v13 = vmul.f32 %v4020_v49, %v12269_v56  ;;  %v4762_v22 = vmul.f32 %v4020_v49, %v12267_v59  ;;  %v4022_v50 = vpop.f32.mrb[54].mxu1  ;;  %4928 = vadd.xlane.f32.xlu1 %v4888_v12 }
 0x363   : > { %v4515_v57 = vpop.f32.mrb[84].mxu0  ;;  %v4635_v25 = vmul.f32 %v4022_v50, %v12271_v31  ;;  %v4795_v62 = vmul.f32 %v4022_v50, %v12273_v60  ;;  %v4024_v34 = vpop.f32.mrb[55].mxu1 }
 0x364   : > { %v4517_v47 = vpop.f32.mrb[85].mxu0  ;;  %v4698_v17 = vadd.f32 %v4666_v13, %v4634_v0  ;;  %v4826_v8 = vsub.f32 %v4762_v22, %v4794_v15  ;;  %v4667_v46 = vmul.f32 %v4024_v34, %v12273_v60  ;;  %v4763_v35 = vmul.f32 %v4024_v34, %v12271_v31  ;;  %4930 = vadd.xlane.f32.xlu0 %v4889_v61 }
 0x365   : > { %v4519_v33 = vpop.f32.mrb[86].mxu0 }
 0x366   : > { %v4521_v7 = vpop.f32.mrb[87].mxu0  ;;  %v4730_v56 = vmul.f32 %v4698_v17, %v4515_v57  ;;  %v4858_v11 = vmul.f32 %v4826_v8, %v4517_v47  ;;  %v4699_v59 = vadd.f32 %v4667_v46, %v4635_v25  ;;  %v4827_v2 = vsub.f32 %v4763_v35, %v4795_v62 }
 0x368   : > { %v4890_v24 = vadd.f32 %v4858_v11, %v4730_v56  ;;  %v4731_v20 = vmul.f32 %v4699_v59, %v4519_v33  ;;  %v4859_v51 = vmul.f32 %v4827_v2, %v4521_v7  ;;  %v4028_v23 = vpop.f32.mrb[56].mxu1 }
 0x369   : > { %v4636_v42 = vmul.f32 %v4028_v23, %v12275_v39  ;;  %v4796_v38 = vmul.f32 %v4028_v23, %v12277_v6  ;;  %v4030_v14 = vpop.f32.mrb[57].mxu1 }
 0x36a   : > { %v4891_v55 = vadd.f32 %v4859_v51, %v4731_v20  ;;  %v4668_v60 = vmul.f32 %v4030_v14, %v12277_v6  ;;  %v4764_v31 = vmul.f32 %v4030_v14, %v12275_v39  ;;  %v4032_v21 = vpop.f32.mrb[58].mxu1  ;;  %4932 = vadd.xlane.f32.xlu1 %v4890_v24 }
 0x36b   : > { %v4525_v30 = vpop.f32.mrb[88].mxu0  ;;  %v4637_v4 = vmul.f32 %v4032_v21, %v12279_v48  ;;  %v4797_v28 = vmul.f32 %v4032_v21, %v12281_v45  ;;  %v4034_v54 = vpop.f32.mrb[59].mxu1 }
 0x36c   : > { %v4527_v40 = vpop.f32.mrb[89].mxu0  ;;  %v4700_v32 = vadd.f32 %v4668_v60, %v4636_v42  ;;  %v4828_v53 = vsub.f32 %v4764_v31, %v4796_v38  ;;  %v4669_v58 = vmul.f32 %v4034_v54, %v12281_v45  ;;  %v4765_v5 = vmul.f32 %v4034_v54, %v12279_v48  ;;  %4934 = vadd.xlane.f32.xlu0 %v4891_v55 }
 0x36d   : > { %v4529_v26 = vpop.f32.mrb[90].mxu0 }
 0x36e   : > { %v4531_v12 = vpop.f32.mrb[91].mxu0  ;;  %v4732_v6 = vmul.f32 %v4700_v32, %v4525_v30  ;;  %v4860_v43 = vmul.f32 %v4828_v53, %v4527_v40  ;;  %v4701_v39 = vadd.f32 %v4669_v58, %v4637_v4  ;;  %v4829_v63 = vsub.f32 %v4765_v5, %v4797_v28 }
 0x370   : > { %v4892_v37 = vadd.f32 %v4860_v43, %v4732_v6  ;;  %v4733_v0 = vmul.f32 %v4701_v39, %v4529_v26  ;;  %v4861_v15 = vmul.f32 %v4829_v63, %v4531_v12  ;;  %v4038_v49 = vpop.f32.mrb[60].mxu1 }
 0x371   : > { %v4638_v61 = vmul.f32 %v4038_v49, %v12283_v10  ;;  %v4798_v57 = vmul.f32 %v4038_v49, %v12285_v36  ;;  %v4040_v13 = vpop.f32.mrb[61].mxu1 }
 0x372   : > { %v4893_v22 = vadd.f32 %v4861_v15, %v4733_v0  ;;  %v4670_v45 = vmul.f32 %v4040_v13, %v12285_v36  ;;  %v4766_v48 = vmul.f32 %v4040_v13, %v12283_v10  ;;  %v4042_v47 = vpop.f32.mrb[62].mxu1  ;;  %4936 = vadd.xlane.f32.xlu1 %v4892_v37 }
 0x373   : > { %v4535_v50 = vpop.f32.mrb[92].mxu0  ;;  %v4639_v62 = vmul.f32 %v4042_v47, %v12287_v9  ;;  %v4799_v34 = vmul.f32 %v4042_v47, %v12289_v19  ;;  %v4044_v17 = vpop.f32.mrb[63].mxu1 }
 0x374   : > { %v4537_v25 = vpop.f32.mrb[93].mxu0  ;;  %v4702_v8 = vadd.f32 %v4670_v45, %v4638_v61  ;;  %v4830_v33 = vsub.f32 %v4766_v48, %v4798_v57  ;;  %v4671_v35 = vmul.f32 %v4044_v17, %v12289_v19  ;;  %v4767_v7 = vmul.f32 %v4044_v17, %v12287_v9  ;;  %4938 = vadd.xlane.f32.xlu0 %v4893_v22 }
 0x375   : > { %v4539_v46 = vpop.f32.mrb[94].mxu0 }
 0x376   : > { %v4541_v56 = vpop.f32.mrb[95].mxu0  ;;  %v4734_v36 = vmul.f32 %v4702_v8, %v4535_v50  ;;  %v4862_v11 = vmul.f32 %v4830_v33, %v4537_v25  ;;  %v4703_v10 = vadd.f32 %v4671_v35, %v4639_v62  ;;  %v4831_v59 = vsub.f32 %v4767_v7, %v4799_v34 }
 0x378   : > { %v4894_v2 = vadd.f32 %v4862_v11, %v4734_v36  ;;  %v4735_v24 = vmul.f32 %v4703_v10, %v4539_v46  ;;  %v4863_v20 = vmul.f32 %v4831_v59, %v4541_v56  ;;  %v4048_v51 = vpop.f32.mrb[64].mxu1  ;;  %v13580_v36 = vld [vmem:[#allocation47_spill] sm:$0xff] }
 0x379   : > { %v4640_v23 = vmul.f32 %v12292_v41, %v4048_v51  ;;  %v4800_v42 = vmul.f32 %v12295_v18, %v4048_v51  ;;  %v4050_v38 = vpop.f32.mrb[65].mxu1  ;;  %v13581_v51 = vld [vmem:[#allocation15_spill] sm:$0xff] }
 0x37a   : > { %v4895_v14 = vadd.f32 %v4863_v20, %v4735_v24  ;;  %v4672_v19 = vmul.f32 %v12295_v18, %v4050_v38  ;;  %v4768_v9 = vmul.f32 %v12292_v41, %v4050_v38  ;;  %v4052_v30 = vpop.f32.mrb[66].mxu1  ;;  %4940 = vadd.xlane.f32.xlu1 %v4894_v2 }
 0x37b   : > { %v4545_v55 = vpop.f32.mrb[96].mxu0  ;;  %v4641_v31 = vmul.f32 %v12298_v3, %v4052_v30  ;;  %v4801_v21 = vmul.f32 %v12301_v52, %v4052_v30  ;;  %v4054_v40 = vpop.f32.mrb[67].mxu1 }
 0x37c   : > { %v4547_v60 = vpop.f32.mrb[97].mxu0  ;;  %v4704_v4 = vadd.f32 %v4672_v19, %v4640_v23  ;;  %v4832_v28 = vsub.f32 %v4768_v9, %v4800_v42  ;;  %v4673_v32 = vmul.f32 %v12301_v52, %v4054_v40  ;;  %v4769_v53 = vmul.f32 %v12298_v3, %v4054_v40  ;;  %4942 = vadd.xlane.f32.xlu0 %v4895_v14  ;;  %v13582_v42 = vld [vmem:[#allocation49_spill] sm:$0xff] }
 0x37d   : > { %v4549_v54 = vpop.f32.mrb[98].mxu0 }
 0x37e   : > { %v4551_v26 = vpop.f32.mrb[99].mxu0  ;;  %v4736_v18 = vmul.f32 %v4704_v4, %v4545_v55  ;;  %v4864_v58 = vmul.f32 %v4832_v28, %v4547_v60  ;;  %v4705_v41 = vadd.f32 %v4673_v32, %v4641_v31  ;;  %v4833_v5 = vsub.f32 %v4769_v53, %v4801_v21 }
 0x380   : > { %v4896_v12 = vadd.f32 %v4864_v58, %v4736_v18  ;;  %v4737_v6 = vmul.f32 %v4705_v41, %v4549_v54  ;;  %v4865_v43 = vmul.f32 %v4833_v5, %v4551_v26  ;;  %v4058_v39 = vpop.f32.mrb[68].mxu1  ;;  %v13583_v26 = vld [vmem:[#allocation51_spill] sm:$0xff] }
 0x381   : > { %v4642_v63 = vmul.f32 %v12304_v27, %v4058_v39  ;;  %v4802_v37 = vmul.f32 %v12307_v44, %v4058_v39  ;;  %v4060_v0 = vpop.f32.mrb[69].mxu1  ;;  %v13584_v58 = vld [vmem:[#allocation7_spill] sm:$0xff] }
 0x382   : > { %v4897_v15 = vadd.f32 %v4865_v43, %v4737_v6  ;;  %v4674_v52 = vmul.f32 %v12307_v44, %v4060_v0  ;;  %v4770_v3 = vmul.f32 %v12304_v27, %v4060_v0  ;;  %v4062_v61 = vpop.f32.mrb[70].mxu1  ;;  %4944 = vadd.xlane.f32.xlu1 %v4896_v12  ;;  %v13585_v0 = vld [vmem:[#allocation8_spill] sm:$0xff] }
 0x383   : > { %v4555_v49 = vpop.f32.mrb[100].mxu0  ;;  %v4643_v13 = vmul.f32 %v12310_v29, %v4062_v61  ;;  %v4803_v22 = vmul.f32 %v12313_v1, %v4062_v61  ;;  %v4064_v50 = vpop.f32.mrb[71].mxu1 }
 0x384   : > { %v4557_v57 = vpop.f32.mrb[101].mxu0  ;;  %v4706_v45 = vadd.f32 %v4674_v52, %v4642_v63  ;;  %v4834_v48 = vsub.f32 %v4770_v3, %v4802_v37  ;;  %v4675_v25 = vmul.f32 %v12313_v1, %v4064_v50  ;;  %v4771_v62 = vmul.f32 %v12310_v29, %v4064_v50  ;;  %4946 = vadd.xlane.f32.xlu0 %v4897_v15 }
 0x385   : > { %v4559_v47 = vpop.f32.mrb[102].mxu0 }
 0x386   : > { %v4561_v34 = vpop.f32.mrb[103].mxu0  ;;  %v4738_v44 = vmul.f32 %v4706_v45, %v4555_v49  ;;  %v4866_v17 = vmul.f32 %v4834_v48, %v4557_v57  ;;  %v4707_v27 = vadd.f32 %v4675_v25, %v4643_v13  ;;  %v4835_v8 = vsub.f32 %v4771_v62, %v4803_v22  ;;  %v13586_v49 = vld [vmem:[#allocation21_spill] sm:$0xff] }
 0x388   : > { %v4898_v33 = vadd.f32 %v4866_v17, %v4738_v44  ;;  %v4739_v46 = vmul.f32 %v4707_v27, %v4559_v47  ;;  %v4867_v35 = vmul.f32 %v4835_v8, %v4561_v34  ;;  %v4068_v7 = vpop.f32.mrb[72].mxu1  ;;  %v13587_v8 = vld [vmem:[#allocation52_spill] sm:$0xff] }
 0x389   : > { %v4644_v56 = vmul.f32 %v12316_v16, %v4068_v7  ;;  %v4804_v11 = vmul.f32 %v13580_v36, %v4068_v7  ;;  %v4070_v10 = vpop.f32.mrb[73].mxu1 }
 0x38a   : > { %v4899_v59 = vadd.f32 %v4867_v35, %v4739_v46  ;;  %v4676_v1 = vmul.f32 %v13580_v36, %v4070_v10  ;;  %v4772_v29 = vmul.f32 %v12316_v16, %v4070_v10  ;;  %v4072_v24 = vpop.f32.mrb[74].mxu1  ;;  %4948 = vadd.xlane.f32.xlu1 %v4898_v33  ;;  %v13588_v46 = vld [vmem:[#allocation24_spill] sm:$0xff] }
 0x38b   : > { %v4565_v2 = vpop.f32.mrb[104].mxu0  ;;  %v4645_v23 = vmul.f32 %v13581_v51, %v4072_v24  ;;  %v4805_v38 = vmul.f32 %v13582_v42, %v4072_v24  ;;  %v4074_v14 = vpop.f32.mrb[75].mxu1  ;;  %v13590_v24 = vld [vmem:[#allocation53_spill] sm:$0xff] }
 0x38c   : > { %v4567_v20 = vpop.f32.mrb[105].mxu0  ;;  %v4708_v55 = vadd.f32 %v4676_v1, %v4644_v56  ;;  %v4836_v19 = vsub.f32 %v4772_v29, %v4804_v11  ;;  %v4677_v30 = vmul.f32 %v13582_v42, %v4074_v14  ;;  %v4773_v60 = vmul.f32 %v13581_v51, %v4074_v14  ;;  %4950 = vadd.xlane.f32.xlu0 %v4899_v59  ;;  %v13589_v1 = vld [vmem:[#allocation25_spill] sm:$0xff] }
 0x38d   : > { %v4569_v9 = vpop.f32.mrb[106].mxu0 }
 0x38e   : > { %v4571_v31 = vpop.f32.mrb[107].mxu0  ;;  %v4740_v21 = vmul.f32 %v4708_v55, %v4565_v2  ;;  %v4868_v40 = vmul.f32 %v4836_v19, %v4567_v20  ;;  %v4709_v16 = vadd.f32 %v4677_v30, %v4645_v23  ;;  %v4837_v4 = vsub.f32 %v4773_v60, %v4805_v38 }
 0x390   : > { %v4900_v28 = vadd.f32 %v4868_v40, %v4740_v21  ;;  %v4741_v54 = vmul.f32 %v4709_v16, %v4569_v9  ;;  %v4869_v32 = vmul.f32 %v4837_v4, %v4571_v31  ;;  %v4078_v53 = vpop.f32.mrb[76].mxu1 }
 0x391   : > { %v4646_v18 = vmul.f32 %v13583_v26, %v4078_v53  ;;  %v4806_v41 = vmul.f32 %v13584_v58, %v4078_v53  ;;  %v4080_v5 = vpop.f32.mrb[77].mxu1 }
 0x392   : > { %v4901_v12 = vadd.f32 %v4869_v32, %v4741_v54  ;;  %v4678_v43 = vmul.f32 %v13584_v58, %v4080_v5  ;;  %v4774_v39 = vmul.f32 %v13583_v26, %v4080_v5  ;;  %v4082_v63 = vpop.f32.mrb[78].mxu1  ;;  %4952 = vadd.xlane.f32.xlu1 %v4900_v28  ;;  %v13591_v28 = vld [vmem:[#allocation54_spill] sm:$0xff] }
 0x393   : > { %v4575_v6 = vpop.f32.mrb[108].mxu0  ;;  %v4647_v15 = vmul.f32 %v13585_v0, %v4082_v63  ;;  %v4807_v52 = vmul.f32 %v13586_v49, %v4082_v63  ;;  %v4084_v3 = vpop.f32.mrb[79].mxu1  ;;  %v13592_v32 = vld [vmem:[#allocation26_spill] sm:$0xff]  ;;  %v13594_v63 = vld [vmem:[#allocation29_spill] sm:$0xff] }
 0x394   : > { %v4577_v37 = vpop.f32.mrb[109].mxu0  ;;  %v4710_v61 = vadd.f32 %v4678_v43, %v4646_v18  ;;  %v4838_v57 = vsub.f32 %v4774_v39, %v4806_v41  ;;  %v4679_v22 = vmul.f32 %v13586_v49, %v4084_v3  ;;  %v4775_v50 = vmul.f32 %v13585_v0, %v4084_v3  ;;  %4954 = vadd.xlane.f32.xlu0 %v4901_v12  ;;  %v13593_v43 = vld [vmem:[#allocation56_spill] sm:$0xff] }
 0x395   : > { %v4579_v13 = vpop.f32.mrb[110].mxu0 }
 0x396   : > { %v4581_v45 = vpop.f32.mrb[111].mxu0  ;;  %v4742_v48 = vmul.f32 %v4710_v61, %v4575_v6  ;;  %v4870_v47 = vmul.f32 %v4838_v57, %v4577_v37  ;;  %v4711_v25 = vadd.f32 %v4679_v22, %v4647_v15  ;;  %v4839_v62 = vsub.f32 %v4775_v50, %v4807_v52 }
 0x398   : > { %v4902_v34 = vadd.f32 %v4870_v47, %v4742_v48  ;;  %v4743_v44 = vmul.f32 %v4711_v25, %v4579_v13  ;;  %v4871_v17 = vmul.f32 %v4839_v62, %v4581_v45  ;;  %v4088_v27 = vpop.f32.mrb[80].mxu1 }
 0x399   : > { %v4648_v33 = vmul.f32 %v13587_v8, %v4088_v27  ;;  %v4808_v35 = vmul.f32 %v13588_v46, %v4088_v27  ;;  %v4090_v7 = vpop.f32.mrb[81].mxu1 }
 0x39a   : > { %v4903_v56 = vadd.f32 %v4871_v17, %v4743_v44  ;;  %v4680_v11 = vmul.f32 %v13588_v46, %v4090_v7  ;;  %v4776_v10 = vmul.f32 %v13587_v8, %v4090_v7  ;;  %v4092_v59 = vpop.f32.mrb[82].mxu1  ;;  %4956 = vadd.xlane.f32.xlu1 %v4902_v34  ;;  %v13595_v34 = vld [vmem:[#allocation60_spill] sm:$0xff]  ;;  %v13596_v17 = vld [vmem:[#allocation31_spill] sm:$0xff] }
 0x39b   : > { %v4585_v36 = vpop.f32.mrb[112].mxu0  ;;  %v4649_v29 = vmul.f32 %v13589_v1, %v4092_v59  ;;  %v4809_v20 = vmul.f32 %v13590_v24, %v4092_v59  ;;  %v4094_v51 = vpop.f32.mrb[83].mxu1  ;;  %v13598_v59 = vld [vmem:[#allocation33_spill] sm:$0xff] }
 0x39c   : > { %v4587_v2 = vpop.f32.mrb[113].mxu0  ;;  %v4712_v23 = vadd.f32 %v4680_v11, %v4648_v33  ;;  %v4840_v42 = vsub.f32 %v4776_v10, %v4808_v35  ;;  %v4681_v14 = vmul.f32 %v13590_v24, %v4094_v51  ;;  %v4777_v55 = vmul.f32 %v13589_v1, %v4094_v51  ;;  %4958 = vadd.xlane.f32.xlu0 %v4903_v56  ;;  %v13597_v11 = vld [vmem:[#allocation64_spill] sm:$0xff] }
 0x39d   : > { %v4589_v38 = vpop.f32.mrb[114].mxu0 }
 0x39e   : > { %v4591_v19 = vpop.f32.mrb[115].mxu0  ;;  %v4744_v9 = vmul.f32 %v4712_v23, %v4585_v36  ;;  %v4872_v30 = vmul.f32 %v4840_v42, %v4587_v2  ;;  %v4713_v60 = vadd.f32 %v4681_v14, %v4649_v29  ;;  %v4841_v31 = vsub.f32 %v4777_v55, %v4809_v20 }
 0x3a0   : > { %v4904_v21 = vadd.f32 %v4872_v30, %v4744_v9  ;;  %v4745_v40 = vmul.f32 %v4713_v60, %v4589_v38  ;;  %v4873_v16 = vmul.f32 %v4841_v31, %v4591_v19  ;;  %v4098_v4 = vpop.f32.mrb[84].mxu1 }
 0x3a1   : > { %v4650_v54 = vmul.f32 %v13591_v28, %v4098_v4  ;;  %v4810_v53 = vmul.f32 %v13592_v32, %v4098_v4  ;;  %v4100_v26 = vpop.f32.mrb[85].mxu1 }
 0x3a2   : > { %v4905_v18 = vadd.f32 %v4873_v16, %v4745_v40  ;;  %v4682_v41 = vmul.f32 %v13592_v32, %v4100_v26  ;;  %v4778_v5 = vmul.f32 %v13591_v28, %v4100_v26  ;;  %v4102_v12 = vpop.f32.mrb[86].mxu1  ;;  %4960 = vadd.xlane.f32.xlu1 %v4904_v21  ;;  %v13599_v21 = vld [vmem:[#allocation68_spill] sm:$0xff]  ;;  %v13600_v16 = vld [vmem:[#allocation35_spill] sm:$0xff] }
 0x3a3   : > { %v4595_v58 = vpop.f32.mrb[116].mxu0  ;;  %v4651_v39 = vmul.f32 %v13593_v43, %v4102_v12  ;;  %v4811_v37 = vmul.f32 %v13594_v63, %v4102_v12  ;;  %v4104_v0 = vpop.f32.mrb[87].mxu1  ;;  %v13602_v12 = vld [vmem:[#allocation6_spill] sm:$0xff] }
 0x3a4   : > { %v4597_v6 = vpop.f32.mrb[117].mxu0  ;;  %v4714_v15 = vadd.f32 %v4682_v41, %v4650_v54  ;;  %v4842_v49 = vsub.f32 %v4778_v5, %v4810_v53  ;;  %v4683_v3 = vmul.f32 %v13594_v63, %v4104_v0  ;;  %v4779_v61 = vmul.f32 %v13593_v43, %v4104_v0  ;;  %4962 = vadd.xlane.f32.xlu0 %v4905_v18  ;;  %v13601_v41 = vld [vmem:[#allocation72_spill] sm:$0xff] }
 0x3a5   : > { %v4599_v52 = vpop.f32.mrb[118].mxu0 }
 0x3a6   : > { %v4601_v57 = vpop.f32.mrb[119].mxu0  ;;  %v4746_v13 = vmul.f32 %v4714_v15, %v4595_v58  ;;  %v4874_v22 = vmul.f32 %v4842_v49, %v4597_v6  ;;  %v4715_v50 = vadd.f32 %v4683_v3, %v4651_v39  ;;  %v4843_v45 = vsub.f32 %v4779_v61, %v4811_v37 }
 0x3a8   : > { %v4906_v48 = vadd.f32 %v4874_v22, %v4746_v13  ;;  %v4747_v47 = vmul.f32 %v4715_v50, %v4599_v52  ;;  %v4875_v25 = vmul.f32 %v4843_v45, %v4601_v57  ;;  %v4108_v62 = vpop.f32.mrb[88].mxu1 }
 0x3a9   : > { %v4652_v44 = vmul.f32 %v13595_v34, %v4108_v62  ;;  %v4812_v27 = vmul.f32 %v13596_v17, %v4108_v62  ;;  %v4110_v8 = vpop.f32.mrb[89].mxu1 }
 0x3aa   : > { %v4907_v33 = vadd.f32 %v4875_v25, %v4747_v47  ;;  %v4684_v35 = vmul.f32 %v13596_v17, %v4110_v8  ;;  %v4780_v7 = vmul.f32 %v13595_v34, %v4110_v8  ;;  %v4112_v56 = vpop.f32.mrb[90].mxu1  ;;  %4964 = vadd.xlane.f32.xlu1 %v4906_v48  ;;  %v9450_v48 = vmov 1966171168  }
 0x3ab   : > { %v4605_v46 = vpop.f32.mrb[120].mxu0  ;;  %v4653_v10 = vmul.f32 %v13597_v11, %v4112_v56  ;;  %v4813_v2 = vmul.f32 %v13598_v59, %v4112_v56  ;;  %v4114_v1 = vpop.f32.mrb[91].mxu1  ;;  %v6037_v47 = vunpack.c.l.s4 %v9450_v48  ;;  %v13603_v25 = vlaneseq }
 0x3ac   : > { %v4607_v36 = vpop.f32.mrb[121].mxu0  ;;  %v4716_v29 = vadd.f32 %v4684_v35, %v4652_v44  ;;  %v4844_v24 = vsub.f32 %v4780_v7, %v4812_v27  ;;  %v4685_v51 = vmul.f32 %v13598_v59, %v4114_v1  ;;  %v4781_v23 = vmul.f32 %v13597_v11, %v4114_v1  ;;  %4966 = vadd.xlane.f32.xlu0 %v4907_v33 }
 0x3ad   : > { %v4609_v20 = vpop.f32.mrb[122].mxu0  ;;  %v12516_v62 = vshrl.u32 %v13603_v25, 7  ;;  %v6038_v34 = vunpack.c.0.s8 %v6037_v47  ;;  %vm7902_vm15 = vcmp.lt.s32.totalorder %v13603_v25, 256 }
 0x3ae   : > { %v4611_v42 = vpop.f32.mrb[123].mxu0  ;;  %v4748_v38 = vmul.f32 %v4716_v29, %v4605_v46  ;;  %v4876_v14 = vmul.f32 %v4844_v24, %v4607_v36  ;;  %v4717_v55 = vadd.f32 %v4685_v51, %v4653_v10  ;;  %v4845_v19 = vsub.f32 %v4781_v23, %v4813_v2 }
 0x3af   : > { %v12519_v44 = vsub.s32 0, %v12516_v62  ;;  %v12522_v17 = vsub.s32 1, %v12516_v62  ;;  %v12525_v27 = vsub.s32 2, %v12516_v62  ;;  %v12528_v8 = vsub.s32 3, %v12516_v62 }
 0x3b0   : > { %v4908_v9 = vadd.f32 %v4876_v14, %v4748_v38  ;;  %v4749_v30 = vmul.f32 %v4717_v55, %v4609_v20  ;;  %v4877_v60 = vmul.f32 %v4845_v19, %v4611_v42  ;;  %v4118_v31 = vpop.f32.mrb[92].mxu1  ;;  %v12531_v33 = vsub.s32 4, %v12516_v62 }
 0x3b1   : > { %v4654_v40 = vmul.f32 %v13599_v21, %v4118_v31  ;;  %v4814_v4 = vmul.f32 %v13600_v16, %v4118_v31  ;;  %v4120_v28 = vpop.f32.mrb[93].mxu1  ;;  %v12534_v46 = vsub.s32 5, %v12516_v62  ;;  %v12537_v35 = vsub.s32 6, %v12516_v62 }
 0x3b2   : > { %v4909_v54 = vadd.f32 %v4877_v60, %v4749_v30  ;;  %v4686_v53 = vmul.f32 %v13600_v16, %v4120_v28  ;;  %v4782_v26 = vmul.f32 %v13599_v21, %v4120_v28  ;;  %v4122_v18 = vpop.f32.mrb[94].mxu1  ;;  %4968 = vadd.xlane.f32.xlu1 %v4908_v9  ;;  %v12540_v7 = vsub.s32 7, %v12516_v62 }
 0x3b3   : > { %v4615_v32 = vpop.f32.mrb[124].mxu0  ;;  %v4655_v5 = vmul.f32 %v13601_v41, %v4122_v18  ;;  %v4815_v6 = vmul.f32 %v13602_v12, %v4122_v18  ;;  %v4124_v43 = vpop.f32.mrb[95].mxu1  ;;  %v12543_v36 = vsub.s32 %v6038_v34, %v12516_v62 }
 0x3b4   : > { %v4617_v58 = vpop.f32.mrb[125].mxu0  ;;  %v4718_v39 = vadd.f32 %v4686_v53, %v4654_v40  ;;  %v4846_v63 = vsub.f32 %v4782_v26, %v4814_v4  ;;  %v4687_v0 = vmul.f32 %v13602_v12, %v4124_v43  ;;  %v4783_v15 = vmul.f32 %v13601_v41, %v4124_v43  ;;  %4970 = vadd.xlane.f32.xlu0 %v4909_v54 }
 0x3b5   : > { %v4619_v37 = vpop.f32.mrb[126].mxu0 }
 0x3b6   : > { %v4621_v49 = vpop.f32.mrb[127].mxu0  ;;  %v4750_v52 = vmul.f32 %v4718_v39, %v4615_v32  ;;  %v4878_v3 = vmul.f32 %v4846_v63, %v4617_v58  ;;  %v4719_v61 = vadd.f32 %v4687_v0, %v4655_v5  ;;  %v4847_v57 = vsub.f32 %v4783_v15, %v4815_v6 }
 0x3b8   : > { %v4910_v13 = vadd.f32 %v4878_v3, %v4750_v52  ;;  %v4751_v22 = vmul.f32 %v4719_v61, %v4619_v37  ;;  %v4879_v50 = vmul.f32 %v4847_v57, %v4621_v49 }
 0x3ba   : > { %v4911_v45 = vadd.f32 %v4879_v50, %v4751_v22  ;;  %4972 = vadd.xlane.f32.xlu1 %v4910_v13 }
 0x3bc   : > { %4974 = vadd.xlane.f32.xlu0 %v4911_v45 }
 0x3cf   : > { %v4913_v56 = vpop.xlane.xlu0 %4912 }
 0x3d0   : > { %v5011_v11 = vrot.slane %v4913_v56, %v12519_v44  ;;  %v5015_v10 = vrot.slane %v4913_v56, %v12522_v17  ;;  %v5019_v59 = vrot.slane %v4913_v56, %v12525_v27  ;;  %v5023_v2 = vrot.slane %v4913_v56, %v12528_v8 }
 0x3d1   : > { %v4915_v1 = vpop.xlane.xlu1 %4914  ;;  %v5027_v29 = vrot.slane %v4913_v56, %v12531_v33  ;;  %v5031_v24 = vrot.slane %v4913_v56, %v12534_v46  ;;  %v5035_v20 = vrot.slane %v4913_v56, %v12537_v35  ;;  %v5039_v51 = vrot.slane %v4913_v56, %v12540_v7 }
 0x3d2   : > { %v6032_v23 = vcombine.low %v5011_v11, %v5015_v10  ;;  %v6033_v42 = vcombine.low %v5019_v59, %v5023_v2  ;;  %v5043_v38 = vrot.slane %v4915_v1, %v12519_v44  ;;  %v5047_v14 = vrot.slane %v4915_v1, %v12522_v17 }
 0x3d3   : > { %v6034_v55 = vcombine.low %v5027_v29, %v5031_v24  ;;  %v6035_v19 = vcombine.low %v5035_v20, %v5039_v51  ;;  %v5051_v9 = vrot.slane %v4915_v1, %v12525_v27  ;;  %v5055_v30 = vrot.slane %v4915_v1, %v12528_v8 }
 0x3d4   : > { %v6042_v60 = vrot.slane %v6032_v23, %v12543_v36  ;;  %v6049_v31 = vrot.slane %v6033_v42, %v12543_v36  ;;  %v5059_v21 = vrot.slane %v4915_v1, %v12531_v33  ;;  %v5063_v40 = vrot.slane %v4915_v1, %v12534_v46 }
 0x3d5   : > { %v6056_v16 = vrot.slane %v6034_v55, %v12543_v36  ;;  %v6063_v4 = vrot.slane %v6035_v19, %v12543_v36  ;;  %v5067_v28 = vrot.slane %v4915_v1, %v12537_v35  ;;  %v5071_v54 = vrot.slane %v4915_v1, %v12540_v7 }
 0x3d6   : > { %v6064_v32 = vcombine.low %v6042_v60, %v6049_v31  ;;  %v6081_v53 = vcombine.low %v5043_v38, %v5047_v14  ;;  %v6082_v26 = vcombine.low %v5051_v9, %v5055_v30  ;;  %v6083_v18 = vcombine.low %v5059_v21, %v5063_v40 }
 0x3d7   : > { %v4917_v58 = vpop.xlane.xlu0 %4916  ;;  %v6065_v41 = vcombine.low %v6056_v16, %v6063_v4  ;;  %v6084_v5 = vcombine.low %v5067_v28, %v5071_v54 }
 0x3d8   : > { %v6072_v12 = vrot.slane %v6064_v32, %v12543_v36  ;;  %v6091_v6 = vrot.slane %v6081_v53, %v12543_v36  ;;  %v6098_v43 = vrot.slane %v6082_v26, %v12543_v36  ;;  %v6105_v39 = vrot.slane %v6083_v18, %v12543_v36 }
 0x3d9   : > { %v6079_v63 = vrot.slane %v6065_v41, %v12543_v36  ;;  %v6112_v37 = vrot.slane %v6084_v5, %v12543_v36  ;;  %v5075_v0 = vrot.slane %v4917_v58, %v12519_v44  ;;  %v5079_v15 = vrot.slane %v4917_v58, %v12522_v17 }
 0x3da   : > { %v6113_v49 = vcombine.low %v6091_v6, %v6098_v43  ;;  %v5083_v52 = vrot.slane %v4917_v58, %v12525_v27  ;;  %v5087_v3 = vrot.slane %v4917_v58, %v12528_v8  ;;  %v5091_v61 = vrot.slane %v4917_v58, %v12531_v33 }
 0x3db   : > { %v4919_v57 = vpop.xlane.xlu0 %4918  ;;  %v6080_v13 = vcombine.low %v6072_v12, %v6079_v63  ;;  %v6114_v22 = vcombine.low %v6105_v39, %v6112_v37  ;;  %v5095_v50 = vrot.slane %v4917_v58, %v12534_v46  ;;  %v5099_v45 = vrot.slane %v4917_v58, %v12537_v35 }
 0x3dc   : > { %v6121_v48 = vrot.slane %v6113_v49, %v12543_v36  ;;  %v5103_v47 = vrot.slane %v4917_v58, %v12540_v7  ;;  %v6130_v34 = vcombine.low %v5075_v0, %v5079_v15  ;;  %v6131_v56 = vcombine.low %v5083_v52, %v5087_v3 }
 0x3dd   : > { %7601 = vperm.xlu1 %9167, %v6080_v13   ;;  %v6128_v11 = vrot.slane %v6114_v22, %v12543_v36  ;;  %v6132_v10 = vcombine.low %v5091_v61, %v5095_v50  ;;  %v5107_v59 = vrot.slane %v4919_v57, %v12519_v44  ;;  %v5111_v2 = vrot.slane %v4919_v57, %v12522_v17 }
 0x3de   : > { %v6133_v1 = vcombine.low %v5099_v45, %v5103_v47  ;;  %v6140_v29 = vrot.slane %v6130_v34, %v12543_v36  ;;  %v6147_v24 = vrot.slane %v6131_v56, %v12543_v36  ;;  %v5115_v20 = vrot.slane %v4919_v57, %v12525_v27 }
 0x3df   : > { %v6129_v51 = vcombine.low %v6121_v48, %v6128_v11  ;;  %v4921_v23 = vpop.xlane.xlu1 %4920  ;;  %v6154_v42 = vrot.slane %v6132_v10, %v12543_v36  ;;  %v5119_v38 = vrot.slane %v4919_v57, %v12528_v8  ;;  %v5123_v14 = vrot.slane %v4919_v57, %v12531_v33 }
 0x3e0   : > { %v6161_v55 = vrot.slane %v6133_v1, %v12543_v36  ;;  %v6162_v19 = vcombine.low %v6140_v29, %v6147_v24  ;;  %v5127_v9 = vrot.slane %v4919_v57, %v12534_v46  ;;  %v5131_v30 = vrot.slane %v4919_v57, %v12537_v35 }
 0x3e1   : > { %7604 = vperm.xlu0 %9166, %v6129_v51   ;;  %v5135_v60 = vrot.slane %v4919_v57, %v12540_v7  ;;  %v6179_v31 = vcombine.low %v5107_v59, %v5111_v2  ;;  %v6180_v21 = vcombine.low %v5115_v20, %v5119_v38  ;;  %v5139_v40 = vrot.slane %v4921_v23, %v12519_v44  ;;  %v4923_v58 = vpop.xlane.xlu0 %4922 }
 0x3e2   : > { %v6163_v16 = vcombine.low %v6154_v42, %v6161_v55  ;;  %v6170_v4 = vrot.slane %v6162_v19, %v12543_v36  ;;  %v6181_v28 = vcombine.low %v5123_v14, %v5127_v9  ;;  %v5143_v54 = vrot.slane %v4921_v23, %v12522_v17 }
 0x3e3   : > { %v6182_v32 = vcombine.low %v5131_v30, %v5135_v60  ;;  %v6189_v53 = vrot.slane %v6179_v31, %v12543_v36  ;;  %v6196_v26 = vrot.slane %v6180_v21, %v12543_v36  ;;  %v5147_v18 = vrot.slane %v4921_v23, %v12525_v27 }
 0x3e4   : > { %v6177_v41 = vrot.slane %v6163_v16, %v12543_v36  ;;  %v6203_v5 = vrot.slane %v6181_v28, %v12543_v36  ;;  %v5151_v12 = vrot.slane %v4921_v23, %v12528_v8  ;;  %v5155_v6 = vrot.slane %v4921_v23, %v12531_v33 }
 0x3e5   : > { %v6210_v43 = vrot.slane %v6182_v32, %v12543_v36  ;;  %v6211_v39 = vcombine.low %v6189_v53, %v6196_v26  ;;  %v5159_v63 = vrot.slane %v4921_v23, %v12534_v46  ;;  %v5163_v37 = vrot.slane %v4921_v23, %v12537_v35 }
 0x3e6   : > { %v6178_v0 = vcombine.low %v6170_v4, %v6177_v41  ;;  %v5167_v15 = vrot.slane %v4921_v23, %v12540_v7  ;;  %v6228_v49 = vcombine.low %v5139_v40, %v5143_v54  ;;  %v6229_v52 = vcombine.low %v5147_v18, %v5151_v12 }
 0x3e7   : > { %v6212_v3 = vcombine.low %v6203_v5, %v6210_v43  ;;  %v6219_v61 = vrot.slane %v6211_v39, %v12543_v36  ;;  %v6230_v57 = vcombine.low %v5155_v6, %v5159_v63  ;;  %v5171_v13 = vrot.slane %v4923_v58, %v12519_v44  ;;  %v4925_v10 = vpop.xlane.xlu1 %4924 }
 0x3e8   : > { %7607 = vperm.xlu1 %9167, %v6178_v0   ;;  %v6231_v22 = vcombine.low %v5163_v37, %v5167_v15  ;;  %v6238_v50 = vrot.slane %v6228_v49, %v12543_v36  ;;  %v6245_v45 = vrot.slane %v6229_v52, %v12543_v36  ;;  %v5175_v48 = vrot.slane %v4923_v58, %v12522_v17 }
 0x3e9   : > { %v6226_v47 = vrot.slane %v6212_v3, %v12543_v36  ;;  %v6252_v34 = vrot.slane %v6230_v57, %v12543_v36  ;;  %v5179_v56 = vrot.slane %v4923_v58, %v12525_v27  ;;  %v5183_v11 = vrot.slane %v4923_v58, %v12528_v8  ;;  %v4927_v4 = vpop.xlane.xlu0 %4926 }
 0x3ea   : > { %v6259_v59 = vrot.slane %v6231_v22, %v12543_v36  ;;  %v6260_v2 = vcombine.low %v6238_v50, %v6245_v45  ;;  %v5187_v1 = vrot.slane %v4923_v58, %v12531_v33  ;;  %v5191_v29 = vrot.slane %v4923_v58, %v12534_v46 }
 0x3eb   : > { %v6227_v24 = vcombine.low %v6219_v61, %v6226_v47  ;;  %v5195_v20 = vrot.slane %v4923_v58, %v12537_v35  ;;  %v5199_v51 = vrot.slane %v4923_v58, %v12540_v7  ;;  %v6277_v23 = vcombine.low %v5171_v13, %v5175_v48 }
 0x3ec   : > { %v6261_v42 = vcombine.low %v6252_v34, %v6259_v59  ;;  %v6268_v38 = vrot.slane %v6260_v2, %v12543_v36  ;;  %v6278_v14 = vcombine.low %v5179_v56, %v5183_v11  ;;  %v6279_v55 = vcombine.low %v5187_v1, %v5191_v29 }
 0x3ed   : > { %7610 = vperm.xlu1 %9167, %v6227_v24   ;;  %v6280_v19 = vcombine.low %v5195_v20, %v5199_v51  ;;  %v6287_v9 = vrot.slane %v6277_v23, %v12543_v36  ;;  %v5203_v30 = vrot.slane %v4925_v10, %v12519_v44  ;;  %v5207_v60 = vrot.slane %v4925_v10, %v12522_v17 }
 0x3ee   : > { %v6275_v31 = vrot.slane %v6261_v42, %v12543_v36  ;;  %v6294_v21 = vrot.slane %v6278_v14, %v12543_v36  ;;  %v6301_v40 = vrot.slane %v6279_v55, %v12543_v36  ;;  %v5211_v16 = vrot.slane %v4925_v10, %v12525_v27 }
 0x3ef   : > { %v6308_v28 = vrot.slane %v6280_v19, %v12543_v36  ;;  %v5215_v54 = vrot.slane %v4925_v10, %v12528_v8  ;;  %v5219_v32 = vrot.slane %v4925_v10, %v12531_v33  ;;  %v5223_v53 = vrot.slane %v4925_v10, %v12534_v46  ;;  %v4929_v61 = vpop.xlane.xlu1 %4928 }
 0x3f0   : > { %v6276_v26 = vcombine.low %v6268_v38, %v6275_v31  ;;  %v6309_v18 = vcombine.low %v6287_v9, %v6294_v21  ;;  %v5227_v58 = vrot.slane %v4925_v10, %v12537_v35  ;;  %v5231_v41 = vrot.slane %v4925_v10, %v12540_v7 }
 0x3f1   : > { %v6310_v5 = vcombine.low %v6301_v40, %v6308_v28  ;;  %v6326_v12 = vcombine.low %v5203_v30, %v5207_v60  ;;  %v6327_v6 = vcombine.low %v5211_v16, %v5215_v54  ;;  %v6328_v43 = vcombine.low %v5219_v32, %v5223_v53  ;;  %v4931_v38 = vpop.xlane.xlu0 %4930 }
 0x3f2   : > { %7613 = vperm.xlu0 %9166, %v6276_v26   ;;  %v6317_v39 = vrot.slane %v6309_v18, %v12543_v36  ;;  %v6329_v63 = vcombine.low %v5227_v58, %v5231_v41  ;;  %v5235_v37 = vrot.slane %v4927_v4, %v12519_v44  ;;  %v5239_v0 = vrot.slane %v4927_v4, %v12522_v17 }
 0x3f3   : > { %v6324_v15 = vrot.slane %v6310_v5, %v12543_v36  ;;  %v6336_v49 = vrot.slane %v6326_v12, %v12543_v36  ;;  %v6343_v52 = vrot.slane %v6327_v6, %v12543_v36  ;;  %v6350_v3 = vrot.slane %v6328_v43, %v12543_v36 }
 0x3f4   : > { %v6357_v57 = vrot.slane %v6329_v63, %v12543_v36  ;;  %v5243_v13 = vrot.slane %v4927_v4, %v12525_v27  ;;  %v5247_v22 = vrot.slane %v4927_v4, %v12528_v8  ;;  %v5251_v50 = vrot.slane %v4927_v4, %v12531_v33 }
 0x3f5   : > { %v6325_v45 = vcombine.low %v6317_v39, %v6324_v15  ;;  %v6358_v48 = vcombine.low %v6336_v49, %v6343_v52  ;;  %v5255_v47 = vrot.slane %v4927_v4, %v12534_v46  ;;  %v5259_v34 = vrot.slane %v4927_v4, %v12537_v35 }
 0x3f6   : > { %v6359_v56 = vcombine.low %v6350_v3, %v6357_v57  ;;  %v5263_v11 = vrot.slane %v4927_v4, %v12540_v7  ;;  %v6375_v10 = vcombine.low %v5235_v37, %v5239_v0  ;;  %v6376_v59 = vcombine.low %v5243_v13, %v5247_v22 }
 0x3f7   : > { %7616 = vperm.xlu1 %9167, %v6325_v45   ;;  %v6366_v2 = vrot.slane %v6358_v48, %v12543_v36  ;;  %v6377_v1 = vcombine.low %v5251_v50, %v5255_v47  ;;  %v5267_v29 = vrot.slane %v4929_v61, %v12519_v44  ;;  %v5271_v24 = vrot.slane %v4929_v61, %v12522_v17  ;;  %v4933_v63 = vpop.xlane.xlu1 %4932 }
 0x3f8   : > { %v6373_v20 = vrot.slane %v6359_v56, %v12543_v36  ;;  %v6378_v51 = vcombine.low %v5259_v34, %v5263_v11  ;;  %v6385_v23 = vrot.slane %v6375_v10, %v12543_v36  ;;  %v6392_v42 = vrot.slane %v6376_v59, %v12543_v36 }
 0x3f9   : > { %v6399_v14 = vrot.slane %v6377_v1, %v12543_v36  ;;  %v5275_v55 = vrot.slane %v4929_v61, %v12525_v27  ;;  %v5279_v19 = vrot.slane %v4929_v61, %v12528_v8  ;;  %v5283_v9 = vrot.slane %v4929_v61, %v12531_v33  ;;  %v4935_v1 = vpop.xlane.xlu0 %4934 }
 0x3fa   : > { %v6374_v30 = vcombine.low %v6366_v2, %v6373_v20  ;;  %v6406_v60 = vrot.slane %v6378_v51, %v12543_v36  ;;  %v6407_v31 = vcombine.low %v6385_v23, %v6392_v42  ;;  %v5287_v21 = vrot.slane %v4929_v61, %v12534_v46 }
 0x3fb   : > { %v5291_v40 = vrot.slane %v4929_v61, %v12537_v35  ;;  %v5295_v16 = vrot.slane %v4929_v61, %v12540_v7  ;;  %v6424_v4 = vcombine.low %v5267_v29, %v5271_v24  ;;  %v6425_v28 = vcombine.low %v5275_v55, %v5279_v19 }
 0x3fc   : > { %7619 = vperm.xlu0 %9166, %v6374_v30   ;;  %v6408_v54 = vcombine.low %v6399_v14, %v6406_v60  ;;  %v6415_v32 = vrot.slane %v6407_v31, %v12543_v36  ;;  %v6426_v53 = vcombine.low %v5283_v9, %v5287_v21  ;;  %v5299_v26 = vrot.slane %v4931_v38, %v12519_v44 }
 0x3fd   : > { %v6427_v18 = vcombine.low %v5291_v40, %v5295_v16  ;;  %v6434_v58 = vrot.slane %v6424_v4, %v12543_v36  ;;  %v6441_v41 = vrot.slane %v6425_v28, %v12543_v36  ;;  %v5303_v5 = vrot.slane %v4931_v38, %v12522_v17 }
 0x3fe   : > { %v6422_v12 = vrot.slane %v6408_v54, %v12543_v36  ;;  %v6448_v6 = vrot.slane %v6426_v53, %v12543_v36  ;;  %v5307_v43 = vrot.slane %v4931_v38, %v12525_v27  ;;  %v5311_v39 = vrot.slane %v4931_v38, %v12528_v8 }
 0x3ff   : > { %v6455_v37 = vrot.slane %v6427_v18, %v12543_v36  ;;  %v6456_v0 = vcombine.low %v6434_v58, %v6441_v41  ;;  %v5315_v15 = vrot.slane %v4931_v38, %v12531_v33  ;;  %v5319_v49 = vrot.slane %v4931_v38, %v12534_v46 }
 0x400   : > { %v6423_v52 = vcombine.low %v6415_v32, %v6422_v12  ;;  %v5323_v3 = vrot.slane %v4931_v38, %v12537_v35  ;;  %v5327_v61 = vrot.slane %v4931_v38, %v12540_v7  ;;  %v6473_v57 = vcombine.low %v5299_v26, %v5303_v5  ;;  %v4937_v32 = vpop.xlane.xlu1 %4936 }
 0x401   : > { %v6457_v13 = vcombine.low %v6448_v6, %v6455_v37  ;;  %v6464_v22 = vrot.slane %v6456_v0, %v12543_v36  ;;  %v6474_v50 = vcombine.low %v5307_v43, %v5311_v39  ;;  %v6475_v45 = vcombine.low %v5315_v15, %v5319_v49 }
 0x402   : > { %7622 = vperm.xlu1 %9167, %v6423_v52   ;;  %v6476_v48 = vcombine.low %v5323_v3, %v5327_v61  ;;  %v6483_v47 = vrot.slane %v6473_v57, %v12543_v36  ;;  %v5331_v34 = vrot.slane %v4933_v63, %v12519_v44  ;;  %v5335_v56 = vrot.slane %v4933_v63, %v12522_v17 }
 0x403   : > { %v6471_v11 = vrot.slane %v6457_v13, %v12543_v36  ;;  %v6490_v10 = vrot.slane %v6474_v50, %v12543_v36  ;;  %v6497_v59 = vrot.slane %v6475_v45, %v12543_v36  ;;  %v5339_v2 = vrot.slane %v4933_v63, %v12525_v27 }
 0x404   : > { %v6504_v29 = vrot.slane %v6476_v48, %v12543_v36  ;;  %v5343_v24 = vrot.slane %v4933_v63, %v12528_v8  ;;  %v5347_v20 = vrot.slane %v4933_v63, %v12531_v33  ;;  %v5351_v51 = vrot.slane %v4933_v63, %v12534_v46 }
 0x405   : > { %v6472_v23 = vcombine.low %v6464_v22, %v6471_v11  ;;  %v6505_v42 = vcombine.low %v6483_v47, %v6490_v10  ;;  %v5355_v38 = vrot.slane %v4933_v63, %v12537_v35  ;;  %v5359_v14 = vrot.slane %v4933_v63, %v12540_v7  ;;  %v4939_v22 = vpop.xlane.xlu0 %4938 }
 0x406   : > { %v6506_v55 = vcombine.low %v6497_v59, %v6504_v29  ;;  %v6522_v19 = vcombine.low %v5331_v34, %v5335_v56  ;;  %v6523_v9 = vcombine.low %v5339_v2, %v5343_v24  ;;  %v6524_v30 = vcombine.low %v5347_v20, %v5351_v51 }
 0x407   : > { %7625 = vperm.xlu0 %9166, %v6472_v23   ;;  %v6513_v60 = vrot.slane %v6505_v42, %v12543_v36  ;;  %v6525_v31 = vcombine.low %v5355_v38, %v5359_v14  ;;  %v5363_v21 = vrot.slane %v4935_v1, %v12519_v44  ;;  %v5367_v40 = vrot.slane %v4935_v1, %v12522_v17  ;;  %v12717_v59 = vpop.xlane.xlu1 %4940 }
 0x408   : > { %v6520_v16 = vrot.slane %v6506_v55, %v12543_v36  ;;  %v6532_v4 = vrot.slane %v6522_v19, %v12543_v36  ;;  %v6539_v28 = vrot.slane %v6523_v9, %v12543_v36  ;;  %v6546_v54 = vrot.slane %v6524_v30, %v12543_v36 }
 0x409   : > { %v6553_v53 = vrot.slane %v6525_v31, %v12543_v36  ;;  %v5371_v26 = vrot.slane %v4935_v1, %v12525_v27  ;;  %v5375_v18 = vrot.slane %v4935_v1, %v12528_v8  ;;  %v5379_v58 = vrot.slane %v4935_v1, %v12531_v33 }
 0x40a   : > { %v6521_v41 = vcombine.low %v6513_v60, %v6520_v16  ;;  %v6554_v5 = vcombine.low %v6532_v4, %v6539_v28  ;;  %v5383_v12 = vrot.slane %v4935_v1, %v12534_v46  ;;  %v5387_v6 = vrot.slane %v4935_v1, %v12537_v35 }
 0x40b   : > { %v6555_v43 = vcombine.low %v6546_v54, %v6553_v53  ;;  %v5391_v39 = vrot.slane %v4935_v1, %v12540_v7  ;;  %v6571_v63 = vcombine.low %v5363_v21, %v5367_v40  ;;  %v6572_v37 = vcombine.low %v5371_v26, %v5375_v18 }
 0x40c   : > { %7628 = vperm.xlu1 %9167, %v6521_v41   ;;  %v6562_v0 = vrot.slane %v6554_v5, %v12543_v36  ;;  %v6573_v15 = vcombine.low %v5379_v58, %v5383_v12  ;;  %v5395_v49 = vrot.slane %v4937_v32, %v12519_v44  ;;  %v5399_v52 = vrot.slane %v4937_v32, %v12522_v17 }
 0x40d   : > { %v6569_v3 = vrot.slane %v6555_v43, %v12543_v36  ;;  %v6574_v61 = vcombine.low %v5387_v6, %v5391_v39  ;;  %v6581_v57 = vrot.slane %v6571_v63, %v12543_v36  ;;  %v6588_v13 = vrot.slane %v6572_v37, %v12543_v36 }
 0x40e   : > { %v6595_v50 = vrot.slane %v6573_v15, %v12543_v36  ;;  %v5403_v45 = vrot.slane %v4937_v32, %v12525_v27  ;;  %v5407_v48 = vrot.slane %v4937_v32, %v12528_v8  ;;  %v5411_v47 = vrot.slane %v4937_v32, %v12531_v33 }
 0x40f   : > { %v6570_v34 = vcombine.low %v6562_v0, %v6569_v3  ;;  %v6602_v56 = vrot.slane %v6574_v61, %v12543_v36  ;;  %v6603_v11 = vcombine.low %v6581_v57, %v6588_v13  ;;  %v5415_v10 = vrot.slane %v4937_v32, %v12534_v46  ;;  %v4945_v16 = vpop.xlane.xlu1 %4944 }
 0x410   : > { %v5419_v2 = vrot.slane %v4937_v32, %v12537_v35  ;;  %v5423_v1 = vrot.slane %v4937_v32, %v12540_v7  ;;  %v6620_v29 = vcombine.low %v5395_v49, %v5399_v52  ;;  %v6621_v24 = vcombine.low %v5403_v45, %v5407_v48  ;;  %v12733_v32 = vpop.xlane.xlu0 %4942 }
 0x411   : > { %7631 = vperm.xlu0 %9166, %v6570_v34   ;;  %v6604_v20 = vcombine.low %v6595_v50, %v6602_v56  ;;  %v6611_v51 = vrot.slane %v6603_v11, %v12543_v36  ;;  %v6622_v23 = vcombine.low %v5411_v47, %v5415_v10  ;;  %v5427_v42 = vrot.slane %v4939_v22, %v12519_v44 }
 0x412   : > { %v6623_v38 = vcombine.low %v5419_v2, %v5423_v1  ;;  %v6630_v14 = vrot.slane %v6620_v29, %v12543_v36  ;;  %v6637_v55 = vrot.slane %v6621_v24, %v12543_v36  ;;  %v5431_v19 = vrot.slane %v4939_v22, %v12522_v17 }
 0x413   : > { %v6618_v9 = vrot.slane %v6604_v20, %v12543_v36  ;;  %v6644_v30 = vrot.slane %v6622_v23, %v12543_v36  ;;  %v5435_v60 = vrot.slane %v4939_v22, %v12525_v27  ;;  %v5439_v31 = vrot.slane %v4939_v22, %v12528_v8 }
 0x414   : > { %v6651_v21 = vrot.slane %v6623_v38, %v12543_v36  ;;  %v6652_v40 = vcombine.low %v6630_v14, %v6637_v55  ;;  %v5443_v4 = vrot.slane %v4939_v22, %v12531_v33  ;;  %v5447_v28 = vrot.slane %v4939_v22, %v12534_v46  ;;  %v4947_v3 = vpop.xlane.xlu0 %4946 }
 0x415   : > { %v6619_v54 = vcombine.low %v6611_v51, %v6618_v9  ;;  %v5451_v53 = vrot.slane %v4939_v22, %v12537_v35  ;;  %v5455_v26 = vrot.slane %v4939_v22, %v12540_v7  ;;  %v6669_v18 = vcombine.low %v5427_v42, %v5431_v19 }
 0x416   : > { %v6653_v58 = vcombine.low %v6644_v30, %v6651_v21  ;;  %v6660_v41 = vrot.slane %v6652_v40, %v12543_v36  ;;  %v6670_v5 = vcombine.low %v5435_v60, %v5439_v31  ;;  %v6671_v12 = vcombine.low %v5443_v4, %v5447_v28 }
 0x417   : > { %7634 = vperm.xlu0 %9166, %v6619_v54   ;;  %v6672_v6 = vcombine.low %v5451_v53, %v5455_v26  ;;  %v6679_v43 = vrot.slane %v6669_v18, %v12543_v36  ;;  %v5523_v39 = vrot.slane %v4945_v16, %v12519_v44  ;;  %v5527_v63 = vrot.slane %v4945_v16, %v12522_v17  ;;  %v4949_v42 = vpop.xlane.xlu1 %4948 }
 0x418   : > { %v6667_v37 = vrot.slane %v6653_v58, %v12543_v36  ;;  %v6686_v0 = vrot.slane %v6670_v5, %v12543_v36  ;;  %v6693_v15 = vrot.slane %v6671_v12, %v12543_v36  ;;  %v5531_v49 = vrot.slane %v4945_v16, %v12525_v27 }
 0x419   : > { %v6700_v52 = vrot.slane %v6672_v6, %v12543_v36  ;;  %v5535_v61 = vrot.slane %v4945_v16, %v12528_v8  ;;  %v5539_v57 = vrot.slane %v4945_v16, %v12531_v33  ;;  %v5543_v13 = vrot.slane %v4945_v16, %v12534_v46  ;;  %v4951_v12 = vpop.xlane.xlu0 %4950 }
 0x41a   : > { %v6668_v22 = vcombine.low %v6660_v41, %v6667_v37  ;;  %v6701_v50 = vcombine.low %v6679_v43, %v6686_v0  ;;  %v5547_v45 = vrot.slane %v4945_v16, %v12537_v35  ;;  %v5551_v48 = vrot.slane %v4945_v16, %v12540_v7 }
 0x41b   : > { %v6702_v47 = vcombine.low %v6693_v15, %v6700_v52  ;;  %v6816_v34 = vcombine.low %v5523_v39, %v5527_v63  ;;  %v6817_v56 = vcombine.low %v5531_v49, %v5535_v61  ;;  %v6818_v11 = vcombine.low %v5539_v57, %v5543_v13 }
 0x41c   : > { %7637 = vperm.xlu0 %9166, %v6668_v22   ;;  %v6709_v10 = vrot.slane %v6701_v50, %v12543_v36  ;;  %v6819_v2 = vcombine.low %v5547_v45, %v5551_v48  ;;  %v5555_v1 = vrot.slane %v4947_v3, %v12519_v44  ;;  %v5559_v29 = vrot.slane %v4947_v3, %v12522_v17 }
 0x41d   : > { %v6716_v24 = vrot.slane %v6702_v47, %v12543_v36  ;;  %v6826_v20 = vrot.slane %v6816_v34, %v12543_v36  ;;  %v6833_v51 = vrot.slane %v6817_v56, %v12543_v36  ;;  %v6840_v23 = vrot.slane %v6818_v11, %v12543_v36 }
 0x41e   : > { %v6847_v38 = vrot.slane %v6819_v2, %v12543_v36  ;;  %v5563_v14 = vrot.slane %v4947_v3, %v12525_v27  ;;  %v5567_v55 = vrot.slane %v4947_v3, %v12528_v8  ;;  %v5571_v19 = vrot.slane %v4947_v3, %v12531_v33 }
 0x41f   : > { %v6717_v9 = vcombine.low %v6709_v10, %v6716_v24  ;;  %v6848_v30 = vcombine.low %v6826_v20, %v6833_v51  ;;  %v5575_v60 = vrot.slane %v4947_v3, %v12534_v46  ;;  %v5579_v31 = vrot.slane %v4947_v3, %v12537_v35 }
 0x420   : > { %v6849_v21 = vcombine.low %v6840_v23, %v6847_v38  ;;  %v5583_v40 = vrot.slane %v4947_v3, %v12540_v7  ;;  %v6865_v16 = vcombine.low %v5555_v1, %v5559_v29  ;;  %v6866_v4 = vcombine.low %v5563_v14, %v5567_v55  ;;  %v4953_v29 = vpop.xlane.xlu1 %4952 }
 0x421   : > { %7640 = vperm.xlu0 %9166, %v6717_v9   ;;  %v6856_v28 = vrot.slane %v6848_v30, %v12543_v36  ;;  %v6867_v54 = vcombine.low %v5571_v19, %v5575_v60  ;;  %v5587_v53 = vrot.slane %v4949_v42, %v12519_v44  ;;  %v5591_v26 = vrot.slane %v4949_v42, %v12522_v17 }
 0x422   : > { %v6863_v18 = vrot.slane %v6849_v21, %v12543_v36  ;;  %v6868_v58 = vcombine.low %v5579_v31, %v5583_v40  ;;  %v6875_v41 = vrot.slane %v6865_v16, %v12543_v36  ;;  %v6882_v5 = vrot.slane %v6866_v4, %v12543_v36 }
 0x423   : > { %v6889_v6 = vrot.slane %v6867_v54, %v12543_v36  ;;  %v5595_v43 = vrot.slane %v4949_v42, %v12525_v27  ;;  %v5599_v39 = vrot.slane %v4949_v42, %v12528_v8  ;;  %v5603_v63 = vrot.slane %v4949_v42, %v12531_v33 }
 0x424   : > { %v6864_v37 = vcombine.low %v6856_v28, %v6863_v18  ;;  %v6896_v0 = vrot.slane %v6868_v58, %v12543_v36  ;;  %v6897_v15 = vcombine.low %v6875_v41, %v6882_v5  ;;  %v5607_v49 = vrot.slane %v4949_v42, %v12534_v46 }
 0x425   : > { %v5611_v52 = vrot.slane %v4949_v42, %v12537_v35  ;;  %v5615_v3 = vrot.slane %v4949_v42, %v12540_v7  ;;  %v6914_v61 = vcombine.low %v5587_v53, %v5591_v26  ;;  %v6915_v57 = vcombine.low %v5595_v43, %v5599_v39  ;;  %v4955_v26 = vpop.xlane.xlu0 %4954 }
 0x426   : > { %7649 = vperm.xlu0 %9166, %v6864_v37   ;;  %v6898_v13 = vcombine.low %v6889_v6, %v6896_v0  ;;  %v6905_v22 = vrot.slane %v6897_v15, %v12543_v36  ;;  %v6916_v50 = vcombine.low %v5603_v63, %v5607_v49  ;;  %v5619_v45 = vrot.slane %v4951_v12, %v12519_v44 }
 0x427   : > { %v6917_v48 = vcombine.low %v5611_v52, %v5615_v3  ;;  %v6924_v47 = vrot.slane %v6914_v61, %v12543_v36  ;;  %v6931_v34 = vrot.slane %v6915_v57, %v12543_v36  ;;  %v5623_v56 = vrot.slane %v4951_v12, %v12522_v17 }
 0x428   : > { %v6912_v11 = vrot.slane %v6898_v13, %v12543_v36  ;;  %v6938_v10 = vrot.slane %v6916_v50, %v12543_v36  ;;  %v5627_v2 = vrot.slane %v4951_v12, %v12525_v27  ;;  %v5631_v1 = vrot.slane %v4951_v12, %v12528_v8 }
 0x429   : > { %v6945_v24 = vrot.slane %v6917_v48, %v12543_v36  ;;  %v6946_v20 = vcombine.low %v6924_v47, %v6931_v34  ;;  %v5635_v51 = vrot.slane %v4951_v12, %v12531_v33  ;;  %v5639_v23 = vrot.slane %v4951_v12, %v12534_v46 }
 0x42a   : > { %v6913_v42 = vcombine.low %v6905_v22, %v6912_v11  ;;  %v5643_v38 = vrot.slane %v4951_v12, %v12537_v35  ;;  %v5647_v14 = vrot.slane %v4951_v12, %v12540_v7  ;;  %v6963_v55 = vcombine.low %v5619_v45, %v5623_v56  ;;  %v4957_v45 = vpop.xlane.xlu1 %4956 }
 0x42b   : > { %v6947_v19 = vcombine.low %v6938_v10, %v6945_v24  ;;  %v6954_v9 = vrot.slane %v6946_v20, %v12543_v36  ;;  %v6964_v30 = vcombine.low %v5627_v2, %v5631_v1  ;;  %v6965_v60 = vcombine.low %v5635_v51, %v5639_v23 }
 0x42c   : > { %7652 = vperm.xlu1 %9167, %v6913_v42   ;;  %v6966_v31 = vcombine.low %v5643_v38, %v5647_v14  ;;  %v6973_v21 = vrot.slane %v6963_v55, %v12543_v36  ;;  %v5651_v40 = vrot.slane %v4953_v29, %v12519_v44  ;;  %v5655_v16 = vrot.slane %v4953_v29, %v12522_v17 }
 0x42d   : > { %v6961_v4 = vrot.slane %v6947_v19, %v12543_v36  ;;  %v6980_v28 = vrot.slane %v6964_v30, %v12543_v36  ;;  %v6987_v54 = vrot.slane %v6965_v60, %v12543_v36  ;;  %v5659_v53 = vrot.slane %v4953_v29, %v12525_v27  ;;  %v4959_v60 = vpop.xlane.xlu0 %4958 }
 0x42e   : > { %v6994_v18 = vrot.slane %v6966_v31, %v12543_v36  ;;  %v5663_v58 = vrot.slane %v4953_v29, %v12528_v8  ;;  %v5667_v41 = vrot.slane %v4953_v29, %v12531_v33  ;;  %v5671_v5 = vrot.slane %v4953_v29, %v12534_v46 }
 0x42f   : > { %v6962_v12 = vcombine.low %v6954_v9, %v6961_v4  ;;  %v6995_v6 = vcombine.low %v6973_v21, %v6980_v28  ;;  %v5675_v43 = vrot.slane %v4953_v29, %v12537_v35  ;;  %v5679_v39 = vrot.slane %v4953_v29, %v12540_v7 }
 0x430   : > { %v6996_v63 = vcombine.low %v6987_v54, %v6994_v18  ;;  %v7012_v37 = vcombine.low %v5651_v40, %v5655_v16  ;;  %v7013_v0 = vcombine.low %v5659_v53, %v5663_v58  ;;  %v7014_v15 = vcombine.low %v5667_v41, %v5671_v5 }
 0x431   : > { %7655 = vperm.xlu0 %9166, %v6962_v12   ;;  %v7003_v49 = vrot.slane %v6995_v6, %v12543_v36  ;;  %v7015_v52 = vcombine.low %v5675_v43, %v5679_v39  ;;  %v5683_v3 = vrot.slane %v4955_v26, %v12519_v44  ;;  %v5687_v61 = vrot.slane %v4955_v26, %v12522_v17 }
 0x432   : > { %v7010_v57 = vrot.slane %v6996_v63, %v12543_v36  ;;  %v7022_v13 = vrot.slane %v7012_v37, %v12543_v36  ;;  %v7029_v22 = vrot.slane %v7013_v0, %v12543_v36  ;;  %v7036_v50 = vrot.slane %v7014_v15, %v12543_v36 }
 0x433   : > { %v7043_v48 = vrot.slane %v7015_v52, %v12543_v36  ;;  %v5691_v47 = vrot.slane %v4955_v26, %v12525_v27  ;;  %v5695_v34 = vrot.slane %v4955_v26, %v12528_v8  ;;  %v5699_v56 = vrot.slane %v4955_v26, %v12531_v33 }
 0x434   : > { %v7011_v11 = vcombine.low %v7003_v49, %v7010_v57  ;;  %v7044_v10 = vcombine.low %v7022_v13, %v7029_v22  ;;  %v5703_v2 = vrot.slane %v4955_v26, %v12534_v46  ;;  %v5707_v1 = vrot.slane %v4955_v26, %v12537_v35 }
 0x435   : > { %v7045_v29 = vcombine.low %v7036_v50, %v7043_v48  ;;  %v5711_v24 = vrot.slane %v4955_v26, %v12540_v7  ;;  %v7061_v20 = vcombine.low %v5683_v3, %v5687_v61  ;;  %v7062_v51 = vcombine.low %v5691_v47, %v5695_v34  ;;  %v4961_v61 = vpop.xlane.xlu1 %4960 }
 0x436   : > { %7658 = vperm.xlu1 %9167, %v7011_v11   ;;  %v7052_v23 = vrot.slane %v7044_v10, %v12543_v36  ;;  %v7063_v42 = vcombine.low %v5699_v56, %v5703_v2  ;;  %v5715_v38 = vrot.slane %v4957_v45, %v12519_v44  ;;  %v5719_v14 = vrot.slane %v4957_v45, %v12522_v17 }
 0x437   : > { %v7059_v55 = vrot.slane %v7045_v29, %v12543_v36  ;;  %v7064_v19 = vcombine.low %v5707_v1, %v5711_v24  ;;  %v7071_v9 = vrot.slane %v7061_v20, %v12543_v36  ;;  %v7078_v30 = vrot.slane %v7062_v51, %v12543_v36 }
 0x438   : > { %v7085_v31 = vrot.slane %v7063_v42, %v12543_v36  ;;  %v5723_v21 = vrot.slane %v4957_v45, %v12525_v27  ;;  %v5727_v40 = vrot.slane %v4957_v45, %v12528_v8  ;;  %v5731_v16 = vrot.slane %v4957_v45, %v12531_v33 }
 0x439   : > { %v7060_v4 = vcombine.low %v7052_v23, %v7059_v55  ;;  %v7092_v28 = vrot.slane %v7064_v19, %v12543_v36  ;;  %v7093_v54 = vcombine.low %v7071_v9, %v7078_v30  ;;  %v5735_v53 = vrot.slane %v4957_v45, %v12534_v46 }
 0x43a   : > { %v5739_v26 = vrot.slane %v4957_v45, %v12537_v35  ;;  %v5743_v18 = vrot.slane %v4957_v45, %v12540_v7  ;;  %v7110_v58 = vcombine.low %v5715_v38, %v5719_v14  ;;  %v7111_v41 = vcombine.low %v5723_v21, %v5727_v40  ;;  %v4963_v14 = vpop.xlane.xlu0 %4962 }
 0x43b   : > { %7661 = vperm.xlu0 %9166, %v7060_v4   ;;  %v7094_v5 = vcombine.low %v7085_v31, %v7092_v28  ;;  %v7101_v12 = vrot.slane %v7093_v54, %v12543_v36  ;;  %v7112_v6 = vcombine.low %v5731_v16, %v5735_v53  ;;  %v5747_v43 = vrot.slane %v4959_v60, %v12519_v44 }
 0x43c   : > { %v7113_v39 = vcombine.low %v5739_v26, %v5743_v18  ;;  %v7120_v63 = vrot.slane %v7110_v58, %v12543_v36  ;;  %v7127_v37 = vrot.slane %v7111_v41, %v12543_v36  ;;  %v5751_v0 = vrot.slane %v4959_v60, %v12522_v17 }
 0x43d   : > { %v7108_v15 = vrot.slane %v7094_v5, %v12543_v36  ;;  %v7134_v49 = vrot.slane %v7112_v6, %v12543_v36  ;;  %v5755_v52 = vrot.slane %v4959_v60, %v12525_v27  ;;  %v5759_v3 = vrot.slane %v4959_v60, %v12528_v8 }
 0x43e   : > { %v7141_v57 = vrot.slane %v7113_v39, %v12543_v36  ;;  %v7142_v13 = vcombine.low %v7120_v63, %v7127_v37  ;;  %v5763_v22 = vrot.slane %v4959_v60, %v12531_v33  ;;  %v5767_v50 = vrot.slane %v4959_v60, %v12534_v46 }
 0x43f   : > { %v7109_v45 = vcombine.low %v7101_v12, %v7108_v15  ;;  %v5771_v48 = vrot.slane %v4959_v60, %v12537_v35  ;;  %v5775_v47 = vrot.slane %v4959_v60, %v12540_v7  ;;  %v7159_v34 = vcombine.low %v5747_v43, %v5751_v0 }
 0x440   : > { %v7143_v56 = vcombine.low %v7134_v49, %v7141_v57  ;;  %v7150_v11 = vrot.slane %v7142_v13, %v12543_v36  ;;  %v7160_v10 = vcombine.low %v5755_v52, %v5759_v3  ;;  %v7161_v2 = vcombine.low %v5763_v22, %v5767_v50 }
 0x441   : > { %7664 = vperm.xlu1 %9167, %v7109_v45   ;;  %v7162_v1 = vcombine.low %v5771_v48, %v5775_v47  ;;  %v7169_v29 = vrot.slane %v7159_v34, %v12543_v36  ;;  %v5779_v24 = vrot.slane %v4961_v61, %v12519_v44  ;;  %v5783_v20 = vrot.slane %v4961_v61, %v12522_v17 }
 0x442   : > { %v7157_v51 = vrot.slane %v7143_v56, %v12543_v36  ;;  %v7176_v23 = vrot.slane %v7160_v10, %v12543_v36  ;;  %v7183_v42 = vrot.slane %v7161_v2, %v12543_v36  ;;  %v5787_v38 = vrot.slane %v4961_v61, %v12525_v27 }
 0x443   : > { %v7190_v55 = vrot.slane %v7162_v1, %v12543_v36  ;;  %v5791_v19 = vrot.slane %v4961_v61, %v12528_v8  ;;  %v5795_v9 = vrot.slane %v4961_v61, %v12531_v33  ;;  %v5799_v30 = vrot.slane %v4961_v61, %v12534_v46 }
 0x444   : > { %v7158_v60 = vcombine.low %v7150_v11, %v7157_v51  ;;  %v7191_v31 = vcombine.low %v7169_v29, %v7176_v23  ;;  %v5803_v21 = vrot.slane %v4961_v61, %v12537_v35  ;;  %v5807_v40 = vrot.slane %v4961_v61, %v12540_v7 }
 0x445   : > { %v7192_v16 = vcombine.low %v7183_v42, %v7190_v55  ;;  %v7208_v4 = vcombine.low %v5779_v24, %v5783_v20  ;;  %v7209_v28 = vcombine.low %v5787_v38, %v5791_v19  ;;  %v7210_v54 = vcombine.low %v5795_v9, %v5799_v30 }
 0x446   : > { %7667 = vperm.xlu0 %9166, %v7158_v60   ;;  %v7199_v53 = vrot.slane %v7191_v31, %v12543_v36  ;;  %v7211_v26 = vcombine.low %v5803_v21, %v5807_v40  ;;  %v5811_v18 = vrot.slane %v4963_v14, %v12519_v44  ;;  %v5815_v58 = vrot.slane %v4963_v14, %v12522_v17 }
 0x447   : > { %v7206_v41 = vrot.slane %v7192_v16, %v12543_v36  ;;  %v7218_v5 = vrot.slane %v7208_v4, %v12543_v36  ;;  %v7225_v12 = vrot.slane %v7209_v28, %v12543_v36  ;;  %v7232_v6 = vrot.slane %v7210_v54, %v12543_v36 }
 0x448   : > { %v7239_v43 = vrot.slane %v7211_v26, %v12543_v36  ;;  %v5819_v39 = vrot.slane %v4963_v14, %v12525_v27  ;;  %v5823_v63 = vrot.slane %v4963_v14, %v12528_v8  ;;  %v5827_v37 = vrot.slane %v4963_v14, %v12531_v33 }
 0x449   : > { %v7207_v0 = vcombine.low %v7199_v53, %v7206_v41  ;;  %v7240_v15 = vcombine.low %v7218_v5, %v7225_v12  ;;  %v5831_v49 = vrot.slane %v4963_v14, %v12534_v46  ;;  %v5835_v52 = vrot.slane %v4963_v14, %v12537_v35  ;;  %v4965_v53 = vpop.xlane.xlu1 %4964 }
 0x44a   : > { %v7241_v3 = vcombine.low %v7232_v6, %v7239_v43  ;;  %v5839_v61 = vrot.slane %v4963_v14, %v12540_v7  ;;  %v7257_v57 = vcombine.low %v5811_v18, %v5815_v58  ;;  %v7258_v13 = vcombine.low %v5819_v39, %v5823_v63 }
 0x44b   : > { %7670 = vperm.xlu1 %9167, %v7207_v0   ;;  %v7248_v22 = vrot.slane %v7240_v15, %v12543_v36  ;;  %v7259_v50 = vcombine.low %v5827_v37, %v5831_v49  ;;  %v5459_v45 = vrot.slane %v12717_v59, %v12519_v44  ;;  %v5463_v48 = vrot.slane %v12717_v59, %v12522_v17 }
 0x44c   : > { %v7255_v47 = vrot.slane %v7241_v3, %v12543_v36  ;;  %v7260_v34 = vcombine.low %v5835_v52, %v5839_v61  ;;  %v7267_v56 = vrot.slane %v7257_v57, %v12543_v36  ;;  %v7274_v11 = vrot.slane %v7258_v13, %v12543_v36 }
 0x44d   : > { %v7281_v10 = vrot.slane %v7259_v50, %v12543_v36  ;;  %v5467_v2 = vrot.slane %v12717_v59, %v12525_v27  ;;  %v5471_v1 = vrot.slane %v12717_v59, %v12528_v8  ;;  %v5475_v29 = vrot.slane %v12717_v59, %v12531_v33 }
 0x44e   : > { %v7256_v24 = vcombine.low %v7248_v22, %v7255_v47  ;;  %v7288_v20 = vrot.slane %v7260_v34, %v12543_v36  ;;  %v7289_v51 = vcombine.low %v7267_v56, %v7274_v11  ;;  %v5479_v23 = vrot.slane %v12717_v59, %v12534_v46  ;;  %v4967_v22 = vpop.xlane.xlu0 %4966 }
 0x44f   : > { %v5483_v42 = vrot.slane %v12717_v59, %v12537_v35  ;;  %v5487_v38 = vrot.slane %v12717_v59, %v12540_v7  ;;  %v6718_v14 = vcombine.low %v5459_v45, %v5463_v48  ;;  %v6719_v55 = vcombine.low %v5467_v2, %v5471_v1 }
 0x450   : > { %7673 = vperm.xlu0 %9166, %v7256_v24   ;;  %v7290_v19 = vcombine.low %v7281_v10, %v7288_v20  ;;  %v7297_v9 = vrot.slane %v7289_v51, %v12543_v36  ;;  %v6720_v30 = vcombine.low %v5475_v29, %v5479_v23  ;;  %v5491_v60 = vrot.slane %v12733_v32, %v12519_v44 }
 0x451   : > { %v6721_v31 = vcombine.low %v5483_v42, %v5487_v38  ;;  %v6728_v21 = vrot.slane %v6718_v14, %v12543_v36  ;;  %v6735_v40 = vrot.slane %v6719_v55, %v12543_v36  ;;  %v5495_v16 = vrot.slane %v12733_v32, %v12522_v17 }
 0x452   : > { %v7304_v59 = vrot.slane %v7290_v19, %v12543_v36  ;;  %v6742_v4 = vrot.slane %v6720_v30, %v12543_v36  ;;  %v5499_v28 = vrot.slane %v12733_v32, %v12525_v27  ;;  %v5503_v54 = vrot.slane %v12733_v32, %v12528_v8 }
 0x453   : > { %v6749_v26 = vrot.slane %v6721_v31, %v12543_v36  ;;  %v6750_v18 = vcombine.low %v6728_v21, %v6735_v40  ;;  %v5507_v58 = vrot.slane %v12733_v32, %v12531_v33  ;;  %v5511_v41 = vrot.slane %v12733_v32, %v12534_v46 }
 0x454   : > { %v7305_v5 = vcombine.low %v7297_v9, %v7304_v59  ;;  %v5515_v12 = vrot.slane %v12733_v32, %v12537_v35  ;;  %v5519_v6 = vrot.slane %v12733_v32, %v12540_v7  ;;  %v6767_v43 = vcombine.low %v5491_v60, %v5495_v16  ;;  %v4969_v9 = vpop.xlane.xlu1 %4968 }
 0x455   : > { %v6751_v39 = vcombine.low %v6742_v4, %v6749_v26  ;;  %v6758_v63 = vrot.slane %v6750_v18, %v12543_v36  ;;  %v6768_v37 = vcombine.low %v5499_v28, %v5503_v54  ;;  %v6769_v0 = vcombine.low %v5507_v58, %v5511_v41 }
 0x456   : > { %7676 = vperm.xlu1 %9167, %v7305_v5   ;;  %v6770_v15 = vcombine.low %v5515_v12, %v5519_v6  ;;  %v6777_v49 = vrot.slane %v6767_v43, %v12543_v36  ;;  %v5843_v52 = vrot.slane %v4965_v53, %v12519_v44  ;;  %v5847_v3 = vrot.slane %v4965_v53, %v12522_v17 }
 0x457   : > { %v6765_v61 = vrot.slane %v6751_v39, %v12543_v36  ;;  %v6784_v57 = vrot.slane %v6768_v37, %v12543_v36  ;;  %v6791_v32 = vrot.slane %v6769_v0, %v12543_v36  ;;  %v5851_v13 = vrot.slane %v4965_v53, %v12525_v27 }
 0x458   : > { %v6798_v50 = vrot.slane %v6770_v15, %v12543_v36  ;;  %v5855_v45 = vrot.slane %v4965_v53, %v12528_v8  ;;  %v5859_v48 = vrot.slane %v4965_v53, %v12531_v33  ;;  %v5863_v47 = vrot.slane %v4965_v53, %v12534_v46 }
 0x459   : > { %v6766_v34 = vcombine.low %v6758_v63, %v6765_v61  ;;  %v6799_v56 = vcombine.low %v6777_v49, %v6784_v57  ;;  %v5867_v11 = vrot.slane %v4965_v53, %v12537_v35  ;;  %v5871_v10 = vrot.slane %v4965_v53, %v12540_v7  ;;  %v4971_v63 = vpop.xlane.xlu0 %4970 }
 0x45a   : > { %v6800_v2 = vcombine.low %v6791_v32, %v6798_v50  ;;  %v7306_v1 = vcombine.low %v5843_v52, %v5847_v3  ;;  %v7307_v29 = vcombine.low %v5851_v13, %v5855_v45  ;;  %v7308_v24 = vcombine.low %v5859_v48, %v5863_v47 }
 0x45b   : > { %7643 = vperm.xlu0 %9166, %v6766_v34   ;;  %v6807_v20 = vrot.slane %v6799_v56, %v12543_v36  ;;  %v7309_v51 = vcombine.low %v5867_v11, %v5871_v10  ;;  %v5875_v23 = vrot.slane %v4967_v22, %v12519_v44  ;;  %v5879_v42 = vrot.slane %v4967_v22, %v12522_v17 }
 0x45c   : > { %v6814_v38 = vrot.slane %v6800_v2, %v12543_v36  ;;  %v7316_v14 = vrot.slane %v7306_v1, %v12543_v36  ;;  %v7323_v55 = vrot.slane %v7307_v29, %v12543_v36  ;;  %v7330_v19 = vrot.slane %v7308_v24, %v12543_v36 }
 0x45d   : > { %v7337_v30 = vrot.slane %v7309_v51, %v12543_v36  ;;  %v5883_v60 = vrot.slane %v4967_v22, %v12525_v27  ;;  %v5887_v31 = vrot.slane %v4967_v22, %v12528_v8  ;;  %v5891_v21 = vrot.slane %v4967_v22, %v12531_v33  ;;  %v4973_v51 = vpop.xlane.xlu1 %4972 }
 0x45e   : > { %v6815_v40 = vcombine.low %v6807_v20, %v6814_v38  ;;  %v7338_v16 = vcombine.low %v7316_v14, %v7323_v55  ;;  %v5895_v59 = vrot.slane %v4967_v22, %v12534_v46  ;;  %v5899_v4 = vrot.slane %v4967_v22, %v12537_v35 }
 0x45f   : > { %v7339_v28 = vcombine.low %v7330_v19, %v7337_v30  ;;  %v5903_v54 = vrot.slane %v4967_v22, %v12540_v7  ;;  %v7355_v53 = vcombine.low %v5875_v23, %v5879_v42  ;;  %v7356_v26 = vcombine.low %v5883_v60, %v5887_v31 }
 0x460   : > { %7646 = vperm.xlu0 %9166, %v6815_v40   ;;  %v7346_v18 = vrot.slane %v7338_v16, %v12543_v36  ;;  %v7357_v58 = vcombine.low %v5891_v21, %v5895_v59  ;;  %v5907_v41 = vrot.slane %v4969_v9, %v12519_v44  ;;  %v5911_v5 = vrot.slane %v4969_v9, %v12522_v17 }
 0x461   : > { %v7353_v12 = vrot.slane %v7339_v28, %v12543_v36  ;;  %v7358_v6 = vcombine.low %v5899_v4, %v5903_v54  ;;  %v7365_v43 = vrot.slane %v7355_v53, %v12543_v36  ;;  %v7372_v39 = vrot.slane %v7356_v26, %v12543_v36 }
 0x462   : > { %v7379_v37 = vrot.slane %v7357_v58, %v12543_v36  ;;  %v5915_v0 = vrot.slane %v4969_v9, %v12525_v27  ;;  %v5919_v15 = vrot.slane %v4969_v9, %v12528_v8  ;;  %v5923_v49 = vrot.slane %v4969_v9, %v12531_v33  ;;  %v4975_v58 = vpop.xlane.xlu0 %4974 }
 0x463   : > { %v7354_v52 = vcombine.low %v7346_v18, %v7353_v12  ;;  %v7386_v3 = vrot.slane %v7358_v6, %v12543_v36  ;;  %v7387_v61 = vcombine.low %v7365_v43, %v7372_v39  ;;  %v5927_v57 = vrot.slane %v4969_v9, %v12534_v46 }
 0x464   : > { %v5931_v32 = vrot.slane %v4969_v9, %v12537_v35  ;;  %v5935_v13 = vrot.slane %v4969_v9, %v12540_v7  ;;  %v7404_v22 = vcombine.low %v5907_v41, %v5911_v5  ;;  %v7405_v50 = vcombine.low %v5915_v0, %v5919_v15 }
 0x465   : > { %7679 = vperm.xlu1 %9167, %v7354_v52   ;;  %v7388_v45 = vcombine.low %v7379_v37, %v7386_v3  ;;  %v7395_v48 = vrot.slane %v7387_v61, %v12543_v36  ;;  %v7406_v47 = vcombine.low %v5923_v49, %v5927_v57  ;;  %v5939_v34 = vrot.slane %v4971_v63, %v12519_v44 }
 0x466   : > { %v7407_v56 = vcombine.low %v5931_v32, %v5935_v13  ;;  %v7414_v11 = vrot.slane %v7404_v22, %v12543_v36  ;;  %v7421_v10 = vrot.slane %v7405_v50, %v12543_v36  ;;  %v5943_v2 = vrot.slane %v4971_v63, %v12522_v17 }
 0x467   : > { %v7402_v1 = vrot.slane %v7388_v45, %v12543_v36  ;;  %v7428_v29 = vrot.slane %v7406_v47, %v12543_v36  ;;  %v5947_v24 = vrot.slane %v4971_v63, %v12525_v27  ;;  %v5951_v20 = vrot.slane %v4971_v63, %v12528_v8 }
 0x468   : > { %v7435_v23 = vrot.slane %v7407_v56, %v12543_v36  ;;  %v7436_v42 = vcombine.low %v7414_v11, %v7421_v10  ;;  %v5955_v38 = vrot.slane %v4971_v63, %v12531_v33  ;;  %v5959_v14 = vrot.slane %v4971_v63, %v12534_v46 }
 0x469   : > { %v7403_v55 = vcombine.low %v7395_v48, %v7402_v1  ;;  %v5963_v19 = vrot.slane %v4971_v63, %v12537_v35  ;;  %v5967_v9 = vrot.slane %v4971_v63, %v12540_v7  ;;  %v7453_v30 = vcombine.low %v5939_v34, %v5943_v2 }
 0x46a   : > { %v7437_v60 = vcombine.low %v7428_v29, %v7435_v23  ;;  %v7444_v31 = vrot.slane %v7436_v42, %v12543_v36  ;;  %v7454_v21 = vcombine.low %v5947_v24, %v5951_v20  ;;  %v7455_v40 = vcombine.low %v5955_v38, %v5959_v14 }
 0x46b   : > { %7682 = vperm.xlu1 %9167, %v7403_v55   ;;  %v7456_v16 = vcombine.low %v5963_v19, %v5967_v9  ;;  %v7463_v59 = vrot.slane %v7453_v30, %v12543_v36  ;;  %v5971_v4 = vrot.slane %v4973_v51, %v12519_v44  ;;  %v5975_v28 = vrot.slane %v4973_v51, %v12522_v17  ;;  %v7602_v9 = vpop.permute.xlu1 %7601  ;;  %v7605_v30 = vpop.permute.xlu0 %7604 }
 0x46c   : > { %v7451_v54 = vrot.slane %v7437_v60, %v12543_v36  ;;  %v7470_v53 = vrot.slane %v7454_v21, %v12543_v36  ;;  %v7477_v26 = vrot.slane %v7455_v40, %v12543_v36  ;;  %v5979_v18 = vrot.slane %v4973_v51, %v12525_v27 }
 0x46d   : > { %v7484_v41 = vrot.slane %v7456_v16, %v12543_v36  ;;  %v5983_v5 = vrot.slane %v4973_v51, %v12528_v8  ;;  %v5987_v12 = vrot.slane %v4973_v51, %v12531_v33  ;;  %v5991_v6 = vrot.slane %v4973_v51, %v12534_v46 }
 0x46e   : > { %v7452_v43 = vcombine.low %v7444_v31, %v7451_v54  ;;  %v7485_v39 = vcombine.low %v7463_v59, %v7470_v53  ;;  %v5995_v63 = vrot.slane %v4973_v51, %v12537_v35  ;;  %v5999_v37 = vrot.slane %v4973_v51, %v12540_v7 }
 0x46f   : > { %v7486_v0 = vcombine.low %v7477_v26, %v7484_v41  ;;  %v7502_v15 = vcombine.low %v5971_v4, %v5975_v28  ;;  %v7503_v49 = vcombine.low %v5979_v18, %v5983_v5  ;;  %v7504_v52 = vcombine.low %v5987_v12, %v5991_v6  ;;  %v7608_v60 = vpop.permute.xlu1 %7607 }
 0x470   : > { %7685 = vperm.xlu1 %9167, %v7452_v43   ;;  %v7493_v3 = vrot.slane %v7485_v39, %v12543_v36  ;;  %v7505_v61 = vcombine.low %v5995_v63, %v5999_v37  ;;  %v6003_v57 = vrot.slane %v4975_v58, %v12519_v44  ;;  %v6007_v32 = vrot.slane %v4975_v58, %v12522_v17  ;;  %v13604_v43 = vld [vmem:[#allocation5_spill] sm:$0xff] }
 0x471   : > { %v7500_v13 = vrot.slane %v7486_v0, %v12543_v36  ;;  %v7512_v22 = vrot.slane %v7502_v15, %v12543_v36  ;;  %v7519_v50 = vrot.slane %v7503_v49, %v12543_v36  ;;  %v7526_v45 = vrot.slane %v7504_v52, %v12543_v36  ;;  %v7614_v31 = vpop.permute.xlu0 %7613 }
 0x472   : > { %v7533_v48 = vrot.slane %v7505_v61, %v12543_v36  ;;  %v6011_v47 = vrot.slane %v4975_v58, %v12525_v27  ;;  %v6015_v34 = vrot.slane %v4975_v58, %v12528_v8  ;;  %v6019_v56 = vrot.slane %v4975_v58, %v12531_v33 }
 0x473   : > { %v7501_v11 = vcombine.low %v7493_v3, %v7500_v13  ;;  %v7534_v44 = vcombine.low %v7512_v22, %v7519_v50  ;;  %v6023_v17 = vrot.slane %v4975_v58, %v12534_v46  ;;  %v6027_v10 = vrot.slane %v4975_v58, %v12537_v35  ;;  %v7611_v21 = vpop.permute.xlu1 %7610 }
 0x474   : > { %v7535_v2 = vcombine.low %v7526_v45, %v7533_v48  ;;  %v6031_v1 = vrot.slane %v4975_v58, %v12540_v7  ;;  %v7551_v29 = vcombine.low %v6003_v57, %v6007_v32  ;;  %v7552_v24 = vcombine.low %v6011_v47, %v6015_v34 }
 0x475   : > { %7688 = vperm.xlu1 %9167, %v7501_v11   ;;  %v7542_v20 = vrot.slane %v7534_v44, %v12543_v36  ;;  %v7553_v51 = vcombine.low %v6019_v56, %v6023_v17  ;;  %v7700_v39 = vadd.s32 4294967288, %v13604_v43  ;;  %v7707_v37 = vadd.s32 4294967280, %v13604_v43 }
 0x476   : > { %v7549_v27 = vrot.slane %v7535_v2, %v12543_v36  ;;  %v7554_v8 = vcombine.low %v6027_v10, %v6031_v1  ;;  %v7561_v33 = vrot.slane %v7551_v29, %v12543_v36  ;;  %v7568_v23 = vrot.slane %v7552_v24, %v12543_v36 }
 0x477   : > { %v7575_v46 = vrot.slane %v7553_v51, %v12543_v36  ;;  %v13015_v16 = vpop.permute.xlu1 %7616  ;;  %v7714_v0 = vadd.s32 4294967272, %v13604_v43  ;;  %v7721_v15 = vadd.s32 4294967264, %v13604_v43  ;;  %v7703_v52 = vsub.s32 %v7700_v39, %v12516_v62 }
 0x478   : > { %v7550_v42 = vcombine.low %v7542_v20, %v7549_v27  ;;  %v7582_v35 = vrot.slane %v7554_v8, %v12543_v36  ;;  %v7583_v38 = vcombine.low %v7561_v33, %v7568_v23  ;;  %v7698_v61 = vsub.s32 %v13604_v43, %v12516_v62 }
 0x479   : > { %v7710_v57 = vsub.s32 %v7707_v37, %v12516_v62  ;;  %v7717_v32 = vsub.s32 %v7714_v0, %v12516_v62  ;;  %v7728_v13 = vadd.s32 4294967256, %v13604_v43  ;;  %v7724_v22 = vsub.s32 %v7721_v15, %v12516_v62 }
 0x47a   : > { %7691 = vperm.xlu1 %9167, %v7550_v42   ;;  %v7584_v7 = vcombine.low %v7575_v46, %v7582_v35  ;;  %v7591_v14 = vrot.slane %v7583_v38, %v12543_v36  ;;  %v7735_v50 = vadd.s32 4294967248, %v13604_v43  ;;  %v7704_v48 = vrot.slane %v7605_v30, %v7703_v52 }
 0x47b   : > { %v13013_v40 = vpop.permute.xlu0 %7619  ;;  %v7699_v34 = vrot.slane %v7602_v9, %v7698_v61  ;;  %v7711_v56 = vrot.slane %v7608_v60, %v7710_v57  ;;  %v7718_v44 = vrot.slane %v7611_v21, %v7717_v32  ;;  %v7731_v17 = vsub.s32 %v7728_v13, %v12516_v62 }
 0x47c   : > { %v7598_v55 = vrot.slane %v7584_v7, %v12543_v36  ;;  %v7725_v1 = vrot.slane %v7614_v31, %v7724_v22  ;;  %v7738_v29 = vsub.s32 %v7735_v50, %v12516_v62  ;;  %v7742_v24 = vadd.s32 4294967240, %v13604_v43 }
 0x47d   : > { %v7706_v51 = vsel %vm7705_vm0, %v7704_v48, %v7699_v34  ;;  %v7749_v23 = vadd.s32 4294967232, %v13604_v43  ;;  %v7732_v38 = vrot.slane %v13015_v16, %v7731_v17  ;;  %v7756_v30 = vadd.s32 4294967224, %v13604_v43 }
 0x47e   : > { %v7599_v19 = vcombine.low %v7591_v14, %v7598_v55  ;;  %v7713_v33 = vsel %vm7712_vm1, %v7711_v56, %v7706_v51  ;;  %v7739_v14 = vrot.slane %v13013_v40, %v7738_v29  ;;  %v7745_v55 = vsub.s32 %v7742_v24, %v12516_v62 }
 0x47f   : > { %v7720_v35 = vsel %vm7719_vm2, %v7718_v44, %v7713_v33  ;;  %v7752_v21 = vsub.s32 %v7749_v23, %v12516_v62  ;;  %v7763_v16 = vadd.s32 4294967216, %v13604_v43  ;;  %v7777_v0 = vadd.s32 4294967200, %v13604_v43 }
 0x480   : > { %7694 = vperm.xlu1 %9167, %v7599_v19   ;;  %v7727_v7 = vsel %vm7726_vm3, %v7725_v1, %v7720_v35  ;;  %v7759_v15 = vsub.s32 %v7756_v30, %v12516_v62  ;;  %v7798_v48 = vadd.s32 4294967176, %v13604_v43 }
 0x481   : > { %v13019_v4 = vpop.permute.xlu1 %7622  ;;  %v7734_v40 = vsel %vm7733_vm4, %v7732_v38, %v7727_v7  ;;  %v7766_v13 = vsub.s32 %v7763_v16, %v12516_v62 }
 0x482   : > { %v7741_v39 = vsel %vm7740_vm5, %v7739_v14, %v7734_v40  ;;  %v7746_v37 = vrot.slane %v13019_v4, %v7745_v55 }
 0x486   : > { %v13017_v59 = vpop.permute.xlu0 %7625 }
 0x48b   : > { %v13023_v54 = vpop.permute.xlu1 %7628 }
 0x490   : > { %v13021_v28 = vpop.permute.xlu0 %7631 }
 0x496   : > { %v13025_v53 = vpop.permute.xlu0 %7634 }
 0x49b   : > { %v13027_v58 = vpop.permute.xlu0 %7637 }
 0x4a0   : > { %v13031_v5 = vpop.permute.xlu0 %7640 }
 0x4a5   : > { %v7650_v6 = vpop.permute.xlu0 %7649 }
 0x4a6   : > { %v7808_v10 = vrot.slane %v7650_v6, %v7698_v61  ;;  %v7770_v6 = vadd.s32 4294967208, %v13604_v43  ;;  %v7791_v61 = vadd.s32 4294967184, %v13604_v43 }
 0x4a8   : > { %v7794_v44 = vsub.s32 %v7791_v61, %v12516_v62 }
 0x4ab   : > { %v7653_v26 = vpop.permute.xlu1 %7652 }
 0x4ac   : > { %v7812_v47 = vrot.slane %v7653_v26, %v7703_v52 }
 0x4ae   : > { %v7813_v27 = vsel %vm7705_vm0, %v7812_v47, %v7808_v10  ;;  %v7748_v47 = vsel %vm7747_vm6, %v7746_v37, %v7741_v39  ;;  %v7767_v10 = vrot.slane %v13021_v28, %v7766_v13 }
 0x4b0   : > { %v7656_v49 = vpop.permute.xlu0 %7655 }
 0x4b1   : > { %v7817_v11 = vrot.slane %v7656_v49, %v7710_v57 }
 0x4b3   : > { %v7818_v46 = vsel %vm7712_vm1, %v7817_v11, %v7813_v27 }
 0x4b5   : > { %v7659_v18 = vpop.permute.xlu1 %7658 }
 0x4b6   : > { %v7822_v8 = vrot.slane %v7659_v18, %v7717_v32  ;;  %v7753_v32 = vrot.slane %v13017_v59, %v7752_v21  ;;  %v7760_v59 = vrot.slane %v13023_v54, %v7759_v15 }
 0x4b8   : > { %v7823_v60 = vsel %vm7719_vm2, %v7822_v8, %v7818_v46 }
 0x4ba   : > { %v7662_v45 = vpop.permute.xlu0 %7661 }
 0x4bb   : > { %v7827_v42 = vrot.slane %v7662_v45, %v7724_v22  ;;  %v7773_v45 = vsub.s32 %v7770_v6, %v12516_v62 }
 0x4bd   : > { %v7828_v26 = vsel %vm7726_vm3, %v7827_v42, %v7823_v60  ;;  %v7774_v24 = vrot.slane %v13025_v53, %v7773_v45 }
 0x4c0   : > { %v13029_v41 = vpop.permute.xlu1 %7664 }
 0x4c1   : > { %v7832_v31 = vrot.slane %v13029_v41, %v7731_v17  ;;  %v7784_v41 = vadd.s32 4294967192, %v13604_v43  ;;  %v7755_v17 = vsel %vm7754_vm7, %v7753_v32, %v7748_v47 }
 0x4c2   : > { %v7762_v28 = vsel %vm7761_vm8, %v7760_v59, %v7755_v17 }
 0x4c3   : > { %v7833_v49 = vsel %vm7733_vm4, %v7832_v31, %v7828_v26  ;;  %v7787_v34 = vsub.s32 %v7784_v41, %v12516_v62 }
 0x4c5   : > { %v7668_v20 = vpop.permute.xlu0 %7667 }
 0x4c6   : > { %v7837_v18 = vrot.slane %v7668_v20, %v7738_v29  ;;  %v7801_v20 = vsub.s32 %v7798_v48, %v12516_v62 }
 0x4c8   : > { %v7838_v22 = vsel %vm7740_vm5, %v7837_v18, %v7833_v49 }
 0x4ca   : > { %v13033_v12 = vpop.permute.xlu1 %7670 }
 0x4cb   : > { %v7842_v52 = vrot.slane %v13033_v12, %v7745_v55  ;;  %v7780_v12 = vsub.s32 %v7777_v0, %v12516_v62  ;;  %v7769_v62 = vsel %vm7768_vm9, %v7767_v10, %v7762_v28 }
 0x4cd   : > { %v7843_v56 = vsel %vm7747_vm6, %v7842_v52, %v7838_v22 }
 0x4cf   : > { %v7674_v19 = vpop.permute.xlu0 %7673 }
 0x4d0   : > { %v7847_v4 = vrot.slane %v7674_v19, %v7752_v21 }
 0x4d2   : > { %v7848_v43 = vsel %vm7754_vm7, %v7847_v4, %v7843_v56 }
 0x4d5   : > { %v13036_v63 = vpop.permute.xlu1 %7676 }
 0x4d6   : > { %v7852_v11 = vrot.slane %v13036_v63, %v7759_v15  ;;  %v7781_v63 = vrot.slane %v13027_v58, %v7780_v12  ;;  %v7776_v58 = vsel %vm7775_vm10, %v7774_v24, %v7769_v62 }
 0x4d8   : > { %v7853_v8 = vsel %vm7761_vm8, %v7852_v11, %v7848_v43  ;;  %v7783_v35 = vsel %vm7782_vm11, %v7781_v63, %v7776_v58 }
 0x4da   : > { %v7644_v50 = vpop.permute.xlu0 %7643 }
 0x4db   : > { %v7795_v33 = vrot.slane %v7644_v50, %v7794_v44 }
 0x4df   : > { %v7647_v51 = vpop.permute.xlu0 %7646 }
 0x4e0   : > { %v7802_v46 = vrot.slane %v7647_v51, %v7801_v20 }
 0x4e4   : > { %v13042_v3 = vpop.permute.xlu1 %7679 }
 0x4e5   : > { %v7857_v1 = vrot.slane %v13042_v3, %v7766_v13  ;;  %v7788_v3 = vrot.slane %v13031_v5, %v7787_v34 }
 0x4e7   : > { %v7790_v7 = vsel %vm7789_vm12, %v7788_v3, %v7783_v35 }
 0x4e8   : > { %v7797_v19 = vsel %vm7796_vm13, %v7795_v33, %v7790_v7 }
 0x4e9   : > { %v7804_v30 = vsel %vm7803_vm14, %v7802_v46, %v7797_v19 }
 0x4ea   : > { %v13052_v2 = vpop.permute.xlu1 %7682 }
 0x4eb   : > { %v7862_v54 = vrot.slane %v13052_v2, %v7773_v45  ;;  %v7858_v2 = vsel %vm7768_vm9, %v7857_v1, %v7853_v8 }
 0x4ed   : > { %v7863_v42 = vsel %vm7775_vm10, %v7862_v54, %v7858_v2 }
 0x4ef   : > { %v13064_v9 = vpop.permute.xlu1 %7685 }
 0x4f0   : > { %v7867_v27 = vrot.slane %v13064_v9, %v7780_v12 }
 0x4f2   : > { %v7868_v5 = vsel %vm7782_vm11, %v7867_v27, %v7863_v42 }
 0x4f4   : > { %v7689_v57 = vpop.permute.xlu1 %7688 }
 0x4f5   : > { %v7872_v53 = vrot.slane %v7689_v57, %v7787_v34 }
 0x4f7   : > { %v7873_v14 = vsel %vm7789_vm12, %v7872_v53, %v7868_v5 }
 0x4f9   : > { %v7692_v29 = vpop.permute.xlu1 %7691 }
 0x4fa   : > { %v7877_v23 = vrot.slane %v7692_v29, %v7794_v44 }
 0x4fc   : > { %v7878_v9 = vsel %vm7796_vm13, %v7877_v23, %v7873_v14 }
 0x4ff   : > { %v7695_v38 = vpop.permute.xlu1 %7694 }
 0x500   : > { %v7882_v55 = vrot.slane %v7695_v38, %v7801_v20 }
 0x502   : > { %v7883_v60 = vsel %vm7803_vm14, %v7882_v55, %v7878_v9 }
 0x503   : > { %v7884_v31 = vcombine.low %v7804_v30, %v7883_v60 }
 0x505   : > { %v7891_v21 = vrot.slane %v7884_v31, %v12543_v36 }
 0x507   : > { %v7898_v16 = vrot.slane %v7891_v21, %v12543_v36 }
 0x509   : > { %7904 = vst.msk [vmem:[%s250_s12] sm:$0x3] %vm7902_vm15, %v7898_v16 }
 0x50a   : > { %9397 = shalt.err (!%p9394_p3)
}
 0x50b   : > { %s9398_s30 = scalar_lea.hbm %s13122_s17, 32  ;;  %s9402_s8 = scalar_lea.hbm %s13171_s5, 64 }
 0x50c   : > { %p9399_p4 = scmp.ne.s32.totalorder %s13122_s17, %s9398_s30  ;;  %p9403_p9 = scmp.lt.u32.totalorder %s13122_s17, %s13171_s5 }
 0x50d   : > { %p9404_p10 = scmp.lt.u32.totalorder %s9402_s8, %s9398_s30  ;;  %p9406_p12 = scmp.lt.u32.totalorder %s9398_s30, %s13122_s17 }
 0x50e   : > { %p9400_p7 = pnand %p9399_p4, %p9517_p5 }
 0x50f   : > { %p9405_p11 = por %p9404_p10, %p9403_p9 }
 0x510   : > { %p9401_p8 = pneg %p9400_p7 }
 0x511   : > { %p9407_p13 = por %p9406_p12, %p9405_p11 }
 0x513   : > { %p9408_p0 = pnand %p9407_p13, %p9401_p8 }
 0x515   : > { %9411 = shalt.err (!%p9408_p0)
}
 0x516   : > { %9124 = dma.vmem_to_hbm [thread:$0]  (%p9517_p5), %s13124_s13, 32, %s13122_s17, %s7906_s22  }
 0x517 PF: > { %p9130_p1 = scmp.ge.s32.totalorder %s9446_s21, 2  ;;  %s7932_s11 = sand.u32 1, %s9434_s18  }
 0x518   : > { %s7933_s12 = scalar_lea.sflag [#allocation3], %s7932_s11 }
 0x519   : > { %p9127_p2 = pnand %p9130_p1, %p9521_p6 }
 0x51b   : > { %9429 = dma.done.wait (!%p9127_p2), %s7933_s12, 32  }
 0x51c   : > { %9431 = vsyncadd (!%p9127_p2), %s7933_s12, 4294967264  ;;  %p15_p3 = scmp.ge.s32.totalorder %s9505_s24, 4   ;;  %s13605_s18 = smov %s9438_s19 }
 0x51d   : > { %s13606_s19 = smov %s9442_s20  ;;  %s13607_s20 = smov %s9515_s27 }
 0x51e   : > { %s13608_s21 = smov %s9505_s24  ;;  %17 = sbr.rel (!%p15_p3) target bundleno = 3 (0x3), region = 81 }
 0x525   :  { %7938 = vsyncpa [#allocation3], 1 }
 0x526   :  { %7940 = vsyncpa [#allocation3 + $0x1], 1 }

</bundles_post_ra>
